<compile_context>
chip_gen: v5e
topology: v5e:2x2
jax: 0.10.0
libtpu: 0.0.40
codegen_flags: <defaults>
</compile_context>

<pallas_src>
import jax
import jax.numpy as jnp
from jax.experimental import pallas as pl
from jax.experimental.pallas import tpu as pltpu

# ----------------------------- configuration -------------------------------
N = 2                    # batch
C_IN = 48                # Conv2d(48, 1024, ...) input channels (real value)
C_OUT = 128              # stand-in for 1024
H, W = 16, 8             # pooled_output spatial (scaled down)
H2, W2 = H // 2, W // 2
P = H2 * W2              # pooled positions per image (32)
NUM_CLASSES = 50         # esc50
NC_PAD = 128             # class dim zero-padded to one full lane tile
FC_IN = C_OUT * P        # mirrors 683008

# FC-weight streaming tile: P_BLK pooled positions per grid step.
# At the real size (C_OUT=1024) pick P_BLK so 2 x bf16 wf block stays well
# inside VMEM (e.g. 32-64 on v7x's 64 MiB, 2x that on v5e/v6e's 128 MiB).
P_BLK = 8
NUM_P_BLK = P // P_BLK
K_FC_BLK = P_BLK * C_OUT          # per-step FC contraction length


# ------------------------------- kernel -------------------------------------
def _fused_head_kernel(xpad_ref, wc_ref, bc_ref, wf_ref, bf_ref, out_ref,
                       pooled_sc, acc_sc):
    """Fused conv(3x3) + bias + ReLU + 2x2 avg-pool + streamed FC.

    xpad_ref:  (N, H+2, W+2, C_IN) f32   padded NHWC activation (whole batch)
    wc_ref:    (9, C_IN, C_OUT)    bf16  conv weight, one (C_IN, C_OUT) per tap
    bc_ref:    (1, C_OUT)          f32   conv bias
    wf_ref:    (K_FC_BLK, NC_PAD)  bf16  FC weight block for this grid step
    bf_ref:    (1, NC_PAD)         f32   FC bias (classes padded)
    out_ref:   (N, NC_PAD)         f32   padded logits (written at last step)
    pooled_sc: (NUM_P_BLK, N, K_FC_BLK) bf16  pooled features, FC-K layout
    acc_sc:    (N, NC_PAD)         f32   logits accumulator
    """
    pb = pl.program_id(0)

    @pl.when(pb == 0)
    def _conv_relu_pool():
        x = xpad_ref[...]                                     # (N, H+2, W+2, C_IN)
        # 3x3 conv as 9 shifted K=C_IN accumulating matmuls, M = N*H*W.
        acc = None
        for dy in range(3):
            for dx in range(3):
                tap = x[:, dy:dy + H, dx:dx + W, :].reshape(N * H * W, C_IN)
                tap = tap.astype(jnp.bfloat16)
                part = jnp.dot(tap, wc_ref[dy * 3 + dx],
                               preferred_element_type=jnp.float32)
                acc = part if acc is None else acc + part
        acc = jnp.maximum(acc + bc_ref[...], 0.0)             # (N*H*W, C_OUT) f32

        # Separable 2x2 sum-pool (0.25 scale folded into wf at prep time).
        r1 = acc.reshape(N * H * W2, 2, C_OUT)
        s1 = r1[:, 0, :] + r1[:, 1, :]                        # sum adjacent w pairs
        r2 = s1.reshape(N * H2, 2, W2, C_OUT)
        s2 = r2[:, 0, :, :] + r2[:, 1, :, :]                  # sum adjacent h pairs
        pooled = s2.reshape(N, P, C_OUT).astype(jnp.bfloat16)

        # One-time relayout into FC contraction order (k = p*C_OUT + c) using
        # lane-aligned 128-wide slabs, so every FC step below is a single
        # long-K MXU contraction instead of 32 M=1 matmuls + cross-vreg sum.
        for p in range(P):
            blk, off = divmod(p, P_BLK)
            pooled_sc[blk, :, off * C_OUT:(off + 1) * C_OUT] = pooled[:, p, :]

        acc_sc[...] = jnp.zeros_like(acc_sc)

    # FC partial product for this streamed wf block (bf16 MXU, f32 accumulate).
    acc_sc[...] += jnp.dot(pooled_sc[pb], wf_ref[...],
                           preferred_element_type=jnp.float32)

    @pl.when(pb == pl.num_programs(0) - 1)
    def _finalize():
        out_ref[...] = (acc_sc[...] + bf_ref[...]).astype(out_ref.dtype)


# ------------------------- one-time parameter prep ---------------------------
def prepare_extra_head_params(w_conv_oihw, b_conv, w_fc, b_fc):
    """Hoisted layout work on the frozen head weights (run once, not per forward).

    w_conv_oihw: (C_OUT, C_IN, 3, 3)    PyTorch conv weight
    b_conv:      (C_OUT,)
    w_fc:        (NUM_CLASSES, FC_IN)   PyTorch linear weight (NCHW flatten order)
    b_fc:        (NUM_CLASSES,)
    """
    # OIHW -> (tap, C_IN, C_OUT), bf16 for the MXU.
    wc = jnp.transpose(w_conv_oihw, (2, 3, 1, 0)).reshape(9, C_IN, C_OUT)
    wc = wc.astype(jnp.bfloat16)
    bc = b_conv.reshape(1, C_OUT).astype(jnp.float32)
    # PyTorch flatten index is c*H2*W2 + h2*W2 + w2 (NCHW); re-index to a
    # single contiguous (p*C_OUT + c, class) matmul matrix, fold the 0.25
    # average-pool scale, zero-pad classes to 128 lanes, store bf16.
    wf = (w_fc.reshape(NUM_CLASSES, C_OUT, H2, W2)
              .transpose(2, 3, 1, 0)                  # (h2, w2, c, cls)
              .reshape(P * C_OUT, NUM_CLASSES)) * 0.25
    wf = jnp.pad(wf, ((0, 0), (0, NC_PAD - NUM_CLASSES))).astype(jnp.bfloat16)
    bf = jnp.pad(b_fc, (0, NC_PAD - NUM_CLASSES)).reshape(1, NC_PAD)
    bf = bf.astype(jnp.float32)
    return wc, bc, wf, bf


def _head_cost_estimate():
    conv_flops = 2 * N * H * W * (9 * C_IN) * C_OUT
    fc_flops = 2 * N * (P * C_OUT) * NC_PAD
    bytes_accessed = (N * (H + 2) * (W + 2) * C_IN * 4      # padded activation
                      + 9 * C_IN * C_OUT * 2                # wc bf16
                      + C_OUT * 4                           # bc
                      + P * C_OUT * NC_PAD * 2              # wf bf16 (dominant)
                      + NC_PAD * 4                          # bf
                      + N * NC_PAD * 4)                     # logits out
    return pl.CostEstimate(flops=conv_flops + fc_flops, transcendentals=0,
                           bytes_accessed=bytes_accessed)


# ------------------------------- forward -------------------------------------
@jax.jit
def frozen_sb_cnn_esc50_forward(pooled_output_nchw, final_output, prepared):
    """Mirrors Frozen_SB_CNN_esc50.forward.

    pooled_output_nchw: (N, C_IN, H, W)  -- first output of the frozen backbone
    final_output:       (N, NUM_CLASSES) -- last output of the frozen backbone
    prepared:           output of prepare_extra_head_params (frozen head weights)
    returns (extra_fc_output, final_output)
    """
    wc, bc, wf, bf = prepared
    # Tiny wrapper-side transforms: NCHW->NHWC + 3x3 halo pad (im2col itself is
    # done in-kernel, so the activation is never duplicated 9x in HBM).
    x_nhwc = jnp.transpose(pooled_output_nchw, (0, 2, 3, 1))
    xpad = jnp.pad(x_nhwc, ((0, 0), (1, 1), (1, 1), (0, 0)))

    logits_pad = pl.pallas_call(
        _fused_head_kernel,
        out_shape=jax.ShapeDtypeStruct((N, NC_PAD), jnp.float32),
        grid=(NUM_P_BLK,),
        in_specs=[
            pl.BlockSpec((N, H + 2, W + 2, C_IN), lambda pb: (0, 0, 0, 0)),
            pl.BlockSpec((9, C_IN, C_OUT), lambda pb: (0, 0, 0)),
            pl.BlockSpec((1, C_OUT), lambda pb: (0, 0)),
            pl.BlockSpec((K_FC_BLK, NC_PAD), lambda pb: (pb, 0)),   # streamed
            pl.BlockSpec((1, NC_PAD), lambda pb: (0, 0)),
        ],
        out_specs=pl.BlockSpec((N, NC_PAD), lambda pb: (0, 0)),
        scratch_shapes=[
            pltpu.VMEM((NUM_P_BLK, N, K_FC_BLK), jnp.bfloat16),  # pooled, FC-K layout
            pltpu.VMEM((N, NC_PAD), jnp.float32),                # logits accumulator
        ],
        compiler_params=pltpu.CompilerParams(
            # Single reduction axis over FC-weight blocks; no batch-parallel
            # megacore axis so v7x's two cores never duplicate the wf stream.
            dimension_semantics=("arbitrary",),
            vmem_limit_bytes=32 * 1024 * 1024),
        cost_estimate=_head_cost_estimate(),
    )(xpad, wc, bc, wf, bf)

    extra_fc_output = logits_pad[:, :NUM_CLASSES]
    return extra_fc_output, final_output


# --------------------------- plain-JAX reference -----------------------------
def reference_forward(pooled_output_nchw, final_output, params):
    w_conv, b_conv, w_fc, b_fc = params
    y = jax.lax.conv_general_dilated(
        pooled_output_nchw, w_conv, window_strides=(1, 1),
        padding=((1, 1), (1, 1)),
        dimension_numbers=("NCHW", "OIHW", "NCHW"),
        precision=jax.lax.Precision.HIGHEST)
    y = y + b_conv[None, :, None, None]
    y = jnp.maximum(y, 0.0)
    y = jax.lax.reduce_window(y, 0.0, jax.lax.add,
                              (1, 1, 2, 2), (1, 1, 2, 2), "VALID") * 0.25
    flat = y.reshape(y.shape[0], -1)       # torch.flatten(x, 1) on NCHW
    logits = jnp.dot(flat, w_fc.T, precision=jax.lax.Precision.HIGHEST) + b_fc
    return logits, final_output


# ----------------------------------- main ------------------------------------
if __name__ == "__main__":
    key = jax.random.PRNGKey(0)
    k1, k2, k3, k4, k5, k6 = jax.random.split(key, 6)

    # Inputs coming out of the (external) frozen backbone.
    pooled_output = jax.random.normal(k1, (N, C_IN, H, W), jnp.float32)
    final_output = jax.random.normal(k2, (N, NUM_CLASSES), jnp.float32)

    # Synthetic parameters in PyTorch layouts (OIHW conv weight,
    # (out_features, in_features) linear weight).
    w_conv = jax.random.normal(k3, (C_OUT, C_IN, 3, 3), jnp.float32) * 0.05
    b_conv = jax.random.normal(k4, (C_OUT,), jnp.float32) * 0.05
    w_fc = jax.random.normal(k5, (NUM_CLASSES, FC_IN), jnp.float32) * 0.02
    b_fc = jax.random.normal(k6, (NUM_CLASSES,), jnp.float32) * 0.02
    params = (w_conv, b_conv, w_fc, b_fc)

    # One-time frozen-weight layout prep (hoisted out of the forward path).
    prepared = jax.tree_util.tree_map(jnp.asarray,
                                      prepare_extra_head_params(*params))

    logits, fin = frozen_sb_cnn_esc50_forward(pooled_output, final_output, prepared)
    jax.block_until_ready((logits, fin))

    ref_logits, ref_fin = reference_forward(pooled_output, final_output, params)
    assert logits.shape == (N, NUM_CLASSES)
    assert fin.shape == (N, NUM_CLASSES)
    max_err = float(jnp.max(jnp.abs(logits - ref_logits)))
    # Tolerance loosened vs the pure-f32 reference because weights/activations
    # are fed to the MXU in bf16 (per perf review); observed error is O(1e-2).
    assert jnp.allclose(logits, ref_logits, rtol=3e-2, atol=3e-2), max_err
    assert jnp.array_equal(fin, ref_fin)

    print("KERNEL_OK")
</pallas_src>

<mosaic_0001>
module attributes {stable_mosaic.version = 11 : i64} {
  func.func @_fused_head_kernel(%arg0: i32, %arg1: memref<2x18x10x48xf32, #tpu.memory_space<vmem>>, %arg2: memref<9x48x128xbf16, #tpu.memory_space<vmem>>, %arg3: memref<1x128xf32, #tpu.memory_space<vmem>>, %arg4: memref<1024x128xbf16, #tpu.memory_space<vmem>>, %arg5: memref<1x128xf32, #tpu.memory_space<vmem>>, %arg6: memref<2x128xf32, #tpu.memory_space<vmem>>, %arg7: memref<4x2x1024xbf16, #tpu.memory_space<vmem>>, %arg8: memref<2x128xf32, #tpu.memory_space<vmem>>) attributes {dimension_semantics = [#tpu.dimension_semantics<arbitrary>], iteration_bounds = array<i64: 4>, scalar_prefetch = 0 : i64, scratch_operands = 2 : i64, tpu.core_type = #tpu.core_type<tc>, window_params = [{pipeline_mode = #tpu.pipeline_mode<synchronous>, transform_indices = @transform_0, window_bounds = array<i64: 2, 18, 10, 48>}, {pipeline_mode = #tpu.pipeline_mode<synchronous>, transform_indices = @transform_1, window_bounds = array<i64: 9, 48, 128>}, {pipeline_mode = #tpu.pipeline_mode<synchronous>, transform_indices = @transform_2, window_bounds = array<i64: 1, 128>}, {transform_indices = @transform_3, window_bounds = array<i64: 1024, 128>}, {pipeline_mode = #tpu.pipeline_mode<synchronous>, transform_indices = @transform_4, window_bounds = array<i64: 1, 128>}, {pipeline_mode = #tpu.pipeline_mode<synchronous>, transform_indices = @transform_5, window_bounds = array<i64: 2, 128>}]} {
    %c0_i32 = arith.constant 0 : i32
    %0 = arith.cmpi eq, %arg0, %c0_i32 : i32
    %1 = arith.extui %0 : i1 to i32
    %c0_i32_0 = arith.constant 0 : i32
    %2 = arith.cmpi ne, %1, %c0_i32_0 : i32
    scf.if %2 {
      %c0_9 = arith.constant 0 : index
      %c0_10 = arith.constant 0 : index
      %c0_11 = arith.constant 0 : index
      %c0_12 = arith.constant 0 : index
      %14 = vector.load %arg1[%c0_9, %c0_10, %c0_11, %c0_12] : memref<2x18x10x48xf32, #tpu.memory_space<vmem>>, vector<2x18x10x48xf32>
      %15 = vector.extract_strided_slice %14 {offsets = [0, 0, 0, 0], sizes = [2, 16, 8, 48], strides = [1, 1, 1, 1]} : vector<2x18x10x48xf32> to vector<2x16x8x48xf32>
      %16 = vector.shape_cast %15 : vector<2x16x8x48xf32> to vector<256x48xf32>
      %17 = arith.truncf %16 : vector<256x48xf32> to vector<256x48xbf16>
      %c0_13 = arith.constant 0 : index
      %c0_14 = arith.constant 0 : index
      %c0_15 = arith.constant 0 : index
      %18 = vector.load %arg2[%c0_13, %c0_14, %c0_15] : memref<9x48x128xbf16, #tpu.memory_space<vmem>>, vector<1x48x128xbf16>
      %19 = vector.shape_cast %18 : vector<1x48x128xbf16> to vector<48x128xbf16>
      %cst_16 = arith.constant dense<0.000000e+00> : vector<256x128xf32>
      %20 = tpu.matmul %17, %19, %cst_16 {dimension_numbers = #tpu.dot_dimension_numbers<[1], [0], [0], [1], [0, 0, 1, 1], [], []>} : vector<256x48xbf16>, vector<48x128xbf16>, vector<256x128xf32> -> vector<256x128xf32>
      %21 = vector.extract_strided_slice %14 {offsets = [0, 0, 1, 0], sizes = [2, 16, 8, 48], strides = [1, 1, 1, 1]} : vector<2x18x10x48xf32> to vector<2x16x8x48xf32>
      %22 = vector.shape_cast %21 : vector<2x16x8x48xf32> to vector<256x48xf32>
      %23 = arith.truncf %22 : vector<256x48xf32> to vector<256x48xbf16>
      %c1 = arith.constant 1 : index
      %c0_17 = arith.constant 0 : index
      %c0_18 = arith.constant 0 : index
      %24 = vector.load %arg2[%c1, %c0_17, %c0_18] : memref<9x48x128xbf16, #tpu.memory_space<vmem>>, vector<1x48x128xbf16>
      %25 = vector.shape_cast %24 : vector<1x48x128xbf16> to vector<48x128xbf16>
      %cst_19 = arith.constant dense<0.000000e+00> : vector<256x128xf32>
      %26 = tpu.matmul %23, %25, %cst_19 {dimension_numbers = #tpu.dot_dimension_numbers<[1], [0], [0], [1], [0, 0, 1, 1], [], []>} : vector<256x48xbf16>, vector<48x128xbf16>, vector<256x128xf32> -> vector<256x128xf32>
      %27 = arith.addf %20, %26 : vector<256x128xf32>
      %28 = vector.extract_strided_slice %14 {offsets = [0, 0, 2, 0], sizes = [2, 16, 8, 48], strides = [1, 1, 1, 1]} : vector<2x18x10x48xf32> to vector<2x16x8x48xf32>
      %29 = vector.shape_cast %28 : vector<2x16x8x48xf32> to vector<256x48xf32>
      %30 = arith.truncf %29 : vector<256x48xf32> to vector<256x48xbf16>
      %c2 = arith.constant 2 : index
      %c0_20 = arith.constant 0 : index
      %c0_21 = arith.constant 0 : index
      %31 = vector.load %arg2[%c2, %c0_20, %c0_21] : memref<9x48x128xbf16, #tpu.memory_space<vmem>>, vector<1x48x128xbf16>
      %32 = vector.shape_cast %31 : vector<1x48x128xbf16> to vector<48x128xbf16>
      %cst_22 = arith.constant dense<0.000000e+00> : vector<256x128xf32>
      %33 = tpu.matmul %30, %32, %cst_22 {dimension_numbers = #tpu.dot_dimension_numbers<[1], [0], [0], [1], [0, 0, 1, 1], [], []>} : vector<256x48xbf16>, vector<48x128xbf16>, vector<256x128xf32> -> vector<256x128xf32>
      %34 = arith.addf %27, %33 : vector<256x128xf32>
      %35 = vector.extract_strided_slice %14 {offsets = [0, 1, 0, 0], sizes = [2, 16, 8, 48], strides = [1, 1, 1, 1]} : vector<2x18x10x48xf32> to vector<2x16x8x48xf32>
      %36 = vector.shape_cast %35 : vector<2x16x8x48xf32> to vector<256x48xf32>
      %37 = arith.truncf %36 : vector<256x48xf32> to vector<256x48xbf16>
      %c3 = arith.constant 3 : index
      %c0_23 = arith.constant 0 : index
      %c0_24 = arith.constant 0 : index
      %38 = vector.load %arg2[%c3, %c0_23, %c0_24] : memref<9x48x128xbf16, #tpu.memory_space<vmem>>, vector<1x48x128xbf16>
      %39 = vector.shape_cast %38 : vector<1x48x128xbf16> to vector<48x128xbf16>
      %cst_25 = arith.constant dense<0.000000e+00> : vector<256x128xf32>
      %40 = tpu.matmul %37, %39, %cst_25 {dimension_numbers = #tpu.dot_dimension_numbers<[1], [0], [0], [1], [0, 0, 1, 1], [], []>} : vector<256x48xbf16>, vector<48x128xbf16>, vector<256x128xf32> -> vector<256x128xf32>
      %41 = arith.addf %34, %40 : vector<256x128xf32>
      %42 = vector.extract_strided_slice %14 {offsets = [0, 1, 1, 0], sizes = [2, 16, 8, 48], strides = [1, 1, 1, 1]} : vector<2x18x10x48xf32> to vector<2x16x8x48xf32>
      %43 = vector.shape_cast %42 : vector<2x16x8x48xf32> to vector<256x48xf32>
      %44 = arith.truncf %43 : vector<256x48xf32> to vector<256x48xbf16>
      %c4 = arith.constant 4 : index
      %c0_26 = arith.constant 0 : index
      %c0_27 = arith.constant 0 : index
      %45 = vector.load %arg2[%c4, %c0_26, %c0_27] : memref<9x48x128xbf16, #tpu.memory_space<vmem>>, vector<1x48x128xbf16>
      %46 = vector.shape_cast %45 : vector<1x48x128xbf16> to vector<48x128xbf16>
      %cst_28 = arith.constant dense<0.000000e+00> : vector<256x128xf32>
      %47 = tpu.matmul %44, %46, %cst_28 {dimension_numbers = #tpu.dot_dimension_numbers<[1], [0], [0], [1], [0, 0, 1, 1], [], []>} : vector<256x48xbf16>, vector<48x128xbf16>, vector<256x128xf32> -> vector<256x128xf32>
      %48 = arith.addf %41, %47 : vector<256x128xf32>
      %49 = vector.extract_strided_slice %14 {offsets = [0, 1, 2, 0], sizes = [2, 16, 8, 48], strides = [1, 1, 1, 1]} : vector<2x18x10x48xf32> to vector<2x16x8x48xf32>
      %50 = vector.shape_cast %49 : vector<2x16x8x48xf32> to vector<256x48xf32>
      %51 = arith.truncf %50 : vector<256x48xf32> to vector<256x48xbf16>
      %c5 = arith.constant 5 : index
      %c0_29 = arith.constant 0 : index
      %c0_30 = arith.constant 0 : index
      %52 = vector.load %arg2[%c5, %c0_29, %c0_30] : memref<9x48x128xbf16, #tpu.memory_space<vmem>>, vector<1x48x128xbf16>
      %53 = vector.shape_cast %52 : vector<1x48x128xbf16> to vector<48x128xbf16>
      %cst_31 = arith.constant dense<0.000000e+00> : vector<256x128xf32>
      %54 = tpu.matmul %51, %53, %cst_31 {dimension_numbers = #tpu.dot_dimension_numbers<[1], [0], [0], [1], [0, 0, 1, 1], [], []>} : vector<256x48xbf16>, vector<48x128xbf16>, vector<256x128xf32> -> vector<256x128xf32>
      %55 = arith.addf %48, %54 : vector<256x128xf32>
      %56 = vector.extract_strided_slice %14 {offsets = [0, 2, 0, 0], sizes = [2, 16, 8, 48], strides = [1, 1, 1, 1]} : vector<2x18x10x48xf32> to vector<2x16x8x48xf32>
      %57 = vector.shape_cast %56 : vector<2x16x8x48xf32> to vector<256x48xf32>
      %58 = arith.truncf %57 : vector<256x48xf32> to vector<256x48xbf16>
      %c6 = arith.constant 6 : index
      %c0_32 = arith.constant 0 : index
      %c0_33 = arith.constant 0 : index
      %59 = vector.load %arg2[%c6, %c0_32, %c0_33] : memref<9x48x128xbf16, #tpu.memory_space<vmem>>, vector<1x48x128xbf16>
      %60 = vector.shape_cast %59 : vector<1x48x128xbf16> to vector<48x128xbf16>
      %cst_34 = arith.constant dense<0.000000e+00> : vector<256x128xf32>
      %61 = tpu.matmul %58, %60, %cst_34 {dimension_numbers = #tpu.dot_dimension_numbers<[1], [0], [0], [1], [0, 0, 1, 1], [], []>} : vector<256x48xbf16>, vector<48x128xbf16>, vector<256x128xf32> -> vector<256x128xf32>
      %62 = arith.addf %55, %61 : vector<256x128xf32>
      %63 = vector.extract_strided_slice %14 {offsets = [0, 2, 1, 0], sizes = [2, 16, 8, 48], strides = [1, 1, 1, 1]} : vector<2x18x10x48xf32> to vector<2x16x8x48xf32>
      %64 = vector.shape_cast %63 : vector<2x16x8x48xf32> to vector<256x48xf32>
      %65 = arith.truncf %64 : vector<256x48xf32> to vector<256x48xbf16>
      %c7 = arith.constant 7 : index
      %c0_35 = arith.constant 0 : index
      %c0_36 = arith.constant 0 : index
      %66 = vector.load %arg2[%c7, %c0_35, %c0_36] : memref<9x48x128xbf16, #tpu.memory_space<vmem>>, vector<1x48x128xbf16>
      %67 = vector.shape_cast %66 : vector<1x48x128xbf16> to vector<48x128xbf16>
      %cst_37 = arith.constant dense<0.000000e+00> : vector<256x128xf32>
      %68 = tpu.matmul %65, %67, %cst_37 {dimension_numbers = #tpu.dot_dimension_numbers<[1], [0], [0], [1], [0, 0, 1, 1], [], []>} : vector<256x48xbf16>, vector<48x128xbf16>, vector<256x128xf32> -> vector<256x128xf32>
      %69 = arith.addf %62, %68 : vector<256x128xf32>
      %70 = vector.extract_strided_slice %14 {offsets = [0, 2, 2, 0], sizes = [2, 16, 8, 48], strides = [1, 1, 1, 1]} : vector<2x18x10x48xf32> to vector<2x16x8x48xf32>
      %71 = vector.shape_cast %70 : vector<2x16x8x48xf32> to vector<256x48xf32>
      %72 = arith.truncf %71 : vector<256x48xf32> to vector<256x48xbf16>
      %c8 = arith.constant 8 : index
      %c0_38 = arith.constant 0 : index
      %c0_39 = arith.constant 0 : index
      %73 = vector.load %arg2[%c8, %c0_38, %c0_39] : memref<9x48x128xbf16, #tpu.memory_space<vmem>>, vector<1x48x128xbf16>
      %74 = vector.shape_cast %73 : vector<1x48x128xbf16> to vector<48x128xbf16>
      %cst_40 = arith.constant dense<0.000000e+00> : vector<256x128xf32>
      %75 = tpu.matmul %72, %74, %cst_40 {dimension_numbers = #tpu.dot_dimension_numbers<[1], [0], [0], [1], [0, 0, 1, 1], [], []>} : vector<256x48xbf16>, vector<48x128xbf16>, vector<256x128xf32> -> vector<256x128xf32>
      %76 = arith.addf %69, %75 : vector<256x128xf32>
      %c0_41 = arith.constant 0 : index
      %c0_42 = arith.constant 0 : index
      %77 = vector.load %arg3[%c0_41, %c0_42] : memref<1x128xf32, #tpu.memory_space<vmem>>, vector<1x128xf32>
      %78 = vector.broadcast %77 : vector<1x128xf32> to vector<256x128xf32>
      %79 = arith.addf %76, %78 : vector<256x128xf32>
      %cst_43 = arith.constant 0.000000e+00 : f32
      %80 = vector.broadcast %cst_43 : f32 to vector<256x128xf32>
      %81 = arith.maximumf %79, %80 : vector<256x128xf32>
      %82 = vector.shape_cast %81 : vector<256x128xf32> to vector<128x2x128xf32>
      %83 = vector.extract_strided_slice %82 {offsets = [0, 0, 0], sizes = [128, 1, 128], strides = [1, 1, 1]} : vector<128x2x128xf32> to vector<128x1x128xf32>
      %84 = vector.shape_cast %83 : vector<128x1x128xf32> to vector<128x128xf32>
      %85 = vector.extract_strided_slice %82 {offsets = [0, 1, 0], sizes = [128, 1, 128], strides = [1, 1, 1]} : vector<128x2x128xf32> to vector<128x1x128xf32>
      %86 = vector.shape_cast %85 : vector<128x1x128xf32> to vector<128x128xf32>
      %87 = arith.addf %84, %86 : vector<128x128xf32>
      %88 = vector.shape_cast %87 : vector<128x128xf32> to vector<16x2x4x128xf32>
      %89 = vector.extract_strided_slice %88 {offsets = [0, 0, 0, 0], sizes = [16, 1, 4, 128], strides = [1, 1, 1, 1]} : vector<16x2x4x128xf32> to vector<16x1x4x128xf32>
      %90 = vector.shape_cast %89 : vector<16x1x4x128xf32> to vector<16x4x128xf32>
      %91 = vector.extract_strided_slice %88 {offsets = [0, 1, 0, 0], sizes = [16, 1, 4, 128], strides = [1, 1, 1, 1]} : vector<16x2x4x128xf32> to vector<16x1x4x128xf32>
      %92 = vector.shape_cast %91 : vector<16x1x4x128xf32> to vector<16x4x128xf32>
      %93 = arith.addf %90, %92 : vector<16x4x128xf32>
      %94 = vector.shape_cast %93 : vector<16x4x128xf32> to vector<2x32x128xf32>
      %95 = arith.truncf %94 : vector<2x32x128xf32> to vector<2x32x128xbf16>
      %96 = vector.extract_strided_slice %95 {offsets = [0, 0, 0], sizes = [2, 1, 128], strides = [1, 1, 1]} : vector<2x32x128xbf16> to vector<2x1x128xbf16>
      %97 = vector.shape_cast %96 : vector<2x1x128xbf16> to vector<2x128xbf16>
      %c0_44 = arith.constant 0 : index
      %c0_45 = arith.constant 0 : index
      %c0_46 = arith.constant 0 : index
      %98 = vector.load %arg7[%c0_44, %c0_45, %c0_46] : memref<4x2x1024xbf16, #tpu.memory_space<vmem>>, vector<1x2x128xbf16>
      %99 = vector.shape_cast %98 : vector<1x2x128xbf16> to vector<2x128xbf16>
      %100 = vector.shape_cast %97 : vector<2x128xbf16> to vector<1x2x128xbf16>
      tpu.vector_store %arg7[%c0_44, %c0_45, %c0_46], %100 {strides = array<i32>} : memref<4x2x1024xbf16, #tpu.memory_space<vmem>>, vector<1x2x128xbf16>,
      %101 = vector.extract_strided_slice %95 {offsets = [0, 1, 0], sizes = [2, 1, 128], strides = [1, 1, 1]} : vector<2x32x128xbf16> to vector<2x1x128xbf16>
      %102 = vector.shape_cast %101 : vector<2x1x128xbf16> to vector<2x128xbf16>
      %c0_47 = arith.constant 0 : index
      %c0_48 = arith.constant 0 : index
      %c128 = arith.constant 128 : index
      %103 = vector.load %arg7[%c0_47, %c0_48, %c128] : memref<4x2x1024xbf16, #tpu.memory_space<vmem>>, vector<1x2x128xbf16>
      %104 = vector.shape_cast %103 : vector<1x2x128xbf16> to vector<2x128xbf16>
      %105 = vector.shape_cast %102 : vector<2x128xbf16> to vector<1x2x128xbf16>
      tpu.vector_store %arg7[%c0_47, %c0_48, %c128], %105 {strides = array<i32>} : memref<4x2x1024xbf16, #tpu.memory_space<vmem>>, vector<1x2x128xbf16>,
      %106 = vector.extract_strided_slice %95 {offsets = [0, 2, 0], sizes = [2, 1, 128], strides = [1, 1, 1]} : vector<2x32x128xbf16> to vector<2x1x128xbf16>
      %107 = vector.shape_cast %106 : vector<2x1x128xbf16> to vector<2x128xbf16>
      %c0_49 = arith.constant 0 : index
      %c0_50 = arith.constant 0 : index
      %c256 = arith.constant 256 : index
      %108 = vector.load %arg7[%c0_49, %c0_50, %c256] : memref<4x2x1024xbf16, #tpu.memory_space<vmem>>, vector<1x2x128xbf16>
      %109 = vector.shape_cast %108 : vector<1x2x128xbf16> to vector<2x128xbf16>
      %110 = vector.shape_cast %107 : vector<2x128xbf16> to vector<1x2x128xbf16>
      tpu.vector_store %arg7[%c0_49, %c0_50, %c256], %110 {strides = array<i32>} : memref<4x2x1024xbf16, #tpu.memory_space<vmem>>, vector<1x2x128xbf16>,
      %111 = vector.extract_strided_slice %95 {offsets = [0, 3, 0], sizes = [2, 1, 128], strides = [1, 1, 1]} : vector<2x32x128xbf16> to vector<2x1x128xbf16>
      %112 = vector.shape_cast %111 : vector<2x1x128xbf16> to vector<2x128xbf16>
      %c0_51 = arith.constant 0 : index
      %c0_52 = arith.constant 0 : index
      %c384 = arith.constant 384 : index
      %113 = vector.load %arg7[%c0_51, %c0_52, %c384] : memref<4x2x1024xbf16, #tpu.memory_space<vmem>>, vector<1x2x128xbf16>
      %114 = vector.shape_cast %113 : vector<1x2x128xbf16> to vector<2x128xbf16>
      %115 = vector.shape_cast %112 : vector<2x128xbf16> to vector<1x2x128xbf16>
      tpu.vector_store %arg7[%c0_51, %c0_52, %c384], %115 {strides = array<i32>} : memref<4x2x1024xbf16, #tpu.memory_space<vmem>>, vector<1x2x128xbf16>,
      %116 = vector.extract_strided_slice %95 {offsets = [0, 4, 0], sizes = [2, 1, 128], strides = [1, 1, 1]} : vector<2x32x128xbf16> to vector<2x1x128xbf16>
      %117 = vector.shape_cast %116 : vector<2x1x128xbf16> to vector<2x128xbf16>
      %c0_53 = arith.constant 0 : index
      %c0_54 = arith.constant 0 : index
      %c512 = arith.constant 512 : index
      %118 = vector.load %arg7[%c0_53, %c0_54, %c512] : memref<4x2x1024xbf16, #tpu.memory_space<vmem>>, vector<1x2x128xbf16>
      %119 = vector.shape_cast %118 : vector<1x2x128xbf16> to vector<2x128xbf16>
      %120 = vector.shape_cast %117 : vector<2x128xbf16> to vector<1x2x128xbf16>
      tpu.vector_store %arg7[%c0_53, %c0_54, %c512], %120 {strides = array<i32>} : memref<4x2x1024xbf16, #tpu.memory_space<vmem>>, vector<1x2x128xbf16>,
      %121 = vector.extract_strided_slice %95 {offsets = [0, 5, 0], sizes = [2, 1, 128], strides = [1, 1, 1]} : vector<2x32x128xbf16> to vector<2x1x128xbf16>
      %122 = vector.shape_cast %121 : vector<2x1x128xbf16> to vector<2x128xbf16>
      %c0_55 = arith.constant 0 : index
      %c0_56 = arith.constant 0 : index
      %c640 = arith.constant 640 : index
      %123 = vector.load %arg7[%c0_55, %c0_56, %c640] : memref<4x2x1024xbf16, #tpu.memory_space<vmem>>, vector<1x2x128xbf16>
      %124 = vector.shape_cast %123 : vector<1x2x128xbf16> to vector<2x128xbf16>
      %125 = vector.shape_cast %122 : vector<2x128xbf16> to vector<1x2x128xbf16>
      tpu.vector_store %arg7[%c0_55, %c0_56, %c640], %125 {strides = array<i32>} : memref<4x2x1024xbf16, #tpu.memory_space<vmem>>, vector<1x2x128xbf16>,
      %126 = vector.extract_strided_slice %95 {offsets = [0, 6, 0], sizes = [2, 1, 128], strides = [1, 1, 1]} : vector<2x32x128xbf16> to vector<2x1x128xbf16>
      %127 = vector.shape_cast %126 : vector<2x1x128xbf16> to vector<2x128xbf16>
      %c0_57 = arith.constant 0 : index
      %c0_58 = arith.constant 0 : index
      %c768 = arith.constant 768 : index
      %128 = vector.load %arg7[%c0_57, %c0_58, %c768] : memref<4x2x1024xbf16, #tpu.memory_space<vmem>>, vector<1x2x128xbf16>
      %129 = vector.shape_cast %128 : vector<1x2x128xbf16> to vector<2x128xbf16>
      %130 = vector.shape_cast %127 : vector<2x128xbf16> to vector<1x2x128xbf16>
      tpu.vector_store %arg7[%c0_57, %c0_58, %c768], %130 {strides = array<i32>} : memref<4x2x1024xbf16, #tpu.memory_space<vmem>>, vector<1x2x128xbf16>,
      %131 = vector.extract_strided_slice %95 {offsets = [0, 7, 0], sizes = [2, 1, 128], strides = [1, 1, 1]} : vector<2x32x128xbf16> to vector<2x1x128xbf16>
      %132 = vector.shape_cast %131 : vector<2x1x128xbf16> to vector<2x128xbf16>
      %c0_59 = arith.constant 0 : index
      %c0_60 = arith.constant 0 : index
      %c896 = arith.constant 896 : index
      %133 = vector.load %arg7[%c0_59, %c0_60, %c896] : memref<4x2x1024xbf16, #tpu.memory_space<vmem>>, vector<1x2x128xbf16>
      %134 = vector.shape_cast %133 : vector<1x2x128xbf16> to vector<2x128xbf16>
      %135 = vector.shape_cast %132 : vector<2x128xbf16> to vector<1x2x128xbf16>
      tpu.vector_store %arg7[%c0_59, %c0_60, %c896], %135 {strides = array<i32>} : memref<4x2x1024xbf16, #tpu.memory_space<vmem>>, vector<1x2x128xbf16>,
      %136 = vector.extract_strided_slice %95 {offsets = [0, 8, 0], sizes = [2, 1, 128], strides = [1, 1, 1]} : vector<2x32x128xbf16> to vector<2x1x128xbf16>
      %137 = vector.shape_cast %136 : vector<2x1x128xbf16> to vector<2x128xbf16>
      %c1_61 = arith.constant 1 : index
      %c0_62 = arith.constant 0 : index
      %c0_63 = arith.constant 0 : index
      %138 = vector.load %arg7[%c1_61, %c0_62, %c0_63] : memref<4x2x1024xbf16, #tpu.memory_space<vmem>>, vector<1x2x128xbf16>
      %139 = vector.shape_cast %138 : vector<1x2x128xbf16> to vector<2x128xbf16>
      %140 = vector.shape_cast %137 : vector<2x128xbf16> to vector<1x2x128xbf16>
      tpu.vector_store %arg7[%c1_61, %c0_62, %c0_63], %140 {strides = array<i32>} : memref<4x2x1024xbf16, #tpu.memory_space<vmem>>, vector<1x2x128xbf16>,
      %141 = vector.extract_strided_slice %95 {offsets = [0, 9, 0], sizes = [2, 1, 128], strides = [1, 1, 1]} : vector<2x32x128xbf16> to vector<2x1x128xbf16>
      %142 = vector.shape_cast %141 : vector<2x1x128xbf16> to vector<2x128xbf16>
      %c1_64 = arith.constant 1 : index
      %c0_65 = arith.constant 0 : index
      %c128_66 = arith.constant 128 : index
      %143 = vector.load %arg7[%c1_64, %c0_65, %c128_66] : memref<4x2x1024xbf16, #tpu.memory_space<vmem>>, vector<1x2x128xbf16>
      %144 = vector.shape_cast %143 : vector<1x2x128xbf16> to vector<2x128xbf16>
      %145 = vector.shape_cast %142 : vector<2x128xbf16> to vector<1x2x128xbf16>
      tpu.vector_store %arg7[%c1_64, %c0_65, %c128_66], %145 {strides = array<i32>} : memref<4x2x1024xbf16, #tpu.memory_space<vmem>>, vector<1x2x128xbf16>,
      %146 = vector.extract_strided_slice %95 {offsets = [0, 10, 0], sizes = [2, 1, 128], strides = [1, 1, 1]} : vector<2x32x128xbf16> to vector<2x1x128xbf16>
      %147 = vector.shape_cast %146 : vector<2x1x128xbf16> to vector<2x128xbf16>
      %c1_67 = arith.constant 1 : index
      %c0_68 = arith.constant 0 : index
      %c256_69 = arith.constant 256 : index
      %148 = vector.load %arg7[%c1_67, %c0_68, %c256_69] : memref<4x2x1024xbf16, #tpu.memory_space<vmem>>, vector<1x2x128xbf16>
      %149 = vector.shape_cast %148 : vector<1x2x128xbf16> to vector<2x128xbf16>
      %150 = vector.shape_cast %147 : vector<2x128xbf16> to vector<1x2x128xbf16>
      tpu.vector_store %arg7[%c1_67, %c0_68, %c256_69], %150 {strides = array<i32>} : memref<4x2x1024xbf16, #tpu.memory_space<vmem>>, vector<1x2x128xbf16>,
      %151 = vector.extract_strided_slice %95 {offsets = [0, 11, 0], sizes = [2, 1, 128], strides = [1, 1, 1]} : vector<2x32x128xbf16> to vector<2x1x128xbf16>
      %152 = vector.shape_cast %151 : vector<2x1x128xbf16> to vector<2x128xbf16>
      %c1_70 = arith.constant 1 : index
      %c0_71 = arith.constant 0 : index
      %c384_72 = arith.constant 384 : index
      %153 = vector.load %arg7[%c1_70, %c0_71, %c384_72] : memref<4x2x1024xbf16, #tpu.memory_space<vmem>>, vector<1x2x128xbf16>
      %154 = vector.shape_cast %153 : vector<1x2x128xbf16> to vector<2x128xbf16>
      %155 = vector.shape_cast %152 : vector<2x128xbf16> to vector<1x2x128xbf16>
      tpu.vector_store %arg7[%c1_70, %c0_71, %c384_72], %155 {strides = array<i32>} : memref<4x2x1024xbf16, #tpu.memory_space<vmem>>, vector<1x2x128xbf16>,
      %156 = vector.extract_strided_slice %95 {offsets = [0, 12, 0], sizes = [2, 1, 128], strides = [1, 1, 1]} : vector<2x32x128xbf16> to vector<2x1x128xbf16>
      %157 = vector.shape_cast %156 : vector<2x1x128xbf16> to vector<2x128xbf16>
      %c1_73 = arith.constant 1 : index
      %c0_74 = arith.constant 0 : index
      %c512_75 = arith.constant 512 : index
      %158 = vector.load %arg7[%c1_73, %c0_74, %c512_75] : memref<4x2x1024xbf16, #tpu.memory_space<vmem>>, vector<1x2x128xbf16>
      %159 = vector.shape_cast %158 : vector<1x2x128xbf16> to vector<2x128xbf16>
      %160 = vector.shape_cast %157 : vector<2x128xbf16> to vector<1x2x128xbf16>
      tpu.vector_store %arg7[%c1_73, %c0_74, %c512_75], %160 {strides = array<i32>} : memref<4x2x1024xbf16, #tpu.memory_space<vmem>>, vector<1x2x128xbf16>,
      %161 = vector.extract_strided_slice %95 {offsets = [0, 13, 0], sizes = [2, 1, 128], strides = [1, 1, 1]} : vector<2x32x128xbf16> to vector<2x1x128xbf16>
      %162 = vector.shape_cast %161 : vector<2x1x128xbf16> to vector<2x128xbf16>
      %c1_76 = arith.constant 1 : index
      %c0_77 = arith.constant 0 : index
      %c640_78 = arith.constant 640 : index
      %163 = vector.load %arg7[%c1_76, %c0_77, %c640_78] : memref<4x2x1024xbf16, #tpu.memory_space<vmem>>, vector<1x2x128xbf16>
      %164 = vector.shape_cast %163 : vector<1x2x128xbf16> to vector<2x128xbf16>
      %165 = vector.shape_cast %162 : vector<2x128xbf16> to vector<1x2x128xbf16>
      tpu.vector_store %arg7[%c1_76, %c0_77, %c640_78], %165 {strides = array<i32>} : memref<4x2x1024xbf16, #tpu.memory_space<vmem>>, vector<1x2x128xbf16>,
      %166 = vector.extract_strided_slice %95 {offsets = [0, 14, 0], sizes = [2, 1, 128], strides = [1, 1, 1]} : vector<2x32x128xbf16> to vector<2x1x128xbf16>
      %167 = vector.shape_cast %166 : vector<2x1x128xbf16> to vector<2x128xbf16>
      %c1_79 = arith.constant 1 : index
      %c0_80 = arith.constant 0 : index
      %c768_81 = arith.constant 768 : index
      %168 = vector.load %arg7[%c1_79, %c0_80, %c768_81] : memref<4x2x1024xbf16, #tpu.memory_space<vmem>>, vector<1x2x128xbf16>
      %169 = vector.shape_cast %168 : vector<1x2x128xbf16> to vector<2x128xbf16>
      %170 = vector.shape_cast %167 : vector<2x128xbf16> to vector<1x2x128xbf16>
      tpu.vector_store %arg7[%c1_79, %c0_80, %c768_81], %170 {strides = array<i32>} : memref<4x2x1024xbf16, #tpu.memory_space<vmem>>, vector<1x2x128xbf16>,
      %171 = vector.extract_strided_slice %95 {offsets = [0, 15, 0], sizes = [2, 1, 128], strides = [1, 1, 1]} : vector<2x32x128xbf16> to vector<2x1x128xbf16>
      %172 = vector.shape_cast %171 : vector<2x1x128xbf16> to vector<2x128xbf16>
      %c1_82 = arith.constant 1 : index
      %c0_83 = arith.constant 0 : index
      %c896_84 = arith.constant 896 : index
      %173 = vector.load %arg7[%c1_82, %c0_83, %c896_84] : memref<4x2x1024xbf16, #tpu.memory_space<vmem>>, vector<1x2x128xbf16>
      %174 = vector.shape_cast %173 : vector<1x2x128xbf16> to vector<2x128xbf16>
      %175 = vector.shape_cast %172 : vector<2x128xbf16> to vector<1x2x128xbf16>
      tpu.vector_store %arg7[%c1_82, %c0_83, %c896_84], %175 {strides = array<i32>} : memref<4x2x1024xbf16, #tpu.memory_space<vmem>>, vector<1x2x128xbf16>,
      %176 = vector.extract_strided_slice %95 {offsets = [0, 16, 0], sizes = [2, 1, 128], strides = [1, 1, 1]} : vector<2x32x128xbf16> to vector<2x1x128xbf16>
      %177 = vector.shape_cast %176 : vector<2x1x128xbf16> to vector<2x128xbf16>
      %c2_85 = arith.constant 2 : index
      %c0_86 = arith.constant 0 : index
      %c0_87 = arith.constant 0 : index
      %178 = vector.load %arg7[%c2_85, %c0_86, %c0_87] : memref<4x2x1024xbf16, #tpu.memory_space<vmem>>, vector<1x2x128xbf16>
      %179 = vector.shape_cast %178 : vector<1x2x128xbf16> to vector<2x128xbf16>
      %180 = vector.shape_cast %177 : vector<2x128xbf16> to vector<1x2x128xbf16>
      tpu.vector_store %arg7[%c2_85, %c0_86, %c0_87], %180 {strides = array<i32>} : memref<4x2x1024xbf16, #tpu.memory_space<vmem>>, vector<1x2x128xbf16>,
      %181 = vector.extract_strided_slice %95 {offsets = [0, 17, 0], sizes = [2, 1, 128], strides = [1, 1, 1]} : vector<2x32x128xbf16> to vector<2x1x128xbf16>
      %182 = vector.shape_cast %181 : vector<2x1x128xbf16> to vector<2x128xbf16>
      %c2_88 = arith.constant 2 : index
      %c0_89 = arith.constant 0 : index
      %c128_90 = arith.constant 128 : index
      %183 = vector.load %arg7[%c2_88, %c0_89, %c128_90] : memref<4x2x1024xbf16, #tpu.memory_space<vmem>>, vector<1x2x128xbf16>
      %184 = vector.shape_cast %183 : vector<1x2x128xbf16> to vector<2x128xbf16>
      %185 = vector.shape_cast %182 : vector<2x128xbf16> to vector<1x2x128xbf16>
      tpu.vector_store %arg7[%c2_88, %c0_89, %c128_90], %185 {strides = array<i32>} : memref<4x2x1024xbf16, #tpu.memory_space<vmem>>, vector<1x2x128xbf16>,
      %186 = vector.extract_strided_slice %95 {offsets = [0, 18, 0], sizes = [2, 1, 128], strides = [1, 1, 1]} : vector<2x32x128xbf16> to vector<2x1x128xbf16>
      %187 = vector.shape_cast %186 : vector<2x1x128xbf16> to vector<2x128xbf16>
      %c2_91 = arith.constant 2 : index
      %c0_92 = arith.constant 0 : index
      %c256_93 = arith.constant 256 : index
      %188 = vector.load %arg7[%c2_91, %c0_92, %c256_93] : memref<4x2x1024xbf16, #tpu.memory_space<vmem>>, vector<1x2x128xbf16>
      %189 = vector.shape_cast %188 : vector<1x2x128xbf16> to vector<2x128xbf16>
      %190 = vector.shape_cast %187 : vector<2x128xbf16> to vector<1x2x128xbf16>
      tpu.vector_store %arg7[%c2_91, %c0_92, %c256_93], %190 {strides = array<i32>} : memref<4x2x1024xbf16, #tpu.memory_space<vmem>>, vector<1x2x128xbf16>,
      %191 = vector.extract_strided_slice %95 {offsets = [0, 19, 0], sizes = [2, 1, 128], strides = [1, 1, 1]} : vector<2x32x128xbf16> to vector<2x1x128xbf16>
      %192 = vector.shape_cast %191 : vector<2x1x128xbf16> to vector<2x128xbf16>
      %c2_94 = arith.constant 2 : index
      %c0_95 = arith.constant 0 : index
      %c384_96 = arith.constant 384 : index
      %193 = vector.load %arg7[%c2_94, %c0_95, %c384_96] : memref<4x2x1024xbf16, #tpu.memory_space<vmem>>, vector<1x2x128xbf16>
      %194 = vector.shape_cast %193 : vector<1x2x128xbf16> to vector<2x128xbf16>
      %195 = vector.shape_cast %192 : vector<2x128xbf16> to vector<1x2x128xbf16>
      tpu.vector_store %arg7[%c2_94, %c0_95, %c384_96], %195 {strides = array<i32>} : memref<4x2x1024xbf16, #tpu.memory_space<vmem>>, vector<1x2x128xbf16>,
      %196 = vector.extract_strided_slice %95 {offsets = [0, 20, 0], sizes = [2, 1, 128], strides = [1, 1, 1]} : vector<2x32x128xbf16> to vector<2x1x128xbf16>
      %197 = vector.shape_cast %196 : vector<2x1x128xbf16> to vector<2x128xbf16>
      %c2_97 = arith.constant 2 : index
      %c0_98 = arith.constant 0 : index
      %c512_99 = arith.constant 512 : index
      %198 = vector.load %arg7[%c2_97, %c0_98, %c512_99] : memref<4x2x1024xbf16, #tpu.memory_space<vmem>>, vector<1x2x128xbf16>
      %199 = vector.shape_cast %198 : vector<1x2x128xbf16> to vector<2x128xbf16>
      %200 = vector.shape_cast %197 : vector<2x128xbf16> to vector<1x2x128xbf16>
      tpu.vector_store %arg7[%c2_97, %c0_98, %c512_99], %200 {strides = array<i32>} : memref<4x2x1024xbf16, #tpu.memory_space<vmem>>, vector<1x2x128xbf16>,
      %201 = vector.extract_strided_slice %95 {offsets = [0, 21, 0], sizes = [2, 1, 128], strides = [1, 1, 1]} : vector<2x32x128xbf16> to vector<2x1x128xbf16>
      %202 = vector.shape_cast %201 : vector<2x1x128xbf16> to vector<2x128xbf16>
      %c2_100 = arith.constant 2 : index
      %c0_101 = arith.constant 0 : index
      %c640_102 = arith.constant 640 : index
      %203 = vector.load %arg7[%c2_100, %c0_101, %c640_102] : memref<4x2x1024xbf16, #tpu.memory_space<vmem>>, vector<1x2x128xbf16>
      %204 = vector.shape_cast %203 : vector<1x2x128xbf16> to vector<2x128xbf16>
      %205 = vector.shape_cast %202 : vector<2x128xbf16> to vector<1x2x128xbf16>
      tpu.vector_store %arg7[%c2_100, %c0_101, %c640_102], %205 {strides = array<i32>} : memref<4x2x1024xbf16, #tpu.memory_space<vmem>>, vector<1x2x128xbf16>,
      %206 = vector.extract_strided_slice %95 {offsets = [0, 22, 0], sizes = [2, 1, 128], strides = [1, 1, 1]} : vector<2x32x128xbf16> to vector<2x1x128xbf16>
      %207 = vector.shape_cast %206 : vector<2x1x128xbf16> to vector<2x128xbf16>
      %c2_103 = arith.constant 2 : index
      %c0_104 = arith.constant 0 : index
      %c768_105 = arith.constant 768 : index
      %208 = vector.load %arg7[%c2_103, %c0_104, %c768_105] : memref<4x2x1024xbf16, #tpu.memory_space<vmem>>, vector<1x2x128xbf16>
      %209 = vector.shape_cast %208 : vector<1x2x128xbf16> to vector<2x128xbf16>
      %210 = vector.shape_cast %207 : vector<2x128xbf16> to vector<1x2x128xbf16>
      tpu.vector_store %arg7[%c2_103, %c0_104, %c768_105], %210 {strides = array<i32>} : memref<4x2x1024xbf16, #tpu.memory_space<vmem>>, vector<1x2x128xbf16>,
      %211 = vector.extract_strided_slice %95 {offsets = [0, 23, 0], sizes = [2, 1, 128], strides = [1, 1, 1]} : vector<2x32x128xbf16> to vector<2x1x128xbf16>
      %212 = vector.shape_cast %211 : vector<2x1x128xbf16> to vector<2x128xbf16>
      %c2_106 = arith.constant 2 : index
      %c0_107 = arith.constant 0 : index
      %c896_108 = arith.constant 896 : index
      %213 = vector.load %arg7[%c2_106, %c0_107, %c896_108] : memref<4x2x1024xbf16, #tpu.memory_space<vmem>>, vector<1x2x128xbf16>
      %214 = vector.shape_cast %213 : vector<1x2x128xbf16> to vector<2x128xbf16>
      %215 = vector.shape_cast %212 : vector<2x128xbf16> to vector<1x2x128xbf16>
      tpu.vector_store %arg7[%c2_106, %c0_107, %c896_108], %215 {strides = array<i32>} : memref<4x2x1024xbf16, #tpu.memory_space<vmem>>, vector<1x2x128xbf16>,
      %216 = vector.extract_strided_slice %95 {offsets = [0, 24, 0], sizes = [2, 1, 128], strides = [1, 1, 1]} : vector<2x32x128xbf16> to vector<2x1x128xbf16>
      %217 = vector.shape_cast %216 : vector<2x1x128xbf16> to vector<2x128xbf16>
      %c3_109 = arith.constant 3 : index
      %c0_110 = arith.constant 0 : index
      %c0_111 = arith.constant 0 : index
      %218 = vector.load %arg7[%c3_109, %c0_110, %c0_111] : memref<4x2x1024xbf16, #tpu.memory_space<vmem>>, vector<1x2x128xbf16>
      %219 = vector.shape_cast %218 : vector<1x2x128xbf16> to vector<2x128xbf16>
      %220 = vector.shape_cast %217 : vector<2x128xbf16> to vector<1x2x128xbf16>
      tpu.vector_store %arg7[%c3_109, %c0_110, %c0_111], %220 {strides = array<i32>} : memref<4x2x1024xbf16, #tpu.memory_space<vmem>>, vector<1x2x128xbf16>,
      %221 = vector.extract_strided_slice %95 {offsets = [0, 25, 0], sizes = [2, 1, 128], strides = [1, 1, 1]} : vector<2x32x128xbf16> to vector<2x1x128xbf16>
      %222 = vector.shape_cast %221 : vector<2x1x128xbf16> to vector<2x128xbf16>
      %c3_112 = arith.constant 3 : index
      %c0_113 = arith.constant 0 : index
      %c128_114 = arith.constant 128 : index
      %223 = vector.load %arg7[%c3_112, %c0_113, %c128_114] : memref<4x2x1024xbf16, #tpu.memory_space<vmem>>, vector<1x2x128xbf16>
      %224 = vector.shape_cast %223 : vector<1x2x128xbf16> to vector<2x128xbf16>
      %225 = vector.shape_cast %222 : vector<2x128xbf16> to vector<1x2x128xbf16>
      tpu.vector_store %arg7[%c3_112, %c0_113, %c128_114], %225 {strides = array<i32>} : memref<4x2x1024xbf16, #tpu.memory_space<vmem>>, vector<1x2x128xbf16>,
      %226 = vector.extract_strided_slice %95 {offsets = [0, 26, 0], sizes = [2, 1, 128], strides = [1, 1, 1]} : vector<2x32x128xbf16> to vector<2x1x128xbf16>
      %227 = vector.shape_cast %226 : vector<2x1x128xbf16> to vector<2x128xbf16>
      %c3_115 = arith.constant 3 : index
      %c0_116 = arith.constant 0 : index
      %c256_117 = arith.constant 256 : index
      %228 = vector.load %arg7[%c3_115, %c0_116, %c256_117] : memref<4x2x1024xbf16, #tpu.memory_space<vmem>>, vector<1x2x128xbf16>
      %229 = vector.shape_cast %228 : vector<1x2x128xbf16> to vector<2x128xbf16>
      %230 = vector.shape_cast %227 : vector<2x128xbf16> to vector<1x2x128xbf16>
      tpu.vector_store %arg7[%c3_115, %c0_116, %c256_117], %230 {strides = array<i32>} : memref<4x2x1024xbf16, #tpu.memory_space<vmem>>, vector<1x2x128xbf16>,
      %231 = vector.extract_strided_slice %95 {offsets = [0, 27, 0], sizes = [2, 1, 128], strides = [1, 1, 1]} : vector<2x32x128xbf16> to vector<2x1x128xbf16>
      %232 = vector.shape_cast %231 : vector<2x1x128xbf16> to vector<2x128xbf16>
      %c3_118 = arith.constant 3 : index
      %c0_119 = arith.constant 0 : index
      %c384_120 = arith.constant 384 : index
      %233 = vector.load %arg7[%c3_118, %c0_119, %c384_120] : memref<4x2x1024xbf16, #tpu.memory_space<vmem>>, vector<1x2x128xbf16>
      %234 = vector.shape_cast %233 : vector<1x2x128xbf16> to vector<2x128xbf16>
      %235 = vector.shape_cast %232 : vector<2x128xbf16> to vector<1x2x128xbf16>
      tpu.vector_store %arg7[%c3_118, %c0_119, %c384_120], %235 {strides = array<i32>} : memref<4x2x1024xbf16, #tpu.memory_space<vmem>>, vector<1x2x128xbf16>,
      %236 = vector.extract_strided_slice %95 {offsets = [0, 28, 0], sizes = [2, 1, 128], strides = [1, 1, 1]} : vector<2x32x128xbf16> to vector<2x1x128xbf16>
      %237 = vector.shape_cast %236 : vector<2x1x128xbf16> to vector<2x128xbf16>
      %c3_121 = arith.constant 3 : index
      %c0_122 = arith.constant 0 : index
      %c512_123 = arith.constant 512 : index
      %238 = vector.load %arg7[%c3_121, %c0_122, %c512_123] : memref<4x2x1024xbf16, #tpu.memory_space<vmem>>, vector<1x2x128xbf16>
      %239 = vector.shape_cast %238 : vector<1x2x128xbf16> to vector<2x128xbf16>
      %240 = vector.shape_cast %237 : vector<2x128xbf16> to vector<1x2x128xbf16>
      tpu.vector_store %arg7[%c3_121, %c0_122, %c512_123], %240 {strides = array<i32>} : memref<4x2x1024xbf16, #tpu.memory_space<vmem>>, vector<1x2x128xbf16>,
      %241 = vector.extract_strided_slice %95 {offsets = [0, 29, 0], sizes = [2, 1, 128], strides = [1, 1, 1]} : vector<2x32x128xbf16> to vector<2x1x128xbf16>
      %242 = vector.shape_cast %241 : vector<2x1x128xbf16> to vector<2x128xbf16>
      %c3_124 = arith.constant 3 : index
      %c0_125 = arith.constant 0 : index
      %c640_126 = arith.constant 640 : index
      %243 = vector.load %arg7[%c3_124, %c0_125, %c640_126] : memref<4x2x1024xbf16, #tpu.memory_space<vmem>>, vector<1x2x128xbf16>
      %244 = vector.shape_cast %243 : vector<1x2x128xbf16> to vector<2x128xbf16>
      %245 = vector.shape_cast %242 : vector<2x128xbf16> to vector<1x2x128xbf16>
      tpu.vector_store %arg7[%c3_124, %c0_125, %c640_126], %245 {strides = array<i32>} : memref<4x2x1024xbf16, #tpu.memory_space<vmem>>, vector<1x2x128xbf16>,
      %246 = vector.extract_strided_slice %95 {offsets = [0, 30, 0], sizes = [2, 1, 128], strides = [1, 1, 1]} : vector<2x32x128xbf16> to vector<2x1x128xbf16>
      %247 = vector.shape_cast %246 : vector<2x1x128xbf16> to vector<2x128xbf16>
      %c3_127 = arith.constant 3 : index
      %c0_128 = arith.constant 0 : index
      %c768_129 = arith.constant 768 : index
      %248 = vector.load %arg7[%c3_127, %c0_128, %c768_129] : memref<4x2x1024xbf16, #tpu.memory_space<vmem>>, vector<1x2x128xbf16>
      %249 = vector.shape_cast %248 : vector<1x2x128xbf16> to vector<2x128xbf16>
      %250 = vector.shape_cast %247 : vector<2x128xbf16> to vector<1x2x128xbf16>
      tpu.vector_store %arg7[%c3_127, %c0_128, %c768_129], %250 {strides = array<i32>} : memref<4x2x1024xbf16, #tpu.memory_space<vmem>>, vector<1x2x128xbf16>,
      %251 = vector.extract_strided_slice %95 {offsets = [0, 31, 0], sizes = [2, 1, 128], strides = [1, 1, 1]} : vector<2x32x128xbf16> to vector<2x1x128xbf16>
      %252 = vector.shape_cast %251 : vector<2x1x128xbf16> to vector<2x128xbf16>
      %c3_130 = arith.constant 3 : index
      %c0_131 = arith.constant 0 : index
      %c896_132 = arith.constant 896 : index
      %253 = vector.load %arg7[%c3_130, %c0_131, %c896_132] : memref<4x2x1024xbf16, #tpu.memory_space<vmem>>, vector<1x2x128xbf16>
      %254 = vector.shape_cast %253 : vector<1x2x128xbf16> to vector<2x128xbf16>
      %255 = vector.shape_cast %252 : vector<2x128xbf16> to vector<1x2x128xbf16>
      tpu.vector_store %arg7[%c3_130, %c0_131, %c896_132], %255 {strides = array<i32>} : memref<4x2x1024xbf16, #tpu.memory_space<vmem>>, vector<1x2x128xbf16>,
      %cst_133 = arith.constant 0.000000e+00 : f32
      %256 = vector.broadcast %cst_133 : f32 to vector<2x128xf32>
      %c0_134 = arith.constant 0 : index
      %c0_135 = arith.constant 0 : index
      %257 = vector.load %arg8[%c0_134, %c0_135] : memref<2x128xf32, #tpu.memory_space<vmem>>, vector<2x128xf32>
      tpu.vector_store %arg8[%c0_134, %c0_135], %256 {strides = array<i32>} : memref<2x128xf32, #tpu.memory_space<vmem>>, vector<2x128xf32>,
    } else {
    }
    %c0 = arith.constant 0 : index
    %c0_1 = arith.constant 0 : index
    %3 = vector.load %arg8[%c0, %c0_1] : memref<2x128xf32, #tpu.memory_space<vmem>>, vector<2x128xf32>
    %4 = arith.index_cast %arg0 : i32 to index
    %c0_2 = arith.constant 0 : index
    %c0_3 = arith.constant 0 : index
    %5 = vector.load %arg7[%4, %c0_2, %c0_3] : memref<4x2x1024xbf16, #tpu.memory_space<vmem>>, vector<1x2x1024xbf16>
    %6 = vector.shape_cast %5 : vector<1x2x1024xbf16> to vector<2x1024xbf16>
    %c0_4 = arith.constant 0 : index
    %c0_5 = arith.constant 0 : index
    %7 = vector.load %arg4[%c0_4, %c0_5] : memref<1024x128xbf16, #tpu.memory_space<vmem>>, vector<1024x128xbf16>
    %cst = arith.constant dense<0.000000e+00> : vector<2x128xf32>
    %8 = tpu.matmul %6, %7, %cst {dimension_numbers = #tpu.dot_dimension_numbers<[1], [0], [0], [1], [0, 0, 1, 1], [], []>} : vector<2x1024xbf16>, vector<1024x128xbf16>, vector<2x128xf32> -> vector<2x128xf32>
    %9 = arith.addf %3, %8 : vector<2x128xf32>
    %c0_6 = arith.constant 0 : index
    %c0_7 = arith.constant 0 : index
    %10 = vector.load %arg8[%c0_6, %c0_7] : memref<2x128xf32, #tpu.memory_space<vmem>>, vector<2x128xf32>
    tpu.vector_store %arg8[%c0_6, %c0_7], %9 {strides = array<i32>} : memref<2x128xf32, #tpu.memory_space<vmem>>, vector<2x128xf32>,
    %c3_i32 = arith.constant 3 : i32
    %11 = arith.cmpi eq, %arg0, %c3_i32 : i32
    %12 = arith.extui %11 : i1 to i32
    %c0_i32_8 = arith.constant 0 : i32
    %13 = arith.cmpi ne, %12, %c0_i32_8 : i32
    scf.if %13 {
      %c0_9 = arith.constant 0 : index
      %c0_10 = arith.constant 0 : index
      %14 = vector.load %arg8[%c0_9, %c0_10] : memref<2x128xf32, #tpu.memory_space<vmem>>, vector<2x128xf32>
      %c0_11 = arith.constant 0 : index
      %c0_12 = arith.constant 0 : index
      %15 = vector.load %arg5[%c0_11, %c0_12] : memref<1x128xf32, #tpu.memory_space<vmem>>, vector<1x128xf32>
      %16 = vector.broadcast %15 : vector<1x128xf32> to vector<2x128xf32>
      %17 = arith.addf %14, %16 : vector<2x128xf32>
      %c0_13 = arith.constant 0 : index
      %c0_14 = arith.constant 0 : index
      %18 = vector.load %arg6[%c0_13, %c0_14] : memref<2x128xf32, #tpu.memory_space<vmem>>, vector<2x128xf32>
      tpu.vector_store %arg6[%c0_13, %c0_14], %17 {strides = array<i32>} : memref<2x128xf32, #tpu.memory_space<vmem>>, vector<2x128xf32>,
    } else {
    }
    return
  }
  func.func @transform_0(%arg0: i32) -> (i32, i32, i32, i32) {
    %c0_i32 = arith.constant 0 : i32
    %c0_i32_0 = arith.constant 0 : i32
    %c0_i32_1 = arith.constant 0 : i32
    %c0_i32_2 = arith.constant 0 : i32
    %c0_i32_3 = arith.constant 0 : i32
    return %c0_i32, %c0_i32_0, %c0_i32_1, %c0_i32_2 : i32, i32, i32, i32
  }
  func.func @transform_1(%arg0: i32) -> (i32, i32, i32) {
    %c0_i32 = arith.constant 0 : i32
    %c0_i32_0 = arith.constant 0 : i32
    %c0_i32_1 = arith.constant 0 : i32
    %c0_i32_2 = arith.constant 0 : i32
    return %c0_i32, %c0_i32_0, %c0_i32_1 : i32, i32, i32
  }
  func.func @transform_2(%arg0: i32) -> (i32, i32) {
    %c0_i32 = arith.constant 0 : i32
    %c0_i32_0 = arith.constant 0 : i32
    %c0_i32_1 = arith.constant 0 : i32
    return %c0_i32, %c0_i32_0 : i32, i32
  }
  func.func @transform_3(%arg0: i32) -> (i32, i32) {
    %c0_i32 = arith.constant 0 : i32
    %c0_i32_0 = arith.constant 0 : i32
    return %arg0, %c0_i32 : i32, i32
  }
  func.func @transform_4(%arg0: i32) -> (i32, i32) {
    %c0_i32 = arith.constant 0 : i32
    %c0_i32_0 = arith.constant 0 : i32
    %c0_i32_1 = arith.constant 0 : i32
    return %c0_i32, %c0_i32_0 : i32, i32
  }
  func.func @transform_5(%arg0: i32) -> (i32, i32) {
    %c0_i32 = arith.constant 0 : i32
    %c0_i32_0 = arith.constant 0 : i32
    %c0_i32_1 = arith.constant 0 : i32
    return %c0_i32, %c0_i32_0 : i32, i32
  }
}

</mosaic_0001>

<bundles_post_ra>
// kernel: frozen_sb_cnn_esc50_forward.1
= control target key start
LH: loop header
LB: loop body
LE: loop exit
PB: predicated region body
PF: predicated region fallthrough
CT: control target
= control target key end

     0   :  { %10 = vsyncpa [#allocation5], 0  ;;  %s8135_s0 = inlined_call_operand.vmem [shape: f32[2,18,10,48], index: 0, kind: input, shape index: {}]   ;;  %s8136_s1 = inlined_call_operand.vmem [shape: bf16[9,48,128], index: 1, kind: input, shape index: {}]   ;;  %s8137_s2 = inlined_call_operand.vmem [shape: f32[1,128], index: 2, kind: input, shape index: {}]   ;;  %s8138_s3 = inlined_call_operand.hbm [shape: bf16[4096,128], index: 3, kind: input, shape index: {}]   ;;  %s8139_s4 = inlined_call_operand.vmem [shape: f32[1,128], index: 4, kind: input, shape index: {}]   ;;  %s8140_s5 = inlined_call_operand.hbm [shape: f32[2,128], index: 5, kind: output, shape index: {}]  }
   0x1   :  { %12 = vsyncpa [#allocation5 + $0x1], 0 }
   0x2   :  { %13 = vsyncpa [#allocation6], 0  ;;  %s5866_s18 = smov 0   ;;  %s5868_s19 = smov 0  }
   0x3   :  { %s5870_s20 = smov 0   ;;  %s5872_s21 = smov 0  }
   0x4 LB: > { %s5885_s22 = sadd.s32 4294967295, %s5830_s21   ;;  %s5888_s23 = sadd.s32 1, %s5830_s21   ;;  %s5830_s21 = sphi %s5872_s21, %s8517_s21   ;;  %s5826_s20 = sphi %s5870_s20, %s8516_s20   ;;  %s5822_s19 = sphi %s5868_s19, %s8515_s19   ;;  %s5818_s18 = sphi %s5866_s18, %s8514_s18  }
   0x5   : > { %s86_s24 = ssub.s32 %s5830_s21, %s5888_s23  ;;  %s89_s25 = sadd.s32 1, %s5826_s20 }
   0x6   : > { %p87_p0 = scmp.eq.s32.totalorder %s86_s24, 0  ;;  %p96_p1 = scmp.ne.s32.totalorder %s5826_s20, %s5822_s19 }
   0x7   : > { %p97_p2 = scmp.eq.s32.totalorder %s5830_s21, 0  ;;  %p102_p3 = scmp.ne.s32.totalorder %s5822_s19, %s5818_s18 }
   0x8   : > { %s5898_s26 = scalar_select %p87_p0, %s5826_s20, %s89_s25  }
   0x9   : > { %p5900_p4 = por %p97_p2, %p96_p1  ;;  %p103_p5 = scmp.eq.s32.totalorder %s5885_s22, 0 }
   0xa   : > { %p5687_p6 = scmp.lt.s32.totalorder %s5830_s21, 4  ;;  %s180_s29 = sand.u32 1, %s5826_s20  }
   0xb   : > { %p5906_p7 = por %p103_p5, %p102_p3  ;;  %s4880_s30 = sshll.u32 %s180_s29, 9 }
   0xc   : > { %s5576_s6 = sshll.u32 %s5830_s21, 9  ;;  %s184_s10 = scalar_lea.vmem [#allocation4], %s4880_s30 }
   0xd   : > { %s189_s9 = scalar_lea.hbm %s8138_s3, %s5576_s6  ;;  %s192_s11 = sshll.u32 %s184_s10, 4  ;;  %s193_s11 = int_to_ptr.vmem [resolvable:$true] %s192_s11 }
   0xe   : > { %s190_s12 = sshll.u32 %s189_s9, 4  ;;  %p5917_p8 = pnand %p5687_p6, %p5900_p4  ;;  %s191_s12 = int_to_ptr.hbm [resolvable:$true] %s190_s12 }
   0xf   : > { %p4883_p9 = scmp.ge.s32.totalorder %s5830_s21, 1  ;;  %s181_s14 = scalar_lea.sflag [#allocation5], %s180_s29 }
  0x10   : > { %s5734_s15 = sshra.s32 %s191_s12, 4  ;;  %p5738_p11 = pneg %p5917_p8  ;;  %s5735_s15 = int_to_ptr.hbm [resolvable:$true] %s5734_s15 }
  0x11   : > { %s5736_s16 = scalar_lea.hbm %s5735_s15, 512  ;;  %s5741_s24 = scalar_lea.hbm %s8138_s3, 2048 }
  0x12   : > { %p5737_p10 = scmp.ne.s32.totalorder %s5735_s15, %s5736_s16  ;;  %p5742_p0 = scmp.lt.s32.totalorder %s5735_s15, %s8138_s3 }
  0x13   : > { %p5743_p1 = scmp.lt.s32.totalorder %s5741_s24, %s5736_s16 }
  0x14   : > { %p5739_p12 = pnand %p5738_p11, %p5737_p10 }
  0x15   : > { %p5744_p2 = por %p5743_p1, %p5742_p0 }
  0x16   : > { %p5740_p13 = pneg %p5739_p12 }
  0x18   : > { %p5745_p3 = pnand %p5744_p2, %p5740_p13 }
  0x1a   : > { %5748 = shalt.err (!%p5745_p3)
}
  0x1b   : > { %s5832_s29 = smov 64   ;;  %s5833_s30 = smov 4  }
  0x1c   : > { %5686 = dma.hbm_to_vmem [thread:$0]  (!%p5917_p8), %s191_s12, 8192, %s193_s11, %s181_s14, %s5832_s29, %s5832_s29, %s5833_s30  }
  0x1d   : > { %p200_p4 = scmp.lt.s32.totalorder %s5830_s21, 5 }
  0x1f   : > { %p201_p5 = pnand %p4883_p9, %p200_p4 }
  0x20   : > { %s206_s6 = sand.u32 (!%p201_p5), 1, %s5822_s19  }
  0x21   : > { %204 = sbr.rel (%p201_p5) target bundleno = 1169 (0x491), region = 40  ;;  %s4884_s7 = sshll.u32 (!%p201_p5), %s206_s6, 9 }
  0x22   : > { %s207_s8 = scalar_lea.sflag (!%p201_p5), [#allocation5], %s206_s6  ;;  %s5936_s9 = scalar_lea.vmem (!%p201_p5), [#allocation4], %s4884_s7 }
  0x26   : > { %5809 = dma.done.wait (%p5906_p7), %s207_s8, 8192  }
  0x27   : > { %5811 = vsyncadd (%p5906_p7), %s207_s8, 4294959104  ;;  %p4885_p6 = scmp.ne.s32.totalorder %s5885_s22, 0 }
  0x29   : > { %238 = sbr.rel (%p4885_p6) target bundleno = 949 (0x3b5), region = 48 }
  0x2e   : > { %v5582_v0 = vld [vmem:[%s8136_s1 + $0x28] sm:$0xff]  ;;  %v5581_v1 = vld [vmem:[%s8136_s1 + $0x20] sm:$0xff]  ;;  %v5962_v4 = vld [vmem:[%s8135_s0 + $0x90] sm:$0xff]  ;;  %vm397_vm0 = vcmask 1046528   ;;  %vm567_vm1 = vcmask 392192   ;;  %vm860_vm2 = vcmask 1045504  }
  0x2f   : > { %v5952_v2 = vld [vmem:[%s8135_s0 + $0x80] sm:$0xff]  ;;  %v5957_v3 = vld [vmem:[%s8135_s0 + $0x88] sm:$0x3]  ;;  %5668 = vmatpush.bf16.msra.mxu1 %v5582_v0  ;;  %5669 = vmatpush.bf16.msra.mxu2 %v5582_v0  ;;  %v5967_v5 = vld [vmem:[%s8135_s0 + $0x98] sm:$0x3]  ;;  %v425_v8 = vrot.slane %v5962_v4, 1 }
  0x30   : > { %v422_v6 = vrot.slane %v5952_v2, 1  ;;  %v423_v7 = vrot.slane %v5957_v3, 1  ;;  %v5975_v9 = vld [vmem:[%s8135_s0 + $0x120] sm:$0xff]  ;;  %5670 = vmatpush.bf16.msra.mxu3 %v5582_v0  ;;  %621 = vmatpush.bf16.msra.mxu0 %v5582_v0  ;;  %v426_v10 = vrot.slane %v5967_v5, 1  ;;  %v5981_v11 = vld [vmem:[%s8135_s0 + $0x128] sm:$0x3] }
  0x31   : > { %8246 = vst [vmem:[#allocation10_spill] sm:$0xff] %v5975_v9  ;;  %v5986_v12 = vld [vmem:[%s8135_s0 + $0x130] sm:$0xff]  ;;  %v5991_v13 = vld [vmem:[%s8135_s0 + $0x138] sm:$0x3]  ;;  %v446_v14 = vrot.slane %v5975_v9, 1  ;;  %v447_v15 = vrot.slane %v5981_v11, 1 }
  0x32   : > { %8247 = vst [vmem:[#allocation11_spill] sm:$0xff] %v5981_v11  ;;  %v449_v16 = vrot.slane %v5986_v12, 1  ;;  %v5999_v17 = vld [vmem:[%s8135_s0 + $0x1a0] sm:$0xff]  ;;  %v6004_v18 = vld [vmem:[%s8135_s0 + $0x1a8] sm:$0x3]  ;;  %v6007_v19 = vsel %vm397_vm0, %v422_v6, %v423_v7  ;;  %v6010_v20 = vsel %vm397_vm0, %v425_v8, %v426_v10  ;;  %v450_v21 = vrot.slane %v5991_v13, 1 }
  0x33   : > { %8248 = vst [vmem:[#allocation12_spill] sm:$0xff] %v5986_v12  ;;  %v6016_v22 = vld [vmem:[%s8135_s0 + $0x1b0] sm:$0xff]  ;;  %v6021_v23 = vld [vmem:[%s8135_s0 + $0x1b8] sm:$0x3]  ;;  %5671 = vmatpush.bf16.msra.mxu1 %v5581_v1  ;;  %5672 = vmatpush.bf16.msra.mxu2 %v5581_v1  ;;  %v448_v25 = vsel %vm397_vm0, %v446_v14, %v447_v15  ;;  %v470_v26 = vrot.slane %v5999_v17, 1  ;;  %v471_v27 = vrot.slane %v6004_v18, 1  ;;  %v6056_v35 = vpack.c.bf16 %v6010_v20, %v6007_v19 }
  0x34   : > { %8249 = vst [vmem:[#allocation13_spill] sm:$0xff] %v5991_v13  ;;  %v5580_v24 = vld [vmem:[%s8136_s1 + $0x18] sm:$0xff]  ;;  %v6032_v28 = vld [vmem:[%s8135_s0] sm:$0xff]  ;;  %v6037_v29 = vld [vmem:[%s8135_s0 + $0x8] sm:$0x3]  ;;  %5673 = vmatpush.bf16.msra.mxu3 %v5581_v1  ;;  %622 = vmatpush.bf16.msra.mxu0 %v5581_v1  ;;  %v6040_v30 = vsel %vm397_vm0, %v449_v16, %v450_v21  ;;  %v473_v31 = vrot.slane %v6016_v22, 1 }
  0x35   : > { %8250 = vst [vmem:[#allocation14_spill] sm:$0xff] %v5999_v17  ;;  %v474_v32 = vrot.slane %v6021_v23, 1  ;;  %v6047_v33 = vld [vmem:[%s8135_s0 + $0x10] sm:$0xff]  ;;  %v6052_v34 = vld [vmem:[%s8135_s0 + $0x18] sm:$0x3]  ;;  %v534_v36 = vpack.c.bf16 %v6040_v30, %v448_v25  ;;  %v6060_v37 = vsel %vm397_vm0, %v470_v26, %v471_v27  ;;  %v5585_v38 = vld [vmem:[%s8136_s1 + $0x40] sm:$0xff] }
  0x36   : > { %8251 = vst [vmem:[#allocation15_spill] sm:$0xff] %v6004_v18  ;;  %v398_v39 = vrot.slane %v6032_v28, 1  ;;  %v5588_v40 = vld [vmem:[%s8136_s1 + $0x58] sm:$0xff]  ;;  %v399_v42 = vrot.slane %v6037_v29, 1  ;;  %v401_v43 = vrot.slane %v6047_v33, 1  ;;  %v402_v44 = vrot.slane %v6052_v34, 1 }
  0x37   : > { %8252 = vst [vmem:[#allocation16_spill] sm:$0xff] %v6016_v22  ;;  %v6070_v41 = vsel %vm397_vm0, %v473_v31, %v474_v32  ;;  %5674 = vmatpush.bf16.msra.mxu1 %v5580_v24  ;;  %5675 = vmatpush.bf16.msra.mxu2 %v5580_v24  ;;  %v5579_v46 = vld [vmem:[%s8136_s1 + $0x10] sm:$0xff]  ;;  %v6092_v50 = vld [vmem:[%s8135_s0 + $0xa0] sm:$0xff]  ;;  %v6097_v51 = vld [vmem:[%s8135_s0 + $0xa8] sm:$0x3]  ;;  %vm3267_vm3 = vcmask 1040384  }
  0x38   : > { %8253 = vst [vmem:[#allocation17_spill] sm:$0xff] %v6021_v23  ;;  %v6077_v45 = vpack.c.bf16 %v6070_v41, %v6060_v37  ;;  %v5591_v47 = vld [vmem:[%s8136_s1 + $0x70] sm:$0xff]  ;;  %5676 = vmatpush.bf16.msra.mxu3 %v5580_v24  ;;  %623 = vmatpush.bf16.msra.mxu0 %v5580_v24  ;;  %v400_v48 = vsel %vm397_vm0, %v398_v39, %v399_v42  ;;  %v6102_v52 = vld [vmem:[%s8135_s0 + $0x140] sm:$0xff]  ;;  %v6107_v53 = vld [vmem:[%s8135_s0 + $0x148] sm:$0x3]  ;;  %v428_v21 = vrot.slane %v6092_v50, 1 }
  0x39   : > { %8254 = vst [vmem:[#allocation18_spill] sm:$0xff] %v6040_v30  ;;  %v6087_v49 = vsel %vm397_vm0, %v401_v43, %v402_v44  ;;  %v6113_v55 = vld [vmem:[%s8135_s0 + $0xb0] sm:$0xff]  ;;  %v6118_v56 = vld [vmem:[%s8135_s0 + $0xb8] sm:$0x3]  ;;  %v452_v57 = vrot.slane %v6102_v52, 1  ;;  %v453_v58 = vrot.slane %v6107_v53, 1 }
  0x3a   : > { %8255 = vst [vmem:[#allocation19_spill] sm:$0xff] %v6056_v35  ;;  %v526_v54 = vpack.c.bf16 %v6087_v49, %v400_v48  ;;  %v6125_v59 = vld [vmem:[%s8135_s0 + $0x1c0] sm:$0xff]  ;;  %4908 = vmatmul.msk.bf16.vlgmr.msra.gmra.mxu1 %vm567_vm1, %v6056_v35  ;;  %4912 = vmatmul.msk.bf16.vlgmr.msra.gmra.mxu2 %vm567_vm1, %v534_v36  ;;  %v6133_v60 = vld [vmem:[%s8135_s0 + $0x150] sm:$0xff]  ;;  %v6138_v61 = vld [vmem:[%s8135_s0 + $0x158] sm:$0x3]  ;;  %v429_v24 = vrot.slane %v6097_v51, 1 }
  0x3b   : > { %8256 = vst [vmem:[#allocation20_spill] sm:$0xff] %v6060_v37  ;;  %1083 = vmatpush.bf16.msrb.mxu2 %v5585_v38  ;;  %v6143_v62 = vld [vmem:[%s8135_s0 + $0x1c8] sm:$0x3]  ;;  %4916 = vmatmul.msk.bf16.vlgmr.msra.gmra.mxu3 %vm567_vm1, %v6077_v45  ;;  %v6149_v63 = vsel %vm397_vm0, %v452_v57, %v453_v58  ;;  %v6154_v0 = vld [vmem:[%s8135_s0 + $0x1d0] sm:$0xff]  ;;  %v6159_v1 = vld [vmem:[%s8135_s0 + $0x1d8] sm:$0x3] }
  0x3c   : > { %8257 = vst [vmem:[#allocation21_spill] sm:$0xff] %v6070_v41  ;;  %1293 = vmatpush.bf16.msrb.mxu3 %v5588_v40  ;;  %4904 = vmatmul.msk.bf16.vlgmr.msra.gmra.mxu0 %vm567_vm1, %v526_v54  ;;  %v476_v6 = vrot.slane %v6125_v59, 1  ;;  %v6165_v7 = vld [vmem:[%s8135_s0 + $0x20] sm:$0xff]  ;;  %v477_v10 = vrot.slane %v6143_v62, 1  ;;  %v6173_v14 = vld [vmem:[%s8135_s0 + $0x28] sm:$0x3] }
  0x3d   : > { %8258 = vst [vmem:[#allocation22_spill] sm:$0xff] %v6077_v45  ;;  %776 = vmatpush.bf16.msrb.mxu1 %v5579_v46  ;;  %1515 = vmatpush.bf16.msrb.mxu0 %v5591_v47  ;;  %v6178_v15 = vld [vmem:[%s8135_s0 + $0x30] sm:$0xff]  ;;  %v5584_v16 = vld [vmem:[%s8136_s1 + $0x38] sm:$0xff]  ;;  %v5578_v27 = vld [vmem:[%s8136_s1 + $0x8] sm:$0xff]  ;;  %v431_v31 = vrot.slane %v6113_v55, 1  ;;  %v432_v32 = vrot.slane %v6118_v56, 1 }
  0x3e   : > { %8259 = vst [vmem:[#allocation23_spill] sm:$0xff] %v6102_v52  ;;  %v6188_v25 = vld [vmem:[%s8135_s0 + $0x38] sm:$0x3]  ;;  %v5587_v26 = vld [vmem:[%s8136_s1 + $0x50] sm:$0xff]  ;;  %v455_v36 = vrot.slane %v6133_v60, 1  ;;  %v6200_v38 = vsel %vm397_vm0, %v476_v6, %v477_v10  ;;  %v456_v39 = vrot.slane %v6138_v61, 1 }
  0x3f   : > { %8260 = vst [vmem:[#allocation24_spill] sm:$0xff] %v6107_v53  ;;  %1084 = vmatpush.bf16.msrb.mxu2 %v5584_v16  ;;  %v479_v40 = vrot.slane %v6154_v0, 1  ;;  %v480_v42 = vrot.slane %v6159_v1, 1  ;;  %v6210_v44 = vld [vmem:[%s8135_s0 + $0x160] sm:$0xff]  ;;  %v404_v46 = vrot.slane %v6165_v7, 1  ;;  %v405_v47 = vrot.slane %v6173_v14, 1 }
  0x40   : > { %8261 = vst [vmem:[#allocation25_spill] sm:$0xff] %v6125_v59  ;;  %1294 = vmatpush.bf16.msrb.mxu3 %v5587_v26  ;;  %v407_v48 = vrot.slane %v6178_v15, 1  ;;  %v408_v54 = vrot.slane %v6188_v25, 1  ;;  %v6219_v57 = vld [vmem:[%s8135_s0 + $0x168] sm:$0x3]  ;;  %v6224_v58 = vld [vmem:[%s8135_s0 + $0x1e0] sm:$0xff]  ;;  %v6240_v43 = vsel %vm397_vm0, %v431_v31, %v432_v32  ;;  %v6243_v8 = vsel %vm397_vm0, %v455_v36, %v456_v39 }
  0x41   : > { %8262 = vst [vmem:[#allocation26_spill] sm:$0xff] %v6133_v60  ;;  %777 = vmatpush.bf16.msrb.mxu1 %v5578_v27  ;;  %v458_v6 = vrot.slane %v6210_v44, 1  ;;  %v459_v10 = vrot.slane %v6219_v57, 1  ;;  %v6231_v16 = vld [vmem:[%s8135_s0 + $0x1e8] sm:$0x3]  ;;  %v6237_v27 = vsel %vm397_vm0, %v428_v21, %v429_v24  ;;  %v6246_v45 = vsel %vm397_vm0, %v479_v40, %v480_v42  ;;  %v5583_v24 = vld [vmem:[%s8136_s1 + $0x30] sm:$0xff] }
  0x42   : > { %8263 = vst [vmem:[#allocation27_spill] sm:$0xff] %v6138_v61  ;;  %v5590_v26 = vld [vmem:[%s8136_s1 + $0x68] sm:$0xff]  ;;  %v6249_v35 = vsel %vm397_vm0, %v404_v46, %v405_v47  ;;  %v482_v21 = vrot.slane %v6224_v58, 1  ;;  %v6267_v32 = vld [vmem:[%s8135_s0 + $0x170] sm:$0xff]  ;;  %v6272_v36 = vld [vmem:[%s8135_s0 + $0x178] sm:$0x3]  ;;  %v6282_v46 = vpack.c.bf16 %v6240_v43, %v6237_v27  ;;  %v6286_v47 = vpack.c.bf16 %v6243_v8, %v6149_v63 }
  0x43   : > { %8264 = vst [vmem:[#allocation28_spill] sm:$0xff] %v6143_v62  ;;  %1516 = vmatpush.bf16.msrb.mxu0 %v5590_v26  ;;  %v5586_v31 = vld [vmem:[%s8136_s1 + $0x48] sm:$0xff]  ;;  %v483_v40 = vrot.slane %v6231_v16, 1  ;;  %v5577_v42 = vld [vmem:[%s8136_s1] sm:$0xff]  ;;  %1085 = vmatpush.bf16.msrb.mxu2 %v5583_v24  ;;  %v461_v24 = vrot.slane %v6267_v32, 1  ;;  %vm3284_vm4 = vcmask 1041409  }
  0x44   : > { %8265 = vst [vmem:[#allocation29_spill] sm:$0xff] %v6149_v63  ;;  %1295 = vmatpush.bf16.msrb.mxu3 %v5586_v31  ;;  %v6307_v26 = vld [vmem:[%s8135_s0 + $0x188] sm:$0x3]  ;;  %v462_v31 = vrot.slane %v6272_v36, 1  ;;  %v6336_v39 = vld [vmem:[%s8135_s0 + $0x1f8] sm:$0x3] }
  0x45   : > { %8266 = vst [vmem:[#allocation30_spill] sm:$0xff] %v6154_v0  ;;  %v6252_v0 = vsel %vm397_vm0, %v407_v48, %v408_v54  ;;  %v6290_v48 = vpack.c.bf16 %v6246_v45, %v6200_v38  ;;  %778 = vmatpush.bf16.msrb.mxu1 %v5577_v42  ;;  %v6326_v42 = vld [vmem:[%s8135_s0 + $0xc0] sm:$0xff]  ;;  %v465_v41 = vrot.slane %v6307_v26, 1  ;;  %v6373_v22 = vld [vmem:[%s8135_s0 + $0x208] sm:$0x3] }
  0x46   : > { %8267 = vst [vmem:[#allocation31_spill] sm:$0xff] %v6159_v1  ;;  %v6255_v1 = vsel %vm397_vm0, %v458_v6, %v459_v10  ;;  %v6294_v54 = vpack.c.bf16 %v6252_v0, %v6249_v35  ;;  %v6297_v6 = vsel %vm397_vm0, %v482_v21, %v483_v40  ;;  %v6302_v10 = vld [vmem:[%s8135_s0 + $0x180] sm:$0xff]  ;;  %v6316_v21 = vld [vmem:[%s8135_s0 + $0x190] sm:$0xff]  ;;  %v6321_v40 = vld [vmem:[%s8135_s0 + $0x198] sm:$0x3]  ;;  %v6376_v23 = vsel %vm397_vm0, %v461_v24, %v462_v31 }
  0x47   : > { %8268 = vst [vmem:[#allocation32_spill] sm:$0xff] %v6200_v38  ;;  %v464_v62 = vrot.slane %v6302_v10, 1  ;;  %v467_v38 = vrot.slane %v6316_v21, 1  ;;  %v468_v59 = vrot.slane %v6321_v40, 1  ;;  %v6383_v18 = vld [vmem:[%s8135_s0 + $0x40] sm:$0xff]  ;;  %v6399_v31 = vld [vmem:[%s8135_s0 + $0x50] sm:$0xff] }
  0x48   : > { %8269 = vst [vmem:[#allocation33_spill] sm:$0xff] %v6210_v44  ;;  %v6388_v17 = vld [vmem:[%s8135_s0 + $0x48] sm:$0x3]  ;;  %v5589_v24 = vld [vmem:[%s8136_s1 + $0x60] sm:$0xff] }
  0x49   : > { %8270 = vst [vmem:[#allocation34_spill] sm:$0xff] %v6219_v57  ;;  %1517 = vmatpush.bf16.msrb.mxu0 %v5589_v24  ;;  %v413_v57 = vrot.slane %v6399_v31, 1  ;;  %v5600_v24 = vld [vmem:[%s8136_s1 + $0xb8] sm:$0xff] }
  0x4a   : > { %8271 = vst [vmem:[#allocation35_spill] sm:$0xff] %v6224_v58  ;;  %4909 = vmatmul.msk.bf16.gmra.mxu1 %vm567_vm1, %v6282_v46  ;;  %4913 = vmatmul.msk.bf16.gmra.mxu2 %vm567_vm1, %v6286_v47  ;;  %v6350_v58 = vld [vmem:[%s8135_s0 + $0xd0] sm:$0xff] }
  0x4b   : > { %8272 = vst [vmem:[#allocation36_spill] sm:$0xff] %v6231_v16  ;;  %v6331_v16 = vld [vmem:[%s8135_s0 + $0x1f0] sm:$0xff]  ;;  %4917 = vmatmul.msk.bf16.gmra.mxu3 %vm567_vm1, %v6290_v48 }
  0x4c   : > { %8273 = vst [vmem:[#allocation37_spill] sm:$0xff] %v6243_v8  ;;  %4905 = vmatmul.msk.bf16.gmra.mxu0 %vm567_vm1, %v6294_v54  ;;  %2053 = vmatpush.bf16.msra.mxu3 %v5600_v24 }
  0x4d   : > { %8274 = vst [vmem:[#allocation38_spill] sm:$0xff] %v6246_v45  ;;  %v6345_v45 = vld [vmem:[%s8135_s0 + $0xc8] sm:$0x3] }
  0x4e   : > { %8275 = vst [vmem:[#allocation39_spill] sm:$0xff] %v6255_v1 }
  0x4f   : > { %8276 = vst [vmem:[#allocation40_spill] sm:$0xff] %v6267_v32  ;;  %v489_v32 = vrot.slane %v6373_v22, 1 }
  0x50   : > { %8277 = vst [vmem:[#allocation41_spill] sm:$0xff] %v6272_v36  ;;  %v437_v36 = vrot.slane %v6350_v58, 1 }
  0x51   : > { %8278 = vst [vmem:[#allocation42_spill] sm:$0xff] %v6282_v46  ;;  %v6357_v46 = vld [vmem:[%s8135_s0 + $0x200] sm:$0xff] }
  0x52   : > { %8279 = vst [vmem:[#allocation43_spill] sm:$0xff] %v6286_v47  ;;  %v6366_v47 = vld [vmem:[%s8135_s0 + $0xd8] sm:$0x3] }
  0x53   : > { %8280 = vst [vmem:[#allocation44_spill] sm:$0xff] %v6290_v48  ;;  %v485_v48 = vrot.slane %v6331_v16, 1 }
  0x54   : > { %8281 = vst [vmem:[#allocation45_spill] sm:$0xff] %v6294_v54  ;;  %v486_v54 = vrot.slane %v6336_v39, 1 }
  0x55   : > { %8282 = vst [vmem:[#allocation46_spill] sm:$0xff] %v6297_v6 }
  0x56   : > { %8283 = vst [vmem:[#allocation47_spill] sm:$0xff] %v6302_v10 }
  0x57   : > { %8284 = vst [vmem:[#allocation48_spill] sm:$0xff] %v6307_v26  ;;  %v435_v26 = vrot.slane %v6345_v45, 1 }
  0x58   : > { %8285 = vst [vmem:[#allocation49_spill] sm:$0xff] %v6316_v21  ;;  %v6391_v21 = vsel %vm397_vm0, %v464_v62, %v465_v41  ;;  %v488_v62 = vrot.slane %v6357_v46, 1  ;;  %v411_v41 = vrot.slane %v6388_v17, 1 }
  0x59   : > { %8286 = vst [vmem:[#allocation50_spill] sm:$0xff] %v6321_v40  ;;  %v434_v40 = vrot.slane %v6326_v42, 1 }
  0x5a   : > { %8287 = vst [vmem:[#allocation51_spill] sm:$0xff] %v6331_v16  ;;  %v6404_v16 = vld [vmem:[%s8135_s0 + $0x58] sm:$0x3]  ;;  %v6427_v10 = vsel %vm397_vm0, %v488_v62, %v489_v32  ;;  %v6451_v62 = vpack.c.bf16 %v6376_v23, %v6255_v1 }
  0x5b   : > { %8288 = vst [vmem:[#allocation52_spill] sm:$0xff] %v6336_v39  ;;  %v6407_v39 = vsel %vm397_vm0, %v467_v38, %v468_v59  ;;  %v438_v59 = vrot.slane %v6366_v47, 1  ;;  %v410_v38 = vrot.slane %v6383_v18, 1  ;;  %v414_v8 = vrot.slane %v6404_v16, 1 }
  0x5c   : > { %8289 = vst [vmem:[#allocation53_spill] sm:$0xff] %v6357_v46  ;;  %v6422_v46 = vsel %vm397_vm0, %v485_v48, %v486_v54  ;;  %v6434_v37 = vsel %vm397_vm0, %v434_v40, %v435_v26  ;;  %4914 = vmatmul.msk.bf16.gmra.mxu2 %vm567_vm1, %v6451_v62  ;;  %v6478_v40 = vld [vmem:[%s8135_s0 + $0xf0] sm:$0xff] }
  0x5d   : > { %8290 = vst [vmem:[#allocation54_spill] sm:$0xff] %v6373_v22  ;;  %v6437_v44 = vsel %vm397_vm0, %v437_v36, %v438_v59  ;;  %v6440_v48 = vsel %vm397_vm0, %v410_v38, %v411_v41  ;;  %v6443_v54 = vsel %vm397_vm0, %v413_v57, %v414_v8  ;;  %v6455_v26 = vpack.c.bf16 %v6422_v46, %v6297_v6  ;;  %v6464_v8 = vld [vmem:[%s8135_s0 + $0xe0] sm:$0xff]  ;;  %v6469_v57 = vld [vmem:[%s8135_s0 + $0xe8] sm:$0x3]  ;;  %v6483_v41 = vld [vmem:[%s8135_s0 + $0xf8] sm:$0x3] }
  0x5e   : > { %8291 = vst [vmem:[#allocation55_spill] sm:$0xff] %v6376_v23  ;;  %v6447_v32 = vpack.c.bf16 %v6437_v44, %v6434_v37  ;;  %v6459_v36 = vpack.c.bf16 %v6443_v54, %v6440_v48  ;;  %v6488_v59 = vld [vmem:[%s8135_s0 + $0x210] sm:$0xff]  ;;  %v5597_v38 = vld [vmem:[%s8136_s1 + $0xa0] sm:$0xff]  ;;  %v5594_v22 = vld [vmem:[%s8136_s1 + $0x88] sm:$0xff]  ;;  %v440_v1 = vrot.slane %v6464_v8, 1  ;;  %v441_v60 = vrot.slane %v6469_v57, 1 }
  0x5f   : > { %8292 = vst [vmem:[#allocation56_spill] sm:$0xff] %v6422_v46  ;;  %4918 = vmatmul.msk.bf16.gmra.mxu3 %vm567_vm1, %v6455_v26  ;;  %v6523_v46 = vld [vmem:[%s8135_s0 + $0x68] sm:$0x3]  ;;  %v6528_v6 = vld [vmem:[%s8135_s0 + $0x70] sm:$0xff]  ;;  %v6533_v23 = vld [vmem:[%s8135_s0 + $0x78] sm:$0x3]  ;;  %1887 = vmatpush.bf16.msra.mxu2 %v5597_v38 }
  0x60   : > { %8293 = vst [vmem:[#allocation57_spill] sm:$0xff] %v6447_v32  ;;  %4910 = vmatmul.msk.bf16.gmra.mxu1 %vm567_vm1, %v6447_v32  ;;  %4906 = vmatmul.msk.bf16.gmra.mxu0 %vm567_vm1, %v6459_v36  ;;  %v6515_v32 = vld [vmem:[%s8135_s0 + $0x60] sm:$0xff]  ;;  %v443_v61 = vrot.slane %v6478_v40, 1  ;;  %v444_v53 = vrot.slane %v6483_v41, 1  ;;  %v491_v30 = vrot.slane %v6488_v59, 1  ;;  %v417_v12 = vrot.slane %v6523_v46, 1 }
  0x61   : > { %8294 = vst [vmem:[#allocation58_spill] sm:$0xff] %v6451_v62  ;;  %v6505_v62 = vpack.c.bf16 %v6178_v15, %v6165_v7  ;;  %1733 = vmatpush.bf16.msra.mxu1 %v5594_v22  ;;  %v416_v52 = vrot.slane %v6515_v32, 1  ;;  %v419_v24 = vrot.slane %v6528_v6, 1  ;;  %v420_v38 = vrot.slane %v6533_v23, 1 }
  0x62   : > { %8295 = vst [vmem:[#allocation59_spill] sm:$0xff] %v6455_v26  ;;  %v6510_v26 = vld [vmem:[%s8135_s0 + $0x218] sm:$0x3]  ;;  %v6546_v9 = vsel %vm397_vm0, %v440_v1, %v441_v60  ;;  %v6549_v13 = vsel %vm397_vm0, %v443_v61, %v444_v53  ;;  %v864_v60 = vrot.slane %v6047_v33, 2  ;;  %v6568_v53 = vpack.c.bf16 %v6407_v39, %v6391_v21 }
  0x63   : > { %8296 = vst [vmem:[#allocation60_spill] sm:$0xff] %v6459_v36  ;;  %v5603_v36 = vld [vmem:[%s8136_s1 + $0xd0] sm:$0xff]  ;;  %v492_v63 = vrot.slane %v6510_v26, 1  ;;  %v6563_v11 = vpack.c.bf16 %v6549_v13, %v6546_v9  ;;  %v873_v1 = vrot.slane %v6383_v18, 2 }
  0x64   : > { %8297 = vst [vmem:[#allocation61_spill] sm:$0xff] %v6488_v59  ;;  %2215 = vmatpush.bf16.msra.mxu0 %v5603_v36  ;;  %v6555_v36 = vsel %vm397_vm0, %v416_v52, %v417_v12  ;;  %v6558_v59 = vsel %vm397_vm0, %v419_v24, %v420_v38  ;;  %v868_v12 = vrot.slane %v6173_v14, 2  ;;  %v6598_v14 = vpack.c.bf16 %v6399_v31, %v6383_v18 }
  0x65   : > { %8298 = vst [vmem:[#allocation62_spill] sm:$0xff] %v6510_v26  ;;  %v6552_v22 = vsel %vm397_vm0, %v491_v30, %v492_v63  ;;  %v865_v26 = vrot.slane %v6052_v34, 2  ;;  %v867_v30 = vrot.slane %v6165_v7, 2  ;;  %v6578_v34 = vpack.c.bf16 %v6558_v59, %v6555_v36 }
  0x66   : > { %8299 = vst [vmem:[#allocation63_spill] sm:$0xff] %v6563_v11  ;;  %v6574_v52 = vpack.c.bf16 %v6552_v22, %v6427_v10  ;;  %v861_v24 = vrot.slane %v6032_v28, 2 }
  0x67   : > { %8300 = vst [vmem:[#allocation64_spill] sm:$0xff] %v6568_v53  ;;  %v6581_v61 = vsel %vm860_vm2, %v864_v60, %v865_v26  ;;  %v6584_v63 = vsel %vm860_vm2, %v867_v30, %v868_v12  ;;  %v862_v26 = vrot.slane %v6037_v29, 2  ;;  %v870_v60 = vrot.slane %v6178_v15, 2 }
  0x68   : > { %8301 = vst [vmem:[#allocation65_spill] sm:$0xff] %v6574_v52  ;;  %v871_v30 = vrot.slane %v6188_v25, 2  ;;  %v1199_v29 = vpack.c.bf16 %v6165_v7, %v6047_v33  ;;  %v8302_v25 = vpack.c.bf16 %v6047_v33, %v6032_v28  ;;  %v877_v7 = vrot.slane %v6404_v16, 2 }
  0x69   : > { %v863_v38 = vsel %vm860_vm2, %v861_v24, %v862_v26  ;;  %v879_v33 = vrot.slane %v6515_v32, 2 }
  0x6a   : > { %v989_v12 = vpack.c.bf16 %v6581_v61, %v863_v38 }
  0x6c   : > { %4915 = vmatmul.msk.bf16.gmra.mxu2 %vm567_vm1, %v6568_v53  ;;  %v1421_v53 = vpack.c.bf16 %v6249_v35, %v6087_v49  ;;  %v6629_v35 = vpack.c.bf16 %v6528_v6, %v6515_v32  ;;  %v876_v49 = vrot.slane %v6399_v31, 2 }
  0x6e   : > { %v6644_v24 = vsel %vm860_vm2, %v876_v49, %v877_v7  ;;  %v1424_v49 = vpack.c.bf16 %v6007_v19, %v6558_v59  ;;  %v5596_v19 = vld [vmem:[%s8136_s1 + $0x98] sm:$0xff]  ;;  %v894_v59 = vrot.slane %v6113_v55, 2 }
  0x6f   : > { %4919 = vmatmul.msk.bf16.gmra.mxu3 %vm567_vm1, %v6574_v52  ;;  %v874_v52 = vrot.slane %v6388_v17, 2  ;;  %1888 = vmatpush.bf16.msra.mxu2 %v5596_v19  ;;  %v6771_v19 = vpack.c.bf16 %v6113_v55, %v6092_v50 }
  0x70   : > { %4911 = vmatmul.msk.bf16.gmra.mxu1 %vm567_vm1, %v6563_v11  ;;  %4907 = vmatmul.msk.bf16.gmra.mxu0 %vm567_vm1, %v6578_v34  ;;  %v6613_v11 = vsel %vm860_vm2, %v870_v60, %v871_v30  ;;  %v1201_v60 = vpack.c.bf16 %v6515_v32, %v6399_v31  ;;  %v1423_v30 = vpack.c.bf16 %v6555_v36, %v6443_v54  ;;  %v889_v31 = vrot.slane %v5967_v5, 2 }
  0x71   : > { %v6616_v26 = vsel %vm860_vm2, %v873_v1, %v874_v52  ;;  %v6635_v28 = vpack.c.bf16 %v6613_v11, %v6584_v63  ;;  %v880_v52 = vrot.slane %v6523_v46, 2  ;;  %v1200_v1 = vpack.c.bf16 %v6383_v18, %v6178_v15  ;;  %8309 = vst [vmem:[#allocation72_spill] sm:$0xff] %v6771_v19 }
  0x72   : > { %v882_v18 = vrot.slane %v6528_v6, 2  ;;  %v6661_v15 = vpack.c.bf16 %v6644_v24, %v6616_v26  ;;  %v885_v46 = vrot.slane %v5952_v2, 2  ;;  %v891_v32 = vrot.slane %v6092_v50, 2 }
  0x73   : > { %v6647_v38 = vsel %vm860_vm2, %v879_v33, %v880_v52  ;;  %v892_v36 = vrot.slane %v6097_v51, 2  ;;  %v5599_v51 = vld [vmem:[%s8136_s1 + $0xb0] sm:$0xff]  ;;  %v895_v52 = vrot.slane %v6118_v56, 2  ;;  %v1425_v56 = vpack.c.bf16 %v6237_v27, %v6010_v20  ;;  %v5602_v20 = vld [vmem:[%s8136_s1 + $0xc8] sm:$0xff] }
  0x74   : > { %2054 = vmatpush.bf16.msra.mxu3 %v5599_v51  ;;  %2216 = vmatpush.bf16.msra.mxu0 %v5602_v20 }
  0x75   : > { %v6699_v33 = vsel %vm860_vm2, %v891_v32, %v892_v36  ;;  %v900_v36 = vrot.slane %v6350_v58, 2 }
  0x76   : > { %8304 = vst [vmem:[#allocation67_spill] sm:$0xff] %v6699_v33 }
  0x7c   : > { %4966 = vmatmul.msk.bf16.vlgmr.msrb.gmra.mxu2 %vm567_vm1, %v989_v12 }
  0x7f   : > { %5000 = vmatmul.msk.bf16.vlgmr.msrb.gmra.mxu3 %vm567_vm1, %v1199_v29 }
  0x80   : > { %4932 = vmatmul.msk.bf16.vlgmr.msrb.gmra.mxu1 %vm567_vm1, %v8302_v25  ;;  %5034 = vmatmul.msk.bf16.vlgmr.msrb.gmra.mxu0 %vm567_vm1, %v1421_v53  ;;  %v1422_v53 = vpack.c.bf16 %v6440_v48, %v6252_v0  ;;  %v883_v0 = vrot.slane %v6533_v23, 2  ;;  %v886_v48 = vrot.slane %v5957_v3, 2  ;;  %v888_v23 = vrot.slane %v5962_v4, 2 }
  0x81   : > { %v1202_v25 = vpack.c.bf16 %v5952_v2, %v6528_v6  ;;  %v5593_v6 = vld [vmem:[%s8136_s1 + $0x80] sm:$0xff] }
  0x82   : > { %v6670_v12 = vsel %vm860_vm2, %v882_v18, %v883_v0  ;;  %v6673_v29 = vsel %vm860_vm2, %v885_v46, %v886_v48  ;;  %v6696_v7 = vsel %vm860_vm2, %v888_v23, %v889_v31  ;;  %1734 = vmatpush.bf16.msra.mxu1 %v5593_v6  ;;  %v897_v18 = vrot.slane %v6326_v42, 2 }
  0x83   : > { %v6687_v54 = vpack.c.bf16 %v6670_v12, %v6647_v38  ;;  %8303 = vst [vmem:[#allocation66_spill] sm:$0xff] %v6696_v7  ;;  %v898_v0 = vrot.slane %v6345_v45, 2  ;;  %v1203_v48 = vpack.c.bf16 %v6092_v50, %v5962_v4  ;;  %v903_v6 = vrot.slane %v6464_v8, 2 }
  0x84   : > { %v906_v50 = vrot.slane %v6478_v40, 2 }
  0x8c   : > { %4967 = vmatmul.msk.bf16.gmra.mxu2 %vm567_vm1, %v6635_v28 }
  0x8f   : > { %5001 = vmatmul.msk.bf16.gmra.mxu3 %vm567_vm1, %v1200_v1  ;;  %v6722_v1 = vpack.c.bf16 %v5962_v4, %v5952_v2  ;;  %v6739_v2 = vsel %vm860_vm2, %v894_v59, %v895_v52  ;;  %v904_v59 = vrot.slane %v6469_v57, 2  ;;  %v6795_v57 = vld [vmem:[%s8135_s0 + $0x100] sm:$0xff] }
  0x90   : > { %4933 = vmatmul.msk.bf16.gmra.mxu1 %vm567_vm1, %v6505_v62  ;;  %5035 = vmatmul.msk.bf16.gmra.mxu0 %vm567_vm1, %v1422_v53  ;;  %v6726_v53 = vpack.c.bf16 %v6696_v7, %v6673_v29  ;;  %8305 = vst [vmem:[#allocation68_spill] sm:$0xff] %v6739_v2  ;;  %v6775_v51 = vpack.c.bf16 %v6739_v2, %v6699_v33 }
  0x91   : > { %8312 = vst [vmem:[#allocation75_spill] sm:$0xff] %v6795_v57 }
  0x92   : > { %8310 = vst [vmem:[#allocation73_spill] sm:$0xff] %v6775_v51 }
  0x9c   : > { %4968 = vmatmul.msk.bf16.gmra.mxu2 %vm567_vm1, %v6661_v15 }
  0x9f   : > { %5002 = vmatmul.msk.bf16.gmra.mxu3 %vm567_vm1, %v1201_v60 }
  0xa0   : > { %4934 = vmatmul.msk.bf16.gmra.mxu1 %vm567_vm1, %v6598_v14  ;;  %5036 = vmatmul.msk.bf16.gmra.mxu0 %vm567_vm1, %v1423_v30  ;;  %v6742_v30 = vsel %vm860_vm2, %v897_v18, %v898_v0  ;;  %v1204_v18 = vpack.c.bf16 %v6326_v42, %v6113_v55  ;;  %v272_v55 = vld [vmem:[%s8135_s0 + $0x108] sm:$0x3] }
  0xa1   : > { %8306 = vst [vmem:[#allocation69_spill] sm:$0xff] %v6742_v30 }
  0xac   : > { %4969 = vmatmul.msk.bf16.gmra.mxu2 %vm567_vm1, %v6687_v54 }
  0xaf   : > { %5003 = vmatmul.msk.bf16.gmra.mxu3 %vm567_vm1, %v1202_v25  ;;  %v901_v25 = vrot.slane %v6366_v47, 2  ;;  %v1426_v47 = vpack.c.bf16 %v6434_v37, %v6240_v43  ;;  %v6801_v37 = vsel %vm860_vm2, %v903_v6, %v904_v59  ;;  %v1631_v43 = vrot.slane %v6795_v57, 2 }
  0xb0   : > { %4935 = vmatmul.msk.bf16.gmra.mxu1 %vm567_vm1, %v6629_v35  ;;  %5037 = vmatmul.msk.bf16.gmra.mxu0 %vm567_vm1, %v1424_v49  ;;  %8313 = vst [vmem:[#allocation76_spill] sm:$0xff] %v6801_v37  ;;  %v1427_v59 = vpack.c.bf16 %v6546_v9, %v6437_v44  ;;  %v1413_v9 = vrot.slane %v6795_v57, 1  ;;  %v1414_v44 = vrot.slane %v272_v55, 1 }
  0xb7   : > { %v6730_v46 = vpop.f32.mrf.mxu1 }
  0xb9   : > { %v6736_v60 = vpop.f32.mrf.mxu0 }
  0xbc   : > { %4970 = vmatmul.msk.bf16.gmra.mxu2 %vm567_vm1, %v6726_v53 }
  0xbd   : > { %v6755_v45 = vpop.f32.mrf.mxu2 }
  0xbe   : > { %v6757_v27 = vpop.f32.mrf.mxu3 }
  0xbf   : > { %5004 = vmatmul.msk.bf16.gmra.mxu3 %vm567_vm1, %v1203_v48  ;;  %8307 = vst [vmem:[#allocation70_spill] sm:$0xff] %v6757_v27  ;;  %v6759_v23 = vpop.f32.mrf.mxu1  ;;  %v907_v48 = vrot.slane %v6483_v41, 2  ;;  %v1632_v41 = vrot.slane %v272_v55, 2  ;;  %v1206_v55 = vpack.c.bf16 %v6795_v57, %v6478_v40 }
  0xc0   : > { %4936 = vmatmul.msk.bf16.gmra.mxu1 %vm567_vm1, %v6722_v1  ;;  %5038 = vmatmul.msk.bf16.gmra.mxu0 %vm567_vm1, %v1425_v56  ;;  %v6790_v56 = vsel %vm860_vm2, %v900_v36, %v901_v25 }
  0xc1   : > { %v6761_v31 = vpop.f32.mrf.mxu0  ;;  %8311 = vst [vmem:[#allocation74_spill] sm:$0xff] %v6790_v56  ;;  %v6813_v36 = vsel %vm860_vm2, %v906_v50, %v907_v48  ;;  %v6816_v25 = vsel %vm860_vm2, %v1631_v43, %v1632_v41  ;;  %v6834_v50 = vpack.c.bf16 %v6350_v58, %v6326_v42  ;;  %v6838_v48 = vpack.c.bf16 %v6790_v56, %v6742_v30  ;;  %v8333_v30 = vld [vmem:[#allocation23_spill] sm:$0xff] }
  0xc2   : > { %8314 = vst [vmem:[#allocation77_spill] sm:$0xff] %v6813_v36  ;;  %v1205_v41 = vpack.c.bf16 %v6464_v8, %v6350_v58 }
  0xc3   : > { %8315 = vst [vmem:[#allocation78_spill] sm:$0xff] %v6816_v25  ;;  %v6864_v25 = vsel %vm397_vm0, %v1413_v9, %v1414_v44 }
  0xc4   : > { %8318 = vst [vmem:[#allocation81_spill] sm:$0xff] %v6834_v50  ;;  %v1428_v9 = vpack.c.bf16 %v6864_v25, %v6549_v13 }
  0xc5   : > { %v6763_v32 = vpop.f32.mrf.mxu2  ;;  %8319 = vst [vmem:[#allocation82_spill] sm:$0xff] %v6838_v48 }
  0xc6   : > { %v6767_v49 = vpop.f32.mrf.mxu3  ;;  %8321 = vst [vmem:[#allocation84_spill] sm:$0xff] %v6864_v25 }
  0xc7   : > { %8308 = vst [vmem:[#allocation71_spill] sm:$0xff] %v6767_v49  ;;  %v6779_v52 = vpop.f32.mrf.mxu1 }
  0xc9   : > { %v6785_v0 = vpop.f32.mrf.mxu0 }
  0xcc   : > { %4971 = vmatmul.msk.bf16.gmra.mxu2 %vm567_vm1, %v6775_v51 }
  0xcd   : > { %v6818_v6 = vpop.f32.mrf.mxu2 }
  0xce   : > { %v6822_v4 = vpop.f32.mrf.mxu3 }
  0xcf   : > { %5005 = vmatmul.msk.bf16.gmra.mxu3 %vm567_vm1, %v1204_v18  ;;  %8316 = vst [vmem:[#allocation79_spill] sm:$0xff] %v6822_v4  ;;  %v6824_v5 = vpop.f32.mrf.mxu1 }
  0xd0   : > { %4937 = vmatmul.msk.bf16.gmra.mxu1 %vm567_vm1, %v6771_v19  ;;  %5039 = vmatmul.msk.bf16.gmra.mxu0 %vm567_vm1, %v1426_v47 }
  0xd1   : > { %v6826_v20 = vpop.f32.mrf.mxu0 }
  0xd5   : > { %v6828_v18 = vpop.f32.mrf.mxu2 }
  0xd6   : > { %v6830_v47 = vpop.f32.mrf.mxu3 }
  0xd7   : > { %8317 = vst [vmem:[#allocation80_spill] sm:$0xff] %v6830_v47 }
  0xdc   : > { %4972 = vmatmul.msk.bf16.gmra.mxu2 %vm567_vm1, %v6838_v48 }
  0xdd   : > { %v6840_v43 = vpop.f32.mrf.mxu1  ;;  %v6846_v3 = vpop.f32.mrf.mxu0 }
  0xdf   : > { %5006 = vmatmul.msk.bf16.gmra.mxu3 %vm567_vm1, %v1205_v41  ;;  %v6854_v42 = vpop.f32.mrf.mxu2  ;;  %v6876_v41 = vpack.c.bf16 %v6813_v36, %v6801_v37  ;;  %v8328_v37 = vld [vmem:[#allocation10_spill] sm:$0xff] }
  0xe0   : > { %4938 = vmatmul.msk.bf16.gmra.mxu1 %vm567_vm1, %v6834_v50  ;;  %5040 = vmatmul.msk.bf16.gmra.mxu0 %vm567_vm1, %v1427_v59  ;;  %v6872_v59 = vpack.c.bf16 %v6478_v40, %v6464_v8  ;;  %v8326_v40 = vld [vmem:[#allocation11_spill] sm:$0xff]  ;;  %v909_v4 = vrot.slane %v8328_v37, 2 }
  0xe1   : > { %8324 = vst [vmem:[#allocation87_spill] sm:$0xff] %v6876_v41  ;;  %v910_v57 = vrot.slane %v8326_v40, 2 }
  0xe2   : > { %v6856_v16 = vpop.f32.mrf.mxu3  ;;  %8323 = vst [vmem:[#allocation86_spill] sm:$0xff] %v6872_v59 }
  0xe3   : > { %8320 = vst [vmem:[#allocation83_spill] sm:$0xff] %v6856_v16 }
  0xe5   : > { %v6858_v58 = vpop.f32.mrf.mxu1  ;;  %v6860_v17 = vpop.f32.mrf.mxu0 }
  0xe7   : > { %v6866_v56 = vpop.f32.mrf.mxu2 }
  0xea   : > { %v6868_v47 = vpop.f32.mrf.mxu3 }
  0xeb   : > { %8322 = vst [vmem:[#allocation85_spill] sm:$0xff] %v6868_v47  ;;  %v8327_v47 = vld [vmem:[#allocation13_spill] sm:$0xff] }
  0xec   : > { %4973 = vmatmul.msk.bf16.gmra.mxu2 %vm567_vm1, %v6876_v41  ;;  %v913_v13 = vrot.slane %v8327_v47, 2 }
  0xed   : > { %v6878_v16 = vpop.f32.mrf.mxu1  ;;  %v6884_v44 = vpop.f32.mrf.mxu0 }
  0xef   : > { %5007 = vmatmul.msk.bf16.gmra.mxu3 %vm567_vm1, %v1206_v55  ;;  %v6892_v8 = vpop.f32.mrf.mxu2  ;;  %v911_v55 = vsel %vm860_vm2, %v909_v4, %v910_v57  ;;  %v8334_v4 = vld [vmem:[#allocation29_spill] sm:$0xff]  ;;  %v8335_v57 = vld [vmem:[#allocation18_spill] sm:$0xff] }
  0xf0   : > { %4939 = vmatmul.msk.bf16.gmra.mxu1 %vm567_vm1, %v6872_v59  ;;  %5041 = vmatmul.msk.bf16.gmra.mxu0 %vm567_vm1, %v1428_v9  ;;  %v8329_v59 = vld [vmem:[#allocation12_spill] sm:$0xff] }
  0xf1   : > { %v912_v48 = vrot.slane %v8329_v59, 2  ;;  %v319_v47 = vpack.c.bf16 %v8329_v59, %v8328_v37  ;;  %v1207_v49 = vpack.c.bf16 %v8333_v30, %v8329_v59  ;;  %v8338_v59 = vld [vmem:[#allocation27_spill] sm:$0xff] }
  0xf2   : > { %v6894_v36 = vpop.f32.mrf.mxu3  ;;  %v919_v19 = vrot.slane %v8338_v59, 2 }
  0xf3   : > { %8325 = vst [vmem:[#allocation88_spill] sm:$0xff] %v6894_v36  ;;  %v6906_v9 = vsel %vm860_vm2, %v912_v48, %v913_v13  ;;  %v8336_v48 = vpack.c.bf16 %v8334_v4, %v8335_v57 }
  0xf4   : > { %8330 = vst [vmem:[#allocation11_spill] sm:$0xff] %v6906_v9  ;;  %v997_v40 = vpack.c.bf16 %v6906_v9, %v911_v55  ;;  %v8337_v9 = vld [vmem:[#allocation24_spill] sm:$0xff] }
  0xf5   : > { %v6898_v25 = vpop.f32.mrf.mxu1  ;;  %v6902_v50 = vpop.f32.mrf.mxu0 }
  0xf7   : > { %v6908_v41 = vpop.f32.mrf.mxu2 }
  0xf8   : > { %8331 = vst [vmem:[#allocation13_spill] sm:$0xff] %v6908_v41 }
  0xfa   : > { %v6910_v36 = vpop.f32.mrf.mxu3 }
  0xfb   : > { %8332 = vst [vmem:[#allocation10_spill] sm:$0xff] %v6910_v36  ;;  %v916_v36 = vrot.slane %v8337_v9, 2 }
  0xfc   : > { %4974 = vmatmul.msk.bf16.gmra.mxu2 %vm567_vm1, %v997_v40 }
  0xfd   : > { %v780_v2 = vpop.f32.mrf.mxu1  ;;  %v1519_v51 = vpop.f32.mrf.mxu0 }
  0xfe   : > { %v781_v27 = vadd.f32 %v780_v2, %v6736_v60  ;;  %v915_v2 = vrot.slane %v8333_v30, 2 }
  0xff   : > { %5008 = vmatmul.msk.bf16.gmra.mxu3 %vm567_vm1, %v1207_v49  ;;  %v1087_v37 = vpop.f32.mrf.mxu2 }
 0x100   : > { %4940 = vmatmul.msk.bf16.gmra.mxu1 %vm567_vm1, %v319_v47  ;;  %5042 = vmatmul.msk.bf16.gmra.mxu0 %vm567_vm1, %v8336_v48  ;;  %v1167_v13 = vadd.f32 %v1087_v37, %v781_v27  ;;  %v8339_v47 = vld [vmem:[#allocation26_spill] sm:$0xff]  ;;  %v6933_v4 = vsel %vm860_vm2, %v915_v2, %v916_v36  ;;  %v8345_v2 = vld [vmem:[#allocation39_spill] sm:$0xff] }
 0x101   : > { %v918_v7 = vrot.slane %v8339_v47, 2  ;;  %v6940_v37 = vpack.c.bf16 %v8339_v47, %v8333_v30  ;;  %v5598_v30 = vld [vmem:[%s8136_s1 + $0xa8] sm:$0xff] }
 0x102   : > { %v1297_v55 = vpop.f32.mrf.mxu3  ;;  %2055 = vmatpush.bf16.msra.mxu3 %v5598_v30 }
 0x103   : > { %v1377_v40 = vadd.f32 %v1297_v55, %v1167_v13  ;;  %v6936_v27 = vsel %vm860_vm2, %v918_v7, %v919_v19  ;;  %v5595_v19 = vld [vmem:[%s8136_s1 + $0x90] sm:$0xff] }
 0x104   : > { %8341 = vst [vmem:[#allocation23_spill] sm:$0xff] %v6936_v27  ;;  %v6944_v13 = vpack.c.bf16 %v6936_v27, %v6933_v4  ;;  %1889 = vmatpush.bf16.msra.mxu2 %v5595_v19  ;;  %v8349_v27 = vld [vmem:[#allocation41_spill] sm:$0xff] }
 0x105   : > { %v782_v60 = vpop.f32.mrf.mxu1  ;;  %v1521_v33 = vpop.f32.mrf.mxu0  ;;  %v6930_v41 = vadd.f32 %v1519_v51, %v1377_v40  ;;  %v8343_v51 = vld [vmem:[#allocation33_spill] sm:$0xff] }
 0x106   : > { %v783_v49 = vadd.f32 %v782_v60, %v6761_v31  ;;  %8342 = vst [vmem:[#allocation29_spill] sm:$0xff] %v6944_v13  ;;  %v1208_v55 = vpack.c.bf16 %v8343_v51, %v8339_v47  ;;  %v5592_v60 = vld [vmem:[%s8136_s1 + $0x78] sm:$0xff]  ;;  %v8346_v47 = vld [vmem:[#allocation37_spill] sm:$0xff] }
 0x107   : > { %8340 = vst [vmem:[#allocation12_spill] sm:$0xff] %v6930_v41  ;;  %v1089_v9 = vpop.f32.mrf.mxu2  ;;  %v8347_v40 = vpack.c.bf16 %v8345_v2, %v8346_v47  ;;  %1735 = vmatpush.bf16.msra.mxu1 %v5592_v60  ;;  %v925_v41 = vrot.slane %v8349_v27, 2  ;;  %v5601_v19 = vld [vmem:[%s8136_s1 + $0xc0] sm:$0xff] }
 0x108   : > { %v1168_v57 = vadd.f32 %v1089_v9, %v783_v49  ;;  %2217 = vmatpush.bf16.msra.mxu0 %v5601_v19 }
 0x10a   : > { %v1299_v48 = vpop.f32.mrf.mxu3 }
 0x10b   : > { %v1378_v36 = vadd.f32 %v1299_v48, %v1168_v57  ;;  %v8348_v48 = vld [vmem:[#allocation34_spill] sm:$0xff] }
 0x10c   : > { %4975 = vmatmul.msk.bf16.gmra.mxu2 %vm567_vm1, %v6944_v13 }
 0x10d   : > { %v785_v31 = vpop.f32.mrf.mxu1  ;;  %v1524_v7 = vpop.f32.mrf.mxu0 }
 0x10e   : > { %v786_v59 = vadd.f32 %v785_v31, %v6785_v0  ;;  %v6962_v0 = vadd.f32 %v1521_v33, %v1378_v36  ;;  %v922_v31 = vrot.slane %v8348_v48, 2  ;;  %v921_v33 = vrot.slane %v8343_v51, 2  ;;  %v8350_v36 = vld [vmem:[#allocation40_spill] sm:$0xff] }
 0x10f   : > { %5009 = vmatmul.msk.bf16.gmra.mxu3 %vm567_vm1, %v1208_v55  ;;  %v1092_v49 = vpop.f32.mrf.mxu2  ;;  %v924_v55 = vrot.slane %v8350_v36, 2 }
 0x110   : > { %4941 = vmatmul.msk.bf16.gmra.mxu1 %vm567_vm1, %v6940_v37  ;;  %8344 = vst [vmem:[#allocation18_spill] sm:$0xff] %v6962_v0  ;;  %5043 = vmatmul.msk.bf16.gmra.mxu0 %vm567_vm1, %v8347_v40  ;;  %v1169_v9 = vadd.f32 %v1092_v49, %v786_v59  ;;  %v6980_v30 = vsel %vm860_vm2, %v921_v33, %v922_v31  ;;  %v8355_v31 = vld [vmem:[#allocation55_spill] sm:$0xff] }
 0x111   : > { %v6983_v27 = vsel %vm860_vm2, %v924_v55, %v925_v41  ;;  %v8356_v33 = vpack.c.bf16 %v6391_v21, %v8355_v31 }
 0x112   : > { %v1302_v57 = vpop.f32.mrf.mxu3  ;;  %8352 = vst [vmem:[#allocation27_spill] sm:$0xff] %v6983_v27 }
 0x113   : > { %v1379_v0 = vadd.f32 %v1302_v57, %v1169_v9 }
 0x115   : > { %v787_v13 = vpop.f32.mrf.mxu1  ;;  %v1526_v47 = vpop.f32.mrf.mxu0  ;;  %v6977_v59 = vadd.f32 %v1524_v7, %v1379_v0  ;;  %v8353_v7 = vld [vmem:[#allocation47_spill] sm:$0xff] }
 0x116   : > { %v788_v2 = vadd.f32 %v787_v13, %v6826_v20  ;;  %v6987_v20 = vpack.c.bf16 %v8350_v36, %v8343_v51  ;;  %v6991_v13 = vpack.c.bf16 %v6983_v27, %v6980_v30  ;;  %v1209_v0 = vpack.c.bf16 %v8353_v7, %v8350_v36  ;;  %v8359_v27 = vld [vmem:[#allocation49_spill] sm:$0xff] }
 0x117   : > { %8351 = vst [vmem:[#allocation24_spill] sm:$0xff] %v6977_v59  ;;  %v1094_v60 = vpop.f32.mrf.mxu2 }
 0x118   : > { %v1170_v40 = vadd.f32 %v1094_v60, %v788_v2  ;;  %v8358_v60 = vld [vmem:[#allocation50_spill] sm:$0xff] }
 0x11a   : > { %v1304_v49 = vpop.f32.mrf.mxu3 }
 0x11b   : > { %v1380_v57 = vadd.f32 %v1304_v49, %v1170_v40  ;;  %v931_v40 = vrot.slane %v8358_v60, 2 }
 0x11c   : > { %4976 = vmatmul.msk.bf16.gmra.mxu2 %vm567_vm1, %v6991_v13 }
 0x11d   : > { %v790_v9 = vpop.f32.mrf.mxu1  ;;  %v1529_v41 = vpop.f32.mrf.mxu0  ;;  %v7000_v51 = vadd.f32 %v1526_v47, %v1380_v57  ;;  %v930_v47 = vrot.slane %v8359_v27, 2 }
 0x11e   : > { %v791_v48 = vadd.f32 %v790_v9, %v6846_v3  ;;  %v8357_v3 = vld [vmem:[#allocation48_spill] sm:$0xff]  ;;  %v927_v9 = vrot.slane %v8353_v7, 2 }
 0x11f   : > { %8354 = vst [vmem:[#allocation26_spill] sm:$0xff] %v7000_v51  ;;  %5010 = vmatmul.msk.bf16.gmra.mxu3 %vm567_vm1, %v1209_v0  ;;  %v1097_v36 = vpop.f32.mrf.mxu2  ;;  %v928_v19 = vrot.slane %v8357_v3, 2  ;;  %v7022_v3 = vpack.c.bf16 %v8359_v27, %v8353_v7 }
 0x120   : > { %4942 = vmatmul.msk.bf16.gmra.mxu1 %vm567_vm1, %v6987_v20  ;;  %5044 = vmatmul.msk.bf16.gmra.mxu0 %vm567_vm1, %v8356_v33  ;;  %v1171_v55 = vadd.f32 %v1097_v36, %v791_v48  ;;  %v7018_v48 = vsel %vm860_vm2, %v930_v47, %v931_v40 }
 0x121   : > { %v7015_v21 = vsel %vm860_vm2, %v927_v9, %v928_v19  ;;  %8360 = vst [vmem:[#allocation33_spill] sm:$0xff] %v7018_v48 }
 0x122   : > { %v1307_v2 = vpop.f32.mrf.mxu3 }
 0x123   : > { %v1381_v57 = vadd.f32 %v1307_v2, %v1171_v55  ;;  %v7026_v55 = vpack.c.bf16 %v7018_v48, %v7015_v21  ;;  %v5728_v48 = vld [vmem:[%s8135_s0 + $0x1b0] sm:$0xff] }
 0x125   : > { %v792_v49 = vpop.f32.mrf.mxu1  ;;  %v1531_v51 = vpop.f32.mrf.mxu0  ;;  %v7012_v59 = vadd.f32 %v1529_v41, %v1381_v57  ;;  %v8361_v41 = vld [vmem:[#allocation14_spill] sm:$0xff] }
 0x126   : > { %v793_v0 = vadd.f32 %v792_v49, %v6860_v17  ;;  %v1210_v2 = vpack.c.bf16 %v8361_v41, %v8359_v27  ;;  %v8363_v49 = vld [vmem:[#allocation20_spill] sm:$0xff] }
 0x127   : > { %v1099_v31 = vpop.f32.mrf.mxu2  ;;  %v8364_v9 = vpack.c.bf16 %v8363_v49, %v6407_v39  ;;  %v8367_v41 = vld [vmem:[#allocation16_spill] sm:$0xff] }
 0x128   : > { %v1172_v33 = vadd.f32 %v1099_v31, %v793_v0  ;;  %v8366_v31 = vld [vmem:[#allocation17_spill] sm:$0xff] }
 0x12a   : > { %v1309_v36 = vpop.f32.mrf.mxu3 }
 0x12b   : > { %v1382_v19 = vadd.f32 %v1309_v36, %v1172_v33  ;;  %v937_v33 = vrot.slane %v8366_v31, 2 }
 0x12c   : > { %4977 = vmatmul.msk.bf16.gmra.mxu2 %vm567_vm1, %v7026_v55 }
 0x12d   : > { %v795_v17 = vpop.f32.mrf.mxu1  ;;  %v1534_v40 = vpop.f32.mrf.mxu0  ;;  %v7035_v7 = vadd.f32 %v1531_v51, %v1382_v19  ;;  %v5727_v51 = vld [vmem:[%s8135_s0 + $0x1a0] sm:$0xff] }
 0x12e   : > { %v796_v60 = vadd.f32 %v795_v17, %v6884_v44  ;;  %v8365_v44 = vld [vmem:[#allocation15_spill] sm:$0xff]  ;;  %v933_v17 = vrot.slane %v5727_v51, 2 }
 0x12f   : > { %8362 = vst [vmem:[#allocation39_spill] sm:$0xff] %v7035_v7  ;;  %5011 = vmatmul.msk.bf16.gmra.mxu3 %vm567_vm1, %v1210_v2  ;;  %v1102_v27 = vpop.f32.mrf.mxu2  ;;  %v934_v0 = vrot.slane %v8365_v44, 2  ;;  %v936_v2 = vrot.slane %v8367_v41, 2  ;;  %v7060_v41 = vpack.c.bf16 %v5728_v48, %v5727_v51  ;;  %v8375_v51 = vld [vmem:[#allocation32_spill] sm:$0xff] }
 0x130   : > { %4943 = vmatmul.msk.bf16.gmra.mxu1 %vm567_vm1, %v7022_v3  ;;  %5045 = vmatmul.msk.bf16.gmra.mxu0 %vm567_vm1, %v8364_v9  ;;  %v1173_v47 = vadd.f32 %v1102_v27, %v796_v60 }
 0x131   : > { %v7052_v60 = vsel %vm860_vm2, %v933_v17, %v934_v0  ;;  %v7055_v27 = vsel %vm860_vm2, %v936_v2, %v937_v33  ;;  %8371 = vst [vmem:[#allocation40_spill] sm:$0xff] %v7060_v41  ;;  %v8376_v17 = vld [vmem:[#allocation21_spill] sm:$0xff] }
 0x132   : > { %v1312_v57 = vpop.f32.mrf.mxu3  ;;  %8369 = vst [vmem:[#allocation34_spill] sm:$0xff] %v7052_v60  ;;  %v8377_v2 = vpack.c.bf16 %v8375_v51, %v8376_v17 }
 0x133   : > { %v1383_v19 = vadd.f32 %v1312_v57, %v1173_v47  ;;  %8370 = vst [vmem:[#allocation41_spill] sm:$0xff] %v7055_v27  ;;  %v8373_v47 = vld [vmem:[#allocation25_spill] sm:$0xff] }
 0x134   : > { %v1211_v57 = vpack.c.bf16 %v8373_v47, %v5728_v48 }
 0x135   : > { %v797_v36 = vpop.f32.mrf.mxu1  ;;  %v1536_v49 = vpop.f32.mrf.mxu0  ;;  %v7049_v9 = vadd.f32 %v1534_v40, %v1383_v19 }
 0x136   : > { %v798_v39 = vadd.f32 %v797_v36, %v6902_v50  ;;  %v7064_v50 = vpack.c.bf16 %v7055_v27, %v7052_v60  ;;  %v8379_v27 = vld [vmem:[#allocation31_spill] sm:$0xff] }
 0x137   : > { %8368 = vst [vmem:[#allocation37_spill] sm:$0xff] %v7049_v9  ;;  %v1104_v44 = vpop.f32.mrf.mxu2  ;;  %v943_v9 = vrot.slane %v8379_v27, 2 }
 0x138   : > { %v1174_v31 = vadd.f32 %v1104_v44, %v798_v39  ;;  %8372 = vst [vmem:[#allocation47_spill] sm:$0xff] %v7064_v50  ;;  %v8378_v44 = vld [vmem:[#allocation28_spill] sm:$0xff] }
 0x13a   : > { %v1314_v7 = vpop.f32.mrf.mxu3 }
 0x13b   : > { %v1384_v0 = vadd.f32 %v1314_v7, %v1174_v31  ;;  %v940_v31 = vrot.slane %v8378_v44, 2 }
 0x13c   : > { %4978 = vmatmul.msk.bf16.gmra.mxu2 %vm567_vm1, %v7064_v50 }
 0x13d   : > { %v800_v40 = vpop.f32.mrf.mxu1  ;;  %v1539_v36 = vpop.f32.mrf.mxu0  ;;  %v7071_v33 = vadd.f32 %v1536_v49, %v1384_v0  ;;  %v939_v49 = vrot.slane %v8373_v47, 2  ;;  %v8380_v0 = vld [vmem:[#allocation30_spill] sm:$0xff] }
 0x13e   : > { %v801_v19 = vadd.f32 %v800_v40, %v6730_v46 }
 0x13f   : > { %8374 = vst [vmem:[#allocation55_spill] sm:$0xff] %v7071_v33  ;;  %5012 = vmatmul.msk.bf16.gmra.mxu3 %vm567_vm1, %v1211_v57  ;;  %v1107_v48 = vpop.f32.mrf.mxu2  ;;  %v942_v33 = vrot.slane %v8380_v0, 2  ;;  %v7086_v51 = vsel %vm860_vm2, %v939_v49, %v940_v31 }
 0x140   : > { %4944 = vmatmul.msk.bf16.gmra.mxu1 %vm567_vm1, %v7060_v41  ;;  %5046 = vmatmul.msk.bf16.gmra.mxu0 %vm567_vm1, %v8377_v2  ;;  %v1175_v7 = vadd.f32 %v1107_v48, %v801_v19  ;;  %v7094_v19 = vpack.c.bf16 %v8380_v0, %v8373_v47  ;;  %v8387_v47 = vld [vmem:[#allocation38_spill] sm:$0xff] }
 0x141   : > { %v7089_v46 = vsel %vm860_vm2, %v942_v33, %v943_v9 }
 0x142   : > { %v1317_v39 = vpop.f32.mrf.mxu3  ;;  %8381 = vst [vmem:[#allocation48_spill] sm:$0xff] %v7089_v46  ;;  %v7098_v48 = vpack.c.bf16 %v7089_v46, %v7086_v51 }
 0x143   : > { %v1385_v57 = vadd.f32 %v1317_v39, %v1175_v7  ;;  %8382 = vst [vmem:[#allocation50_spill] sm:$0xff] %v7094_v19  ;;  %v8384_v7 = vld [vmem:[#allocation35_spill] sm:$0xff] }
 0x144   : > { %8383 = vst [vmem:[#allocation49_spill] sm:$0xff] %v7098_v48  ;;  %v1212_v39 = vpack.c.bf16 %v8384_v7, %v8380_v0 }
 0x145   : > { %v802_v41 = vpop.f32.mrf.mxu1  ;;  %v1541_v50 = vpop.f32.mrf.mxu0  ;;  %v7083_v60 = vadd.f32 %v1539_v36, %v1385_v57 }
 0x146   : > { %v803_v40 = vadd.f32 %v802_v41, %v6759_v23  ;;  %v8386_v41 = vld [vmem:[#allocation46_spill] sm:$0xff] }
 0x147   : > { %v1109_v17 = vpop.f32.mrf.mxu2  ;;  %v8388_v33 = vpack.c.bf16 %v8386_v41, %v8387_v47 }
 0x148   : > { %v1176_v2 = vadd.f32 %v1109_v17, %v803_v40  ;;  %v8389_v40 = vld [vmem:[#allocation36_spill] sm:$0xff] }
 0x149   : > { %v946_v17 = vrot.slane %v8389_v40, 2 }
 0x14a   : > { %v1319_v27 = vpop.f32.mrf.mxu3 }
 0x14b   : > { %v1386_v44 = vadd.f32 %v1319_v27, %v1176_v2  ;;  %v8390_v2 = vld [vmem:[#allocation52_spill] sm:$0xff] }
 0x14c   : > { %4979 = vmatmul.msk.bf16.gmra.mxu2 %vm567_vm1, %v7098_v48  ;;  %v949_v27 = vrot.slane %v8390_v2, 2 }
 0x14d   : > { %v805_v36 = vpop.f32.mrf.mxu1  ;;  %v1544_v9 = vpop.f32.mrf.mxu0  ;;  %v7106_v23 = vadd.f32 %v1541_v50, %v1386_v44  ;;  %v945_v50 = vrot.slane %v8384_v7, 2  ;;  %v8391_v44 = vld [vmem:[#allocation51_spill] sm:$0xff] }
 0x14e   : > { %v806_v31 = vadd.f32 %v805_v36, %v6779_v52 }
 0x14f   : > { %8385 = vst [vmem:[#allocation14_spill] sm:$0xff] %v7106_v23  ;;  %5013 = vmatmul.msk.bf16.gmra.mxu3 %vm567_vm1, %v1212_v39  ;;  %v1112_v49 = vpop.f32.mrf.mxu2  ;;  %v948_v23 = vrot.slane %v8391_v44, 2  ;;  %v7121_v41 = vsel %vm860_vm2, %v945_v50, %v946_v17  ;;  %v308_v50 = vld [vmem:[%s8135_s0 + $0x228] sm:$0x3] }
 0x150   : > { %4945 = vmatmul.msk.bf16.gmra.mxu1 %vm567_vm1, %v7094_v19  ;;  %5047 = vmatmul.msk.bf16.gmra.mxu0 %vm567_vm1, %v8388_v33  ;;  %v1177_v0 = vadd.f32 %v1112_v49, %v806_v31  ;;  %v7129_v49 = vpack.c.bf16 %v8391_v44, %v8384_v7 }
 0x151   : > { %v7124_v52 = vsel %vm860_vm2, %v948_v23, %v949_v27  ;;  %v307_v27 = vld [vmem:[%s8135_s0 + $0x220] sm:$0xff] }
 0x152   : > { %v1322_v57 = vpop.f32.mrf.mxu3  ;;  %8393 = vst [vmem:[#allocation15_spill] sm:$0xff] %v7124_v52 }
 0x153   : > { %v1387_v39 = vadd.f32 %v1322_v57, %v1177_v0  ;;  %8394 = vst [vmem:[#allocation17_spill] sm:$0xff] %v7129_v49  ;;  %v7133_v0 = vpack.c.bf16 %v7124_v52, %v7121_v41  ;;  %v8396_v57 = vld [vmem:[#allocation53_spill] sm:$0xff] }
 0x154   : > { %v1213_v40 = vpack.c.bf16 %v8396_v57, %v8391_v44 }
 0x155   : > { %v807_v46 = vpop.f32.mrf.mxu1  ;;  %v1546_v48 = vpop.f32.mrf.mxu0  ;;  %v7118_v19 = vadd.f32 %v1544_v9, %v1387_v39  ;;  %8395 = vst [vmem:[#allocation16_spill] sm:$0xff] %v7133_v0 }
 0x156   : > { %v808_v36 = vadd.f32 %v807_v46, %v6824_v5  ;;  %v8398_v46 = vld [vmem:[#allocation56_spill] sm:$0xff] }
 0x157   : > { %8392 = vst [vmem:[#allocation20_spill] sm:$0xff] %v7118_v19  ;;  %v1114_v47 = vpop.f32.mrf.mxu2  ;;  %v8399_v7 = vpack.c.bf16 %v6427_v10, %v8398_v46  ;;  %v1417_v46 = vrot.slane %v308_v50, 1 }
 0x158   : > { %v1178_v33 = vadd.f32 %v1114_v47, %v808_v36  ;;  %v8400_v36 = vld [vmem:[#allocation54_spill] sm:$0xff] }
 0x159   : > { %v952_v47 = vrot.slane %v8400_v36, 2 }
 0x15a   : > { %v1324_v31 = vpop.f32.mrf.mxu3 }
 0x15b   : > { %v1388_v17 = vadd.f32 %v1324_v31, %v1178_v33  ;;  %v8401_v33 = vld [vmem:[#allocation62_spill] sm:$0xff] }
 0x15c   : > { %4980 = vmatmul.msk.bf16.gmra.mxu2 %vm567_vm1, %v7133_v0  ;;  %v955_v31 = vrot.slane %v8401_v33, 2 }
 0x15d   : > { %v810_v9 = vpop.f32.mrf.mxu1  ;;  %v1549_v23 = vpop.f32.mrf.mxu0  ;;  %v7141_v5 = vadd.f32 %v1546_v48, %v1388_v17  ;;  %v8402_v17 = vld [vmem:[#allocation61_spill] sm:$0xff] }
 0x15e   : > { %v811_v2 = vadd.f32 %v810_v9, %v6840_v43  ;;  %v954_v43 = vrot.slane %v8402_v17, 2  ;;  %v1416_v9 = vrot.slane %v307_v27, 1  ;;  %v7173_v50 = vpack.c.bf16 %v8402_v17, %v8396_v57 }
 0x15f   : > { %8397 = vst [vmem:[#allocation25_spill] sm:$0xff] %v7141_v5  ;;  %5014 = vmatmul.msk.bf16.gmra.mxu3 %vm567_vm1, %v1213_v40  ;;  %v1117_v44 = vpop.f32.mrf.mxu2  ;;  %v951_v40 = vrot.slane %v8396_v57, 2 }
 0x160   : > { %4946 = vmatmul.msk.bf16.gmra.mxu1 %vm567_vm1, %v7129_v49  ;;  %5048 = vmatmul.msk.bf16.gmra.mxu0 %vm567_vm1, %v8399_v7  ;;  %v1179_v48 = vadd.f32 %v1117_v44, %v811_v2  ;;  %v7165_v2 = vsel %vm860_vm2, %v954_v43, %v955_v31  ;;  %v7168_v44 = vsel %vm397_vm0, %v1416_v9, %v1417_v46 }
 0x161   : > { %v7162_v0 = vsel %vm860_vm2, %v951_v40, %v952_v47  ;;  %v1214_v47 = vpack.c.bf16 %v307_v27, %v8402_v17 }
 0x162   : > { %v1327_v39 = vpop.f32.mrf.mxu3 }
 0x163   : > { %v1389_v7 = vadd.f32 %v1327_v39, %v1179_v48  ;;  %v1436_v48 = vpack.c.bf16 %v7168_v44, %v6552_v22 }
 0x165   : > { %v812_v10 = vpop.f32.mrf.mxu1  ;;  %v1551_v52 = vpop.f32.mrf.mxu0  ;;  %v7159_v5 = vadd.f32 %v1549_v23, %v1389_v7  ;;  %v7177_v23 = vpack.c.bf16 %v7165_v2, %v7162_v0 }
 0x166   : > { %v813_v36 = vadd.f32 %v812_v10, %v6858_v58 }
 0x167   : > { %v1119_v33 = vpop.f32.mrf.mxu2 }
 0x168   : > { %v1180_v49 = vadd.f32 %v1119_v33, %v813_v36 }
 0x16a   : > { %v1329_v19 = vpop.f32.mrf.mxu3 }
 0x16b   : > { %v1390_v31 = vadd.f32 %v1329_v19, %v1180_v49 }
 0x16c   : > { %4981 = vmatmul.msk.bf16.gmra.mxu2 %vm567_vm1, %v7177_v23 }
 0x16d   : > { %v815_v39 = vpop.f32.mrf.mxu1  ;;  %v1554_v40 = vpop.f32.mrf.mxu0  ;;  %v7186_v58 = vadd.f32 %v1551_v52, %v1390_v31 }
 0x16e   : > { %v816_v57 = vadd.f32 %v815_v39, %v6878_v16  ;;  %v8404_v39 = vld [vmem:[#allocation45_spill] sm:$0xff] }
 0x16f   : > { %5015 = vmatmul.msk.bf16.gmra.mxu3 %vm567_vm1, %v1214_v47  ;;  %v1122_v22 = vpop.f32.mrf.mxu2 }
 0x170   : > { %4947 = vmatmul.msk.bf16.gmra.mxu1 %vm567_vm1, %v7173_v50  ;;  %5049 = vmatmul.msk.bf16.gmra.mxu0 %vm567_vm1, %v1436_v48  ;;  %v1181_v10 = vadd.f32 %v1122_v22, %v816_v57  ;;  %v8403_v48 = vpack.c.bf16 %v6584_v63, %v6581_v61 }
 0x172   : > { %v1332_v43 = vpop.f32.mrf.mxu3 }
 0x173   : > { %v1391_v19 = vadd.f32 %v1332_v43, %v1181_v10 }
 0x175   : > { %v817_v27 = vpop.f32.mrf.mxu1  ;;  %v1556_v49 = vpop.f32.mrf.mxu0  ;;  %v7191_v17 = vadd.f32 %v1554_v40, %v1391_v19 }
 0x176   : > { %v818_v9 = vadd.f32 %v817_v27, %v6898_v25 }
 0x177   : > { %v1124_v46 = vpop.f32.mrf.mxu2 }
 0x178   : > { %v1182_v7 = vadd.f32 %v1124_v46, %v818_v9 }
 0x17a   : > { %v1334_v52 = vpop.f32.mrf.mxu3 }
 0x17b   : > { %v1392_v33 = vadd.f32 %v1334_v52, %v1182_v7  ;;  %v8406_v7 = vld [vmem:[#allocation60_spill] sm:$0xff] }
 0x17c   : > { %5102 = vmatmul.msk.bf16.vlgmr.msra.gmra.mxu2 %vm567_vm1, %v6505_v62 }
 0x17d   : > { %v820_v36 = vpop.f32.mrf.mxu1  ;;  %v1559_v47 = vpop.f32.mrf.mxu0  ;;  %v7200_v16 = vadd.f32 %v1556_v49, %v1392_v33 }
 0x17e   : > { %v821_v25 = vadd.f32 %v820_v36, %v6755_v45 }
 0x17f   : > { %5136 = vmatmul.msk.bf16.vlgmr.msra.gmra.mxu3 %vm567_vm1, %v8404_v39  ;;  %v1127_v31 = vpop.f32.mrf.mxu2 }
 0x180   : > { %5068 = vmatmul.msk.bf16.vlgmr.msra.gmra.mxu1 %vm567_vm1, %v8403_v48  ;;  %5170 = vmatmul.msk.bf16.vlgmr.msra.gmra.mxu0 %vm567_vm1, %v6635_v28  ;;  %v1183_v40 = vadd.f32 %v1127_v31, %v821_v25  ;;  %v8405_v28 = vpack.c.bf16 %v6616_v26, %v6613_v11 }
 0x182   : > { %v1337_v57 = vpop.f32.mrf.mxu3 }
 0x183   : > { %v1393_v61 = vadd.f32 %v1337_v57, %v1183_v40 }
 0x185   : > { %v822_v22 = vpop.f32.mrf.mxu1  ;;  %v1561_v63 = vpop.f32.mrf.mxu0  ;;  %v7207_v10 = vadd.f32 %v1559_v47, %v1393_v61 }
 0x186   : > { %v823_v62 = vadd.f32 %v822_v22, %v6763_v32 }
 0x187   : > { %v1129_v43 = vpop.f32.mrf.mxu2 }
 0x188   : > { %v1184_v27 = vadd.f32 %v1129_v43, %v823_v62 }
 0x18a   : > { %v1339_v19 = vpop.f32.mrf.mxu3 }
 0x18b   : > { %v1394_v9 = vadd.f32 %v1339_v19, %v1184_v27 }
 0x18c   : > { %5103 = vmatmul.msk.bf16.gmra.mxu2 %vm567_vm1, %v6598_v14 }
 0x18d   : > { %v825_v49 = vpop.f32.mrf.mxu1  ;;  %v1564_v46 = vpop.f32.mrf.mxu0  ;;  %v7216_v45 = vadd.f32 %v1561_v63, %v1394_v9 }
 0x18e   : > { %v826_v32 = vadd.f32 %v825_v49, %v6818_v6 }
 0x18f   : > { %5137 = vmatmul.msk.bf16.gmra.mxu3 %vm567_vm1, %v8406_v7  ;;  %v1132_v52 = vpop.f32.mrf.mxu2  ;;  %v8409_v7 = vld [vmem:[#allocation19_spill] sm:$0xff] }
 0x190   : > { %5069 = vmatmul.msk.bf16.gmra.mxu1 %vm567_vm1, %v8405_v28  ;;  %5171 = vmatmul.msk.bf16.gmra.mxu0 %vm567_vm1, %v6661_v15  ;;  %v1185_v36 = vadd.f32 %v1132_v52, %v826_v32  ;;  %v8407_v15 = vpack.c.bf16 %v6647_v38, %v6644_v24 }
 0x192   : > { %v1342_v33 = vpop.f32.mrf.mxu3 }
 0x193   : > { %v1395_v11 = vadd.f32 %v1342_v33, %v1185_v36 }
 0x195   : > { %v827_v47 = vpop.f32.mrf.mxu1  ;;  %v1566_v26 = vpop.f32.mrf.mxu0  ;;  %v7223_v48 = vadd.f32 %v1564_v46, %v1395_v11  ;;  %v8410_v11 = vld [vmem:[#allocation13_spill] sm:$0xff] }
 0x196   : > { %v828_v14 = vadd.f32 %v827_v47, %v6828_v18 }
 0x197   : > { %v1134_v39 = vpop.f32.mrf.mxu2 }
 0x198   : > { %v1186_v25 = vadd.f32 %v1134_v39, %v828_v14 }
 0x19a   : > { %v1344_v31 = vpop.f32.mrf.mxu3 }
 0x19b   : > { %v1396_v57 = vadd.f32 %v1344_v31, %v1186_v25 }
 0x19c   : > { %5104 = vmatmul.msk.bf16.gmra.mxu2 %vm567_vm1, %v6629_v35 }
 0x19d   : > { %v830_v40 = vpop.f32.mrf.mxu1  ;;  %v1569_v22 = vpop.f32.mrf.mxu0  ;;  %v7232_v6 = vadd.f32 %v1566_v26, %v1396_v57  ;;  %v8411_v57 = vld [vmem:[#allocation67_spill] sm:$0xff] }
 0x19e   : > { %v831_v18 = vadd.f32 %v830_v40, %v6854_v42 }
 0x19f   : > { %5138 = vmatmul.msk.bf16.gmra.mxu3 %vm567_vm1, %v6578_v34  ;;  %v1137_v61 = vpop.f32.mrf.mxu2 }
 0x1a0   : > { %5070 = vmatmul.msk.bf16.gmra.mxu1 %vm567_vm1, %v8407_v15  ;;  %5172 = vmatmul.msk.bf16.gmra.mxu0 %vm567_vm1, %v6687_v54  ;;  %v1187_v63 = vadd.f32 %v1137_v61, %v831_v18  ;;  %v8408_v54 = vpack.c.bf16 %v6673_v29, %v6670_v12  ;;  %v8416_v18 = vld [vmem:[#allocation42_spill] sm:$0xff]  ;;  %v8417_v61 = vld [vmem:[#allocation73_spill] sm:$0xff] }
 0x1a2   : > { %v1347_v62 = vpop.f32.mrf.mxu3 }
 0x1a3   : > { %v1397_v24 = vadd.f32 %v1347_v62, %v1187_v63  ;;  %v8418_v63 = vld [vmem:[#allocation70_spill] sm:$0xff] }
 0x1a5   : > { %v832_v43 = vpop.f32.mrf.mxu1  ;;  %v1571_v38 = vpop.f32.mrf.mxu0  ;;  %v7239_v27 = vadd.f32 %v1569_v22, %v1397_v24 }
 0x1a6   : > { %v833_v35 = vadd.f32 %v832_v43, %v6866_v56 }
 0x1a7   : > { %v1139_v19 = vpop.f32.mrf.mxu2 }
 0x1a8   : > { %v1188_v49 = vadd.f32 %v1139_v19, %v833_v35 }
 0x1aa   : > { %v1349_v9 = vpop.f32.mrf.mxu3 }
 0x1ab   : > { %v1398_v34 = vadd.f32 %v1349_v9, %v1188_v49 }
 0x1ac   : > { %5105 = vmatmul.msk.bf16.gmra.mxu2 %vm567_vm1, %v6722_v1 }
 0x1ad   : > { %v835_v46 = vpop.f32.mrf.mxu1  ;;  %v1574_v28 = vpop.f32.mrf.mxu0  ;;  %v7248_v42 = vadd.f32 %v1571_v38, %v1398_v34 }
 0x1ae   : > { %v836_v56 = vadd.f32 %v835_v46, %v6892_v8  ;;  %v8414_v8 = vld [vmem:[#allocation72_spill] sm:$0xff]  ;;  %v8420_v46 = vld [vmem:[#allocation71_spill] sm:$0xff] }
 0x1af   : > { %5139 = vmatmul.msk.bf16.gmra.mxu3 %vm567_vm1, %v8409_v7  ;;  %v1142_v32 = vpop.f32.mrf.mxu2 }
 0x1b0   : > { %5071 = vmatmul.msk.bf16.gmra.mxu1 %vm567_vm1, %v8408_v54  ;;  %5173 = vmatmul.msk.bf16.gmra.mxu0 %vm567_vm1, %v6726_v53  ;;  %v1189_v52 = vadd.f32 %v1142_v32, %v836_v56  ;;  %v8412_v53 = vld [vmem:[#allocation66_spill] sm:$0xff] }
 0x1b1   : > { %v8413_v22 = vpack.c.bf16 %v8411_v57, %v8412_v53 }
 0x1b2   : > { %v1352_v36 = vpop.f32.mrf.mxu3 }
 0x1b3   : > { %v1399_v12 = vadd.f32 %v1352_v36, %v1189_v52  ;;  %v8421_v36 = vld [vmem:[#allocation69_spill] sm:$0xff] }
 0x1b5   : > { %v837_v33 = vpop.f32.mrf.mxu1  ;;  %v1576_v29 = vpop.f32.mrf.mxu0  ;;  %v7255_v47 = vadd.f32 %v1574_v28, %v1399_v12 }
 0x1b6   : > { %v838_v1 = vadd.f32 %v837_v33, %v8410_v11  ;;  %v8422_v33 = vld [vmem:[#allocation68_spill] sm:$0xff] }
 0x1b7   : > { %v1144_v26 = vpop.f32.mrf.mxu2  ;;  %v8423_v12 = vpack.c.bf16 %v8421_v36, %v8422_v33  ;;  %v274_v36 = vld [vmem:[%s8135_s0 + $0x118] sm:$0x3] }
 0x1b8   : > { %v1190_v14 = vadd.f32 %v1144_v26, %v838_v1  ;;  %v8426_v1 = vld [vmem:[#allocation57_spill] sm:$0xff]  ;;  %v8427_v26 = vld [vmem:[#allocation82_spill] sm:$0xff] }
 0x1ba   : > { %v1354_v39 = vpop.f32.mrf.mxu3 }
 0x1bb   : > { %v1400_v31 = vadd.f32 %v1354_v39, %v1190_v14  ;;  %v8428_v14 = vld [vmem:[#allocation79_spill] sm:$0xff] }
 0x1bc   : > { %5106 = vmatmul.msk.bf16.gmra.mxu2 %vm567_vm1, %v8414_v8 }
 0x1bd   : > { %v840_v25 = vpop.f32.mrf.mxu1  ;;  %v1579_v40 = vpop.f32.mrf.mxu0  ;;  %v7264_v15 = vadd.f32 %v1576_v29, %v1400_v31  ;;  %v8424_v29 = vld [vmem:[#allocation81_spill] sm:$0xff] }
 0x1be   : > { %v841_v62 = vadd.f32 %v840_v25, %v8418_v63 }
 0x1bf   : > { %8415 = vst [vmem:[#allocation32_spill] sm:$0xff] %v7264_v15  ;;  %5140 = vmatmul.msk.bf16.gmra.mxu3 %vm567_vm1, %v8416_v18  ;;  %v1147_v43 = vpop.f32.mrf.mxu2  ;;  %v8430_v18 = vld [vmem:[#allocation80_spill] sm:$0xff] }
 0x1c0   : > { %5072 = vmatmul.msk.bf16.gmra.mxu1 %vm567_vm1, %v8413_v22  ;;  %5174 = vmatmul.msk.bf16.gmra.mxu0 %vm567_vm1, %v8417_v61  ;;  %v1191_v24 = vadd.f32 %v1147_v43, %v841_v62 }
 0x1c2   : > { %v1357_v38 = vpop.f32.mrf.mxu3 }
 0x1c3   : > { %v1401_v19 = vadd.f32 %v1357_v38, %v1191_v24 }
 0x1c5   : > { %v842_v35 = vpop.f32.mrf.mxu1  ;;  %v1581_v49 = vpop.f32.mrf.mxu0  ;;  %v7271_v9 = vadd.f32 %v1579_v40, %v1401_v19  ;;  %v8431_v19 = vld [vmem:[#allocation76_spill] sm:$0xff] }
 0x1c6   : > { %v843_v34 = vadd.f32 %v842_v35, %v8420_v46 }
 0x1c7   : > { %8419 = vst [vmem:[#allocation21_spill] sm:$0xff] %v7271_v9  ;;  %v1149_v28 = vpop.f32.mrf.mxu2 }
 0x1c8   : > { %v1192_v54 = vadd.f32 %v1149_v28, %v843_v34  ;;  %v8434_v34 = vld [vmem:[#allocation86_spill] sm:$0xff] }
 0x1ca   : > { %v1359_v7 = vpop.f32.mrf.mxu3 }
 0x1cb   : > { %v1402_v32 = vadd.f32 %v1359_v7, %v1192_v54  ;;  %v8436_v54 = vld [vmem:[#allocation63_spill] sm:$0xff] }
 0x1cc   : > { %5107 = vmatmul.msk.bf16.gmra.mxu2 %vm567_vm1, %v8424_v29  ;;  %v8437_v7 = vld [vmem:[#allocation87_spill] sm:$0xff] }
 0x1cd   : > { %v845_v56 = vpop.f32.mrf.mxu1  ;;  %v1584_v52 = vpop.f32.mrf.mxu0  ;;  %v7280_v11 = vadd.f32 %v1581_v49, %v1402_v32  ;;  %v8432_v49 = vld [vmem:[#allocation74_spill] sm:$0xff]  ;;  %v8438_v32 = vld [vmem:[#allocation83_spill] sm:$0xff] }
 0x1ce   : > { %v846_v39 = vadd.f32 %v845_v56, %v8428_v14  ;;  %v8433_v46 = vpack.c.bf16 %v8431_v19, %v8432_v49  ;;  %v273_v56 = vld [vmem:[%s8135_s0 + $0x110] sm:$0xff]  ;;  %v2008_v14 = vrot.slane %v274_v36, 1  ;;  %v8442_v19 = vld [vmem:[#allocation84_spill] sm:$0xff] }
 0x1cf   : > { %8425 = vst [vmem:[#allocation28_spill] sm:$0xff] %v7280_v11  ;;  %5141 = vmatmul.msk.bf16.gmra.mxu3 %vm567_vm1, %v8426_v1  ;;  %v1152_v25 = vpop.f32.mrf.mxu2  ;;  %v2007_v1 = vrot.slane %v273_v56, 1 }
 0x1d0   : > { %5073 = vmatmul.msk.bf16.gmra.mxu1 %vm567_vm1, %v8423_v12  ;;  %5175 = vmatmul.msk.bf16.gmra.mxu0 %vm567_vm1, %v8427_v26  ;;  %v1193_v31 = vadd.f32 %v1152_v25, %v846_v39 }
 0x1d2   : > { %v1362_v40 = vpop.f32.mrf.mxu3 }
 0x1d3   : > { %v1403_v53 = vadd.f32 %v1362_v40, %v1193_v31  ;;  %v2169_v31 = vrot.slane %v273_v56, 2  ;;  %v2170_v40 = vrot.slane %v274_v36, 2 }
 0x1d5   : > { %v847_v57 = vpop.f32.mrf.mxu1  ;;  %v1586_v22 = vpop.f32.mrf.mxu0  ;;  %v7287_v8 = vadd.f32 %v1584_v52, %v1403_v53  ;;  %v2009_v53 = vsel %vm397_vm0, %v2007_v1, %v2008_v14 }
 0x1d6   : > { %v848_v61 = vadd.f32 %v847_v57, %v8430_v18  ;;  %v2015_v49 = vpack.c.bf16 %v2009_v53, %v8442_v19  ;;  %v8452_v19 = vld [vmem:[#allocation43_spill] sm:$0xff] }
 0x1d7   : > { %8429 = vst [vmem:[#allocation31_spill] sm:$0xff] %v7287_v8  ;;  %v1154_v63 = vpop.f32.mrf.mxu2 }
 0x1d8   : > { %v1194_v62 = vadd.f32 %v1154_v63, %v848_v61  ;;  %v2171_v61 = vsel %vm860_vm2, %v2169_v31, %v2170_v40  ;;  %v8449_v40 = vld [vmem:[#allocation10_spill] sm:$0xff] }
 0x1da   : > { %v1364_v43 = vpop.f32.mrf.mxu3 }
 0x1db   : > { %v1404_v38 = vadd.f32 %v1364_v43, %v1194_v62 }
 0x1dc   : > { %5108 = vmatmul.msk.bf16.gmra.mxu2 %vm567_vm1, %v8434_v34  ;;  %v8443_v34 = vld [vmem:[#allocation78_spill] sm:$0xff] }
 0x1dd   : > { %v850_v24 = vpop.f32.mrf.mxu1  ;;  %v1589_v35 = vpop.f32.mrf.mxu0  ;;  %v7296_v28 = vadd.f32 %v1586_v22, %v1404_v38  ;;  %v8440_v22 = vld [vmem:[#allocation85_spill] sm:$0xff] }
 0x1de   : > { %v851_v52 = vadd.f32 %v850_v24, %v8438_v32  ;;  %v8441_v24 = vld [vmem:[#allocation75_spill] sm:$0xff] }
 0x1df   : > { %8435 = vst [vmem:[#allocation30_spill] sm:$0xff] %v7296_v28  ;;  %5142 = vmatmul.msk.bf16.gmra.mxu3 %vm567_vm1, %v8436_v54  ;;  %v1157_v33 = vpop.f32.mrf.mxu2  ;;  %v1849_v38 = vpack.c.bf16 %v273_v56, %v8441_v24  ;;  %v2177_v54 = vpack.c.bf16 %v2171_v61, %v8443_v34  ;;  %v8447_v56 = vld [vmem:[#allocation88_spill] sm:$0xff]  ;;  %v8450_v61 = vld [vmem:[#allocation11_spill] sm:$0xff] }
 0x1e0   : > { %5074 = vmatmul.msk.bf16.gmra.mxu1 %vm567_vm1, %v8433_v46  ;;  %5176 = vmatmul.msk.bf16.gmra.mxu0 %vm567_vm1, %v8437_v7  ;;  %v1195_v12 = vadd.f32 %v1157_v33, %v851_v52  ;;  %v8460_v28 = vld [vmem:[#allocation27_spill] sm:$0xff] }
 0x1e2   : > { %v1367_v29 = vpop.f32.mrf.mxu3 }
 0x1e3   : > { %v1405_v39 = vadd.f32 %v1367_v29, %v1195_v12 }
 0x1e5   : > { %v852_v26 = vpop.f32.mrf.mxu1  ;;  %v1591_v25 = vpop.f32.mrf.mxu0  ;;  %v7309_v57 = vadd.f32 %v1589_v35, %v1405_v39  ;;  %v8444_v35 = vld [vmem:[#allocation77_spill] sm:$0xff] }
 0x1e6   : > { %v853_v18 = vadd.f32 %v852_v26, %v8440_v22  ;;  %v8445_v52 = vpack.c.bf16 %v8443_v34, %v8444_v35 }
 0x1e7   : > { %8439 = vst [vmem:[#allocation35_spill] sm:$0xff] %v7309_v57  ;;  %v1159_v63 = vpop.f32.mrf.mxu2 }
 0x1e8   : > { %v1196_v62 = vadd.f32 %v1159_v63, %v853_v18  ;;  %v1647_v63 = vpack.c.bf16 %v6933_v4, %v8450_v61 }
 0x1ea   : > { %v1369_v43 = vpop.f32.mrf.mxu3 }
 0x1eb   : > { %v1406_v7 = vadd.f32 %v1369_v43, %v1196_v62 }
 0x1ec   : > { %5109 = vmatmul.msk.bf16.gmra.mxu2 %vm567_vm1, %v1849_v38 }
 0x1ed   : > { %v855_v46 = vpop.f32.mrf.mxu1  ;;  %v1594_v32 = vpop.f32.mrf.mxu0  ;;  %v7322_v36 = vadd.f32 %v1591_v25, %v1406_v7 }
 0x1ee   : > { %v856_v33 = vadd.f32 %v855_v46, %v8447_v56  ;;  %v8454_v46 = vld [vmem:[#allocation12_spill] sm:$0xff] }
 0x1ef   : > { %8446 = vst [vmem:[#allocation46_spill] sm:$0xff] %v7322_v36  ;;  %5143 = vmatmul.msk.bf16.gmra.mxu3 %vm567_vm1, %v2015_v49  ;;  %v1162_v12 = vpop.f32.mrf.mxu2  ;;  %v8453_v49 = vld [vmem:[#allocation29_spill] sm:$0xff] }
 0x1f0   : > { %5075 = vmatmul.msk.bf16.gmra.mxu1 %vm567_vm1, %v8445_v52  ;;  %5177 = vmatmul.msk.bf16.gmra.mxu0 %vm567_vm1, %v2177_v54  ;;  %v1197_v29 = vadd.f32 %v1162_v12, %v856_v33  ;;  %v7345_v52 = vld [vmem:[%s8137_s2] ss:$0 sm:$0xff]  ;;  %v8455_v12 = vld [vmem:[#allocation18_spill] sm:$0xff] }
 0x1f2   : > { %v1372_v1 = vpop.f32.mrf.mxu3 }
 0x1f3   : > { %v1407_v14 = vadd.f32 %v1372_v1, %v1197_v29 }
 0x1f5   : > { %v857_v26 = vpop.f32.mrf.mxu1  ;;  %v1596_v39 = vpop.f32.mrf.mxu0  ;;  %v7327_v31 = vadd.f32 %v1594_v32, %v1407_v14 }
 0x1f6   : > { %v858_v53 = vadd.f32 %v857_v26, %v8449_v40 }
 0x1f7   : > { %8448 = vst [vmem:[#allocation38_spill] sm:$0xff] %v7327_v31  ;;  %v1164_v22 = vpop.f32.mrf.mxu2 }
 0x1f8   : > { %v1198_v18 = vadd.f32 %v1164_v22, %v858_v53 }
 0x1fa   : > { %v1374_v25 = vpop.f32.mrf.mxu3 }
 0x1fb   : > { %v1408_v43 = vadd.f32 %v1374_v25, %v1198_v18 }
 0x1fc   : > { %5110 = vmatmul.msk.bf16.gmra.mxu2 %vm567_vm1, %v6940_v37 }
 0x1fd   : > { %v1737_v62 = vpop.f32.mrf.mxu1  ;;  %v2219_v24 = vpop.f32.mrf.mxu0  ;;  %v7335_v38 = vadd.f32 %v1596_v39, %v1408_v43  ;;  %v8456_v39 = vld [vmem:[#allocation23_spill] sm:$0xff] }
 0x1fe   : > { %v1817_v34 = vadd.f32 %v1737_v62, %v8454_v46  ;;  %v1648_v40 = vpack.c.bf16 %v6980_v30, %v8456_v39  ;;  %v8458_v30 = vld [vmem:[#allocation24_spill] sm:$0xff] }
 0x1ff   : > { %8451 = vst [vmem:[#allocation36_spill] sm:$0xff] %v7335_v38  ;;  %5144 = vmatmul.msk.bf16.gmra.mxu3 %vm567_vm1, %v8452_v19  ;;  %v1891_v54 = vpop.f32.mrf.mxu2 }
 0x200   : > { %5076 = vmatmul.msk.bf16.gmra.mxu1 %vm567_vm1, %v1647_v63  ;;  %5178 = vmatmul.msk.bf16.gmra.mxu0 %vm567_vm1, %v8453_v49  ;;  %v1971_v4 = vadd.f32 %v1891_v54, %v1817_v34  ;;  %v8457_v63 = vld [vmem:[#allocation58_spill] sm:$0xff] }
 0x202   : > { %v2057_v7 = vpop.f32.mrf.mxu3 }
 0x203   : > { %v2137_v35 = vadd.f32 %v2057_v7, %v1971_v4 }
 0x205   : > { %v1739_v32 = vpop.f32.mrf.mxu1  ;;  %v2221_v37 = vpop.f32.mrf.mxu0  ;;  %v2299_v56 = vadd.f32 %v2219_v24, %v2137_v35 }
 0x206   : > { %v1818_v29 = vadd.f32 %v1739_v32, %v8455_v12 }
 0x207   : > { %v2335_v33 = vadd.f32 %v7345_v52, %v2299_v56  ;;  %v1893_v1 = vpop.f32.mrf.mxu2 }
 0x208   : > { %v1972_v26 = vadd.f32 %v1893_v1, %v1818_v29 }
 0x209   : > { %v2367_v22 = vmax.f32 %v2335_v33, 0.0 }
 0x20a   : > { %v2059_v14 = vpop.f32.mrf.mxu3 }
 0x20b   : > { %v2138_v25 = vadd.f32 %v2059_v14, %v1972_v26  ;;  %v2431_v62 = vrot.slane %v2367_v22, 2  ;;  %v2432_v43 = vrot.slane %v2367_v22, 4  ;;  %v2433_v24 = vrot.slane %v2367_v22, 6 }
 0x20c   : > { %5111 = vmatmul.msk.bf16.gmra.mxu2 %vm567_vm1, %v6987_v20  ;;  %v5186_v34 = vrot.slane %v2367_v22, 9 }
 0x20d   : > { %v1742_v53 = vpop.f32.mrf.mxu1  ;;  %v2224_v18 = vpop.f32.mrf.mxu0  ;;  %v2300_v61 = vadd.f32 %v2221_v37, %v2138_v25  ;;  %v5187_v32 = vrot.slane %v2431_v62, 9  ;;  %v5188_v35 = vrot.slane %v2432_v43, 9  ;;  %v5189_v37 = vrot.slane %v2433_v24, 9 }
 0x20e   : > { %v1819_v19 = vadd.f32 %v1742_v53, %v8458_v30  ;;  %v3007_v26 = vadd.f32 %v5186_v34, %v2367_v22  ;;  %v1649_v22 = vpack.c.bf16 %v7015_v21, %v8460_v28  ;;  %v8461_v21 = vld [vmem:[#allocation64_spill] sm:$0xff] }
 0x20f   : > { %5145 = vmatmul.msk.bf16.gmra.mxu3 %vm567_vm1, %v8457_v63  ;;  %v2336_v49 = vadd.f32 %v7345_v52, %v2300_v61  ;;  %v1896_v46 = vpop.f32.mrf.mxu2  ;;  %v3008_v61 = vadd.f32 %v5187_v32, %v2431_v62  ;;  %v3009_v63 = vadd.f32 %v5188_v35, %v2432_v43  ;;  %v3010_v30 = vadd.f32 %v5189_v37, %v2433_v24 }
 0x210   : > { %5077 = vmatmul.msk.bf16.gmra.mxu1 %vm567_vm1, %v1648_v40  ;;  %5179 = vmatmul.msk.bf16.gmra.mxu0 %vm567_vm1, %v6991_v13  ;;  %v1973_v54 = vadd.f32 %v1896_v46, %v1819_v19 }
 0x211   : > { %v2368_v7 = vmax.f32 %v2336_v49, 0.0 }
 0x212   : > { %v2062_v4 = vpop.f32.mrf.mxu3 }
 0x213   : > { %v2139_v56 = vadd.f32 %v2062_v4, %v1973_v54  ;;  %v2434_v12 = vrot.slane %v2368_v7, 2  ;;  %v2435_v13 = vrot.slane %v2368_v7, 4  ;;  %v2436_v29 = vrot.slane %v2368_v7, 6  ;;  %v8459_v4 = vld [vmem:[#allocation26_spill] sm:$0xff] }
 0x214   : > { %v5190_v1 = vrot.slane %v2368_v7, 9 }
 0x215   : > { %v1744_v20 = vpop.f32.mrf.mxu1  ;;  %v2226_v33 = vpop.f32.mrf.mxu0  ;;  %v2301_v14 = vadd.f32 %v2224_v18, %v2139_v56  ;;  %v5191_v39 = vrot.slane %v2434_v12, 9  ;;  %v5192_v40 = vrot.slane %v2435_v13, 9  ;;  %v5193_v53 = vrot.slane %v2436_v29, 9 }
 0x216   : > { %v3011_v25 = vadd.f32 %v5190_v1, %v2368_v7  ;;  %v1820_v36 = vadd.f32 %v1744_v20, %v8459_v4 }
 0x217   : > { %v3012_v19 = vadd.f32 %v5191_v39, %v2434_v12  ;;  %v3013_v49 = vadd.f32 %v5192_v40, %v2435_v13  ;;  %v3014_v46 = vadd.f32 %v5193_v53, %v2436_v29  ;;  %v1898_v31 = vpop.f32.mrf.mxu2  ;;  %v2337_v54 = vadd.f32 %v7345_v52, %v2301_v14 }
 0x218   : > { %v3135_v38 = vadd.f32 %v3011_v25, %v3007_v26  ;;  %v1974_v24 = vadd.f32 %v1898_v31, %v1820_v36 }
 0x219   : > { %v3136_v18 = vadd.f32 %v3012_v19, %v3008_v61  ;;  %v3137_v34 = vadd.f32 %v3013_v49, %v3009_v63  ;;  %v7364_v56 = vadd.f32 %v3014_v46, %v3010_v30  ;;  %v2369_v37 = vmax.f32 %v2337_v54, 0.0  ;;  %v8462_v63 = vld [vmem:[#allocation33_spill] sm:$0xff] }
 0x21a   : > { %v2064_v57 = vpop.f32.mrf.mxu3  ;;  %v3199_v62 = vpack.c.bf16 %v3135_v38, %v3135_v38 }
 0x21b   : > { %v3200_v20 = vpack.c.bf16 %v3136_v18, %v3136_v18  ;;  %v2140_v28 = vadd.f32 %v2064_v57, %v1974_v24  ;;  %v2437_v29 = vrot.slane %v2369_v37, 2  ;;  %v2439_v14 = vrot.slane %v2369_v37, 6  ;;  %v8463_v57 = vld [vmem:[#allocation34_spill] sm:$0xff]  ;;  %v8464_v24 = vld [vmem:[#allocation39_spill] sm:$0xff] }
 0x21c   : > { %v3265_v32 = vrot.slane %v3199_v62, 3  ;;  %5112 = vmatmul.msk.bf16.gmra.mxu2 %vm567_vm1, %v7022_v3  ;;  %v2438_v3 = vrot.slane %v2369_v37, 4  ;;  %v3201_v53 = vpack.c.bf16 %v3137_v34, %v3137_v34  ;;  %v5194_v25 = vrot.slane %v2369_v37, 9 }
 0x21d   : > { %v1747_v43 = vpop.f32.mrf.mxu1  ;;  %v2229_v7 = vpop.f32.mrf.mxu0  ;;  %v2302_v38 = vadd.f32 %v2226_v33, %v2140_v28  ;;  %v3295_v13 = vrot.slane %v3200_v20, 3  ;;  %v1650_v30 = vpack.c.bf16 %v8463_v57, %v8462_v63  ;;  %v5195_v19 = vrot.slane %v2437_v29, 9 }
 0x21e   : > { %v3270_v35 = vsel %vm3267_vm3, %v3199_v62, %v3265_v32  ;;  %v1821_v36 = vadd.f32 %v1747_v43, %v7012_v59  ;;  %v5196_v49 = vrot.slane %v2438_v3, 9  ;;  %v5197_v54 = vrot.slane %v2439_v14, 9 }
 0x21f   : > { %5146 = vmatmul.msk.bf16.gmra.mxu3 %vm567_vm1, %v8461_v21  ;;  %3274 = vst [vmem:[#allocation1] ss:$4 sm:$0xff] %v3270_v35  ;;  %v1901_v31 = vpop.f32.mrf.mxu2  ;;  %v2338_v39 = vadd.f32 %v7345_v52, %v2302_v38  ;;  %v3299_v33 = vsel %vm3267_vm3, %v3200_v20, %v3295_v13  ;;  %v3323_v62 = vrot.slane %v3201_v53, 3  ;;  %v3015_v34 = vadd.f32 %v5194_v25, %v2369_v37 }
 0x220   : > { %5078 = vmatmul.msk.bf16.gmra.mxu1 %vm567_vm1, %v1649_v22  ;;  %5180 = vmatmul.msk.bf16.gmra.mxu0 %vm567_vm1, %v7026_v55  ;;  %v1975_v1 = vadd.f32 %v1901_v31, %v1821_v36  ;;  %v3016_v38 = vadd.f32 %v5195_v19, %v2437_v29  ;;  %v8465_v29 = vld [vmem:[#allocation40_spill] sm:$0xff] }
 0x221   : > { %v2370_v55 = vmax.f32 %v2338_v39, 0.0  ;;  %v3018_v39 = vadd.f32 %v5197_v54, %v2439_v14 }
 0x222   : > { %v2067_v12 = vpop.f32.mrf.mxu3 }
 0x223   : > { %v2141_v61 = vadd.f32 %v2067_v12, %v1975_v1  ;;  %v2440_v4 = vrot.slane %v2370_v55, 2  ;;  %v2441_v22 = vrot.slane %v2370_v55, 4  ;;  %v2442_v18 = vrot.slane %v2370_v55, 6 }
 0x224   : > { %v5198_v43 = vrot.slane %v2370_v55, 9  ;;  %v3017_v12 = vadd.f32 %v5196_v49, %v2438_v3  ;;  %v3202_v3 = vpack.c.bf16 %v7364_v56, %v7364_v56  ;;  %v8466_v49 = vld [vmem:[#allocation22_spill] sm:$0xff] }
 0x225   : > { %v1749_v26 = vpop.f32.mrf.mxu1  ;;  %v2231_v40 = vpop.f32.mrf.mxu0  ;;  %v2303_v46 = vadd.f32 %v2229_v7, %v2141_v61  ;;  %v5199_v21 = vrot.slane %v2440_v4, 9  ;;  %v5200_v28 = vrot.slane %v2441_v22, 9  ;;  %v5201_v36 = vrot.slane %v2442_v18, 9 }
 0x226   : > { %v7378_v59 = vld [vmem:[#allocation1] sm:$0xf]  ;;  %v1822_v32 = vadd.f32 %v1749_v26, %v8464_v24  ;;  %v3019_v7 = vadd.f32 %v5198_v43, %v2370_v55  ;;  %v3327_v55 = vsel %vm3267_vm3, %v3201_v53, %v3323_v62  ;;  %v8468_v43 = vld [vmem:[#allocation37_spill] sm:$0xff] }
 0x227   : > { %3303 = vst [vmem:[#allocation1] ss:$4 sm:$0xff] %v3299_v33  ;;  %v1903_v35 = vpop.f32.mrf.mxu2  ;;  %v2339_v31 = vadd.f32 %v7345_v52, %v2303_v46  ;;  %v3020_v61 = vadd.f32 %v5199_v21, %v2440_v4  ;;  %v3021_v63 = vadd.f32 %v5200_v28, %v2441_v22  ;;  %v3022_v57 = vadd.f32 %v5201_v36, %v2442_v18  ;;  %v8467_v46 = vld [vmem:[#allocation47_spill] sm:$0xff] }
 0x228   : > { %v1976_v13 = vadd.f32 %v1903_v35, %v1822_v32  ;;  %v3139_v25 = vadd.f32 %v3019_v7, %v3015_v34  ;;  %v3351_v18 = vrot.slane %v3202_v3, 3 }
 0x229   : > { %v7383_v33 = vadd.f32 %v3020_v61, %v3016_v38  ;;  %v7385_v26 = vadd.f32 %v3021_v63, %v3017_v12  ;;  %v7387_v24 = vadd.f32 %v3022_v57, %v3018_v39  ;;  %v2371_v8 = vmax.f32 %v2339_v31, 0.0  ;;  %v8469_v39 = vld [vmem:[#allocation41_spill] sm:$0xff]  ;;  %v8470_v57 = vld [vmem:[#allocation55_spill] sm:$0xff] }
 0x22a   : > { %v2069_v20 = vpop.f32.mrf.mxu3  ;;  %v3203_v35 = vpack.c.bf16 %v3139_v25, %v3139_v25  ;;  %v3355_v12 = vsel %vm3267_vm3, %v3202_v3, %v3351_v18 }
 0x22b   : > { %v2142_v19 = vadd.f32 %v2069_v20, %v1976_v13  ;;  %v2444_v4 = vrot.slane %v2371_v8, 4  ;;  %v2445_v21 = vrot.slane %v2371_v8, 6  ;;  %v5202_v53 = vrot.slane %v2371_v8, 9 }
 0x22c   : > { %5113 = vmatmul.msk.bf16.gmra.mxu2 %vm567_vm1, %v8465_v29 }
 0x22d   : > { %v1752_v1 = vpop.f32.mrf.mxu1  ;;  %v2234_v37 = vpop.f32.mrf.mxu0  ;;  %v2304_v34 = vadd.f32 %v2231_v40, %v2142_v19  ;;  %v5204_v20 = vrot.slane %v2444_v4, 9  ;;  %v1651_v40 = vpack.c.bf16 %v7086_v51, %v8469_v39  ;;  %v5205_v61 = vrot.slane %v2445_v21, 9 }
 0x22e   : > { %v7394_v14 = vld [vmem:[#allocation1] sm:$0xf]  ;;  %v1823_v56 = vadd.f32 %v1752_v1, %v8468_v43  ;;  %v3379_v1 = vrot.slane %v3203_v35, 3  ;;  %v3023_v63 = vadd.f32 %v5202_v53, %v2371_v8 }
 0x22f   : > { %5147 = vmatmul.msk.bf16.gmra.mxu3 %vm567_vm1, %v8466_v49  ;;  %3331 = vst [vmem:[#allocation1] ss:$4 sm:$0xff] %v3327_v55  ;;  %v1906_v54 = vpop.f32.mrf.mxu2  ;;  %v2340_v28 = vadd.f32 %v7345_v52, %v2304_v34  ;;  %v3025_v34 = vadd.f32 %v5204_v20, %v2444_v4 }
 0x230   : > { %5079 = vmatmul.msk.bf16.gmra.mxu1 %vm567_vm1, %v1650_v30  ;;  %5181 = vmatmul.msk.bf16.gmra.mxu0 %vm567_vm1, %v8467_v46  ;;  %v2443_v30 = vrot.slane %v2371_v8, 2  ;;  %v1977_v36 = vadd.f32 %v1906_v54, %v1823_v56  ;;  %v3383_v20 = vsel %vm3267_vm3, %v3203_v35, %v3379_v1  ;;  %v3205_v35 = vpack.c.bf16 %v7385_v26, %v7385_v26 }
 0x231   : > { %v2372_v7 = vmax.f32 %v2340_v28, 0.0 }
 0x232   : > { %v2072_v22 = vpop.f32.mrf.mxu3  ;;  %v5203_v31 = vrot.slane %v2443_v30, 9 }
 0x233   : > { %v2143_v13 = vadd.f32 %v2072_v22, %v1977_v36  ;;  %v2446_v29 = vrot.slane %v2372_v7, 2  ;;  %v2447_v55 = vrot.slane %v2372_v7, 4  ;;  %v2448_v19 = vrot.slane %v2372_v7, 6 }
 0x234   : > { %v5206_v49 = vrot.slane %v2372_v7, 9  ;;  %v3024_v54 = vadd.f32 %v5203_v31, %v2443_v30  ;;  %v8471_v31 = vld [vmem:[#allocation50_spill] sm:$0xff] }
 0x235   : > { %v1754_v32 = vpop.f32.mrf.mxu1  ;;  %v2236_v62 = vpop.f32.mrf.mxu0  ;;  %v2305_v43 = vadd.f32 %v2234_v37, %v2143_v13  ;;  %v5207_v22 = vrot.slane %v2446_v29, 9  ;;  %v5208_v56 = vrot.slane %v2447_v55, 9  ;;  %v5209_v28 = vrot.slane %v2448_v19, 9 }
 0x236   : > { %v7403_v38 = vld [vmem:[#allocation1] sm:$0xf]  ;;  %v1824_v25 = vadd.f32 %v1754_v32, %v8470_v57  ;;  %v3027_v51 = vadd.f32 %v5206_v49, %v2372_v7  ;;  %v3204_v37 = vpack.c.bf16 %v7383_v33, %v7383_v33  ;;  %v8474_v33 = vld [vmem:[#allocation49_spill] sm:$0xff] }
 0x237   : > { %3359 = vst [vmem:[#allocation1] ss:$4 sm:$0xff] %v3355_v12  ;;  %v1908_v46 = vpop.f32.mrf.mxu2  ;;  %v3026_v12 = vadd.f32 %v5205_v61, %v2445_v21  ;;  %v2341_v8 = vadd.f32 %v7345_v52, %v2305_v43  ;;  %v3028_v57 = vadd.f32 %v5207_v22, %v2446_v29  ;;  %v3029_v11 = vadd.f32 %v5208_v56, %v2447_v55  ;;  %v8473_v61 = vld [vmem:[#allocation44_spill] sm:$0xff] }
 0x238   : > { %v1978_v3 = vadd.f32 %v1908_v46, %v1824_v25  ;;  %v3030_v9 = vadd.f32 %v5209_v28, %v2448_v19  ;;  %v7411_v30 = vadd.f32 %v3027_v51, %v3023_v63  ;;  %v3407_v1 = vrot.slane %v3204_v37, 3  ;;  %v8476_v56 = vld [vmem:[#allocation48_spill] sm:$0xff] }
 0x239   : > { %v2373_v4 = vmax.f32 %v2341_v8, 0.0  ;;  %v7423_v7 = vadd.f32 %v3029_v11, %v3025_v34  ;;  %v1652_v28 = vpack.c.bf16 %v7121_v41, %v8476_v56 }
 0x23a   : > { %v2074_v18 = vpop.f32.mrf.mxu3  ;;  %v7425_v13 = vadd.f32 %v3030_v9, %v3026_v12  ;;  %v8477_v12 = vld [vmem:[#allocation14_spill] sm:$0xff] }
 0x23b   : > { %v2144_v53 = vadd.f32 %v2074_v18, %v1978_v3  ;;  %v2449_v25 = vrot.slane %v2373_v4, 2  ;;  %v2450_v29 = vrot.slane %v2373_v4, 4  ;;  %v2451_v19 = vrot.slane %v2373_v4, 6 }
 0x23c   : > { %5114 = vmatmul.msk.bf16.gmra.mxu2 %vm567_vm1, %v8471_v31  ;;  %v5210_v9 = vrot.slane %v2373_v4, 9  ;;  %v3435_v18 = vrot.slane %v3205_v35, 3 }
 0x23d   : > { %v1757_v36 = vpop.f32.mrf.mxu1  ;;  %v2239_v39 = vpop.f32.mrf.mxu0  ;;  %v5212_v34 = vrot.slane %v2450_v29, 9  ;;  %v5213_v26 = vrot.slane %v2451_v19, 9 }
 0x23e   : > { %v1825_v32 = vadd.f32 %v1757_v36, %v7083_v60  ;;  %v7418_v21 = vld [vmem:[#allocation1] sm:$0xf]  ;;  %v7421_v60 = vadd.f32 %v3028_v57, %v3024_v54  ;;  %v5211_v54 = vrot.slane %v2449_v25, 9  ;;  %v3031_v51 = vadd.f32 %v5210_v9, %v2373_v4 }
 0x23f   : > { %8472 = vst [vmem:[#allocation52_spill] sm:$0xff] %v7418_v21  ;;  %5148 = vmatmul.msk.bf16.gmra.mxu3 %vm567_vm1, %v8473_v61  ;;  %v1911_v63 = vpop.f32.mrf.mxu2  ;;  %v3034_v56 = vadd.f32 %v5213_v26, %v2451_v19 }
 0x240   : > { %5080 = vmatmul.msk.bf16.gmra.mxu1 %vm567_vm1, %v1651_v40  ;;  %3387 = vst [vmem:[#allocation1] ss:$4 sm:$0xff] %v3383_v20  ;;  %5182 = vmatmul.msk.bf16.gmra.mxu0 %vm567_vm1, %v8474_v33  ;;  %v2306_v40 = vadd.f32 %v2236_v62, %v2144_v53  ;;  %v1979_v43 = vadd.f32 %v1911_v63, %v1825_v32 }
 0x241   : > { %v3411_v62 = vsel %vm3267_vm3, %v3204_v37, %v3407_v1  ;;  %v3032_v61 = vadd.f32 %v5211_v54, %v2449_v25  ;;  %v3033_v33 = vadd.f32 %v5212_v34, %v2450_v29  ;;  %v8479_v54 = vld [vmem:[#allocation17_spill] sm:$0xff]  ;;  %v3439_v34 = vsel %vm3267_vm3, %v3205_v35, %v3435_v18 }
 0x242   : > { %v2077_v55 = vpop.f32.mrf.mxu3  ;;  %v2342_v46 = vadd.f32 %v7345_v52, %v2306_v40  ;;  %v3207_v35 = vpack.c.bf16 %v7411_v30, %v7411_v30 }
 0x243   : > { %v2145_v36 = vadd.f32 %v2077_v55, %v1979_v43 }
 0x244   : > { %v2374_v22 = vmax.f32 %v2342_v46, 0.0  ;;  %v3491_v30 = vrot.slane %v3207_v35, 3 }
 0x245   : > { %v1759_v11 = vpop.f32.mrf.mxu1  ;;  %v2241_v49 = vpop.f32.mrf.mxu0  ;;  %v2307_v40 = vadd.f32 %v2239_v39, %v2145_v36  ;;  %v3206_v39 = vpack.c.bf16 %v7387_v24, %v7387_v24  ;;  %v8481_v24 = vld [vmem:[#allocation16_spill] sm:$0xff] }
 0x246   : > { %v1826_v8 = vadd.f32 %v1759_v11, %v8477_v12  ;;  %v2452_v53 = vrot.slane %v2374_v22, 2  ;;  %v2453_v57 = vrot.slane %v2374_v22, 4  ;;  %v2454_v31 = vrot.slane %v2374_v22, 6  ;;  %v8478_v11 = vld [vmem:[#allocation20_spill] sm:$0xff] }
 0x247   : > { %v7434_v3 = vld [vmem:[#allocation1] sm:$0xf]  ;;  %v5214_v20 = vrot.slane %v2374_v22, 9  ;;  %v1913_v32 = vpop.f32.mrf.mxu2  ;;  %v2343_v4 = vadd.f32 %v7345_v52, %v2307_v40 }
 0x248   : > { %8475 = vst [vmem:[#allocation51_spill] sm:$0xff] %v7434_v3  ;;  %v1980_v37 = vadd.f32 %v1913_v32, %v1826_v8  ;;  %v5215_v1 = vrot.slane %v2452_v53, 9  ;;  %v5216_v46 = vrot.slane %v2453_v57, 9  ;;  %v5217_v3 = vrot.slane %v2454_v31, 9 }
 0x249   : > { %3415 = vst [vmem:[#allocation1] ss:$4 sm:$0xff] %v3411_v62  ;;  %v3035_v41 = vadd.f32 %v5214_v20, %v2374_v22  ;;  %v2375_v29 = vmax.f32 %v2343_v4, 0.0 }
 0x24a   : > { %v2079_v63 = vpop.f32.mrf.mxu3  ;;  %v3036_v12 = vadd.f32 %v5215_v1, %v2452_v53  ;;  %v3037_v21 = vadd.f32 %v5216_v46, %v2453_v57  ;;  %v3038_v15 = vadd.f32 %v5217_v3, %v2454_v31  ;;  %v3463_v31 = vrot.slane %v3206_v39, 3 }
 0x24b   : > { %v2146_v55 = vadd.f32 %v2079_v63, %v1980_v37  ;;  %v7442_v25 = vadd.f32 %v3035_v41, %v3031_v51  ;;  %v8480_v51 = vld [vmem:[#allocation59_spill] sm:$0xff]  ;;  %v2455_v8 = vrot.slane %v2375_v29, 2  ;;  %v2456_v53 = vrot.slane %v2375_v29, 4  ;;  %v8482_v37 = vld [vmem:[#allocation25_spill] sm:$0xff] }
 0x24c   : > { %5115 = vmatmul.msk.bf16.gmra.mxu2 %vm567_vm1, %v8479_v54  ;;  %v7452_v22 = vadd.f32 %v3036_v12, %v3032_v61  ;;  %v7454_v26 = vadd.f32 %v3037_v21, %v3033_v33  ;;  %v7456_v3 = vadd.f32 %v3038_v15, %v3034_v56  ;;  %v2457_v18 = vrot.slane %v2375_v29, 6 }
 0x24d   : > { %v1762_v62 = vpop.f32.mrf.mxu1  ;;  %v2244_v43 = vpop.f32.mrf.mxu0  ;;  %v5218_v15 = vrot.slane %v2375_v29, 9  ;;  %v5219_v61 = vrot.slane %v2455_v8, 9  ;;  %v5220_v33 = vrot.slane %v2456_v53, 9  ;;  %v3467_v1 = vsel %vm3267_vm3, %v3206_v39, %v3463_v31 }
 0x24e   : > { %v1827_v9 = vadd.f32 %v1762_v62, %v8478_v11  ;;  %v7471_v46 = vpack.c.bf16 %v7421_v60, %v7421_v60  ;;  %v5221_v62 = vrot.slane %v2457_v18, 9 }
 0x24f   : > { %5149 = vmatmul.msk.bf16.gmra.mxu3 %vm567_vm1, %v8480_v51  ;;  %v1916_v36 = vpop.f32.mrf.mxu2  ;;  %v3039_v56 = vadd.f32 %v5218_v15, %v2375_v29  ;;  %v3041_v39 = vadd.f32 %v5220_v33, %v2456_v53 }
 0x250   : > { %5081 = vmatmul.msk.bf16.gmra.mxu1 %vm567_vm1, %v1652_v28  ;;  %v7449_v19 = vld [vmem:[#allocation1] sm:$0xf]  ;;  %5183 = vmatmul.msk.bf16.gmra.mxu0 %vm567_vm1, %v8481_v24  ;;  %v2308_v28 = vadd.f32 %v2241_v49, %v2146_v55  ;;  %v1981_v40 = vadd.f32 %v1916_v36, %v1827_v9  ;;  %v8484_v55 = vld [vmem:[#allocation15_spill] sm:$0xff]  ;;  %v3040_v24 = vadd.f32 %v5219_v61, %v2455_v8 }
 0x251   : > { %3443 = vst [vmem:[#allocation1] ss:$4 sm:$0xff] %v3439_v34  ;;  %v1653_v11 = vpack.c.bf16 %v7162_v0, %v8484_v55  ;;  %v3042_v29 = vadd.f32 %v5221_v62, %v2457_v18  ;;  %v310_v18 = vld [vmem:[%s8135_s0 + $0x238] sm:$0x3]  ;;  %v3495_v61 = vsel %vm3267_vm3, %v3207_v35, %v3491_v30 }
 0x252   : > { %v2082_v57 = vpop.f32.mrf.mxu3  ;;  %v2344_v32 = vadd.f32 %v7345_v52, %v2308_v28 }
 0x253   : > { %v2147_v4 = vadd.f32 %v2082_v57, %v1981_v40 }
 0x254   : > { %v2376_v41 = vmax.f32 %v2344_v32, 0.0 }
 0x255   : > { %v1764_v21 = vpop.f32.mrf.mxu1  ;;  %v2246_v20 = vpop.f32.mrf.mxu0  ;;  %v2309_v28 = vadd.f32 %v2244_v43, %v2147_v4  ;;  %v7484_v43 = vld [vmem:[%s8135_s0 + $0x230] sm:$0xff] }
 0x256   : > { %v1828_v63 = vadd.f32 %v1764_v21, %v8482_v37  ;;  %v2458_v9 = vrot.slane %v2376_v41, 2  ;;  %v2459_v12 = vrot.slane %v2376_v41, 4  ;;  %v2460_v54 = vrot.slane %v2376_v41, 6 }
 0x257   : > { %v5222_v34 = vrot.slane %v2376_v41, 9  ;;  %v1918_v51 = vpop.f32.mrf.mxu2  ;;  %v2345_v57 = vadd.f32 %v7345_v52, %v2309_v28 }
 0x258   : > { %v7466_v49 = vld [vmem:[#allocation1] sm:$0xf]  ;;  %v1982_v36 = vadd.f32 %v1918_v51, %v1828_v63  ;;  %v5223_v31 = vrot.slane %v2458_v9, 9  ;;  %v5224_v21 = vrot.slane %v2459_v12, 9  ;;  %v5225_v32 = vrot.slane %v2460_v54, 9 }
 0x259   : > { %8483 = vst [vmem:[#allocation53_spill] sm:$0xff] %v7466_v49  ;;  %v3043_v37 = vadd.f32 %v5222_v34, %v2376_v41  ;;  %v2377_v33 = vmax.f32 %v2345_v57, 0.0  ;;  %v7496_v63 = vld [vmem:[%s8135_s0 + $0x220] sm:$0xff] }
 0x25a   : > { %3471 = vst [vmem:[#allocation1] ss:$4 sm:$0xff] %v3467_v1  ;;  %v2084_v60 = vpop.f32.mrf.mxu3  ;;  %v3044_v55 = vadd.f32 %v5223_v31, %v2458_v9  ;;  %v3045_v49 = vadd.f32 %v5224_v21, %v2459_v12  ;;  %v3046_v8 = vadd.f32 %v5225_v32, %v2460_v54  ;;  %v1634_v41 = vrot.slane %v7496_v63, 2 }
 0x25b   : > { %v2148_v15 = vadd.f32 %v2084_v60, %v1982_v36  ;;  %v7479_v53 = vadd.f32 %v3043_v37, %v3039_v56  ;;  %v2010_v9 = vrot.slane %v7484_v43, 1  ;;  %v2011_v12 = vrot.slane %v310_v18, 1 }
 0x25c   : > { %5116 = vmatmul.msk.bf16.gmra.mxu2 %vm567_vm1, %v7173_v50  ;;  %v7501_v56 = vadd.f32 %v3044_v55, %v3040_v24  ;;  %v7503_v4 = vadd.f32 %v3045_v49, %v3041_v39  ;;  %v7505_v35 = vadd.f32 %v3046_v8, %v3042_v29  ;;  %v5730_v50 = vld [vmem:[%s8135_s0 + $0x228] sm:$0x3]  ;;  %v3209_v49 = vpack.c.bf16 %v7423_v7, %v7423_v7 }
 0x25d   : > { %v1767_v1 = vpop.f32.mrf.mxu1  ;;  %v7477_v40 = vpop.f32.mrf.mxu0  ;;  %v1635_v30 = vrot.slane %v5730_v50, 2  ;;  %v3520_v54 = vrot.slane %v7471_v46, 3  ;;  %v2462_v51 = vrot.slane %v2377_v33, 4  ;;  %v2463_v24 = vrot.slane %v2377_v33, 6 }
 0x25e   : > { %v1829_v0 = vadd.f32 %v1767_v1, %v7159_v5  ;;  %v2310_v5 = vadd.f32 %v2246_v20, %v2148_v15  ;;  %v8486_v20 = vld [vmem:[#allocation65_spill] sm:$0xff]  ;;  %v2172_v60 = vrot.slane %v7484_v43, 2  ;;  %v5226_v31 = vrot.slane %v2377_v33, 9 }
 0x25f   : > { %5150 = vmatmul.msk.bf16.gmra.mxu3 %vm567_vm1, %v8486_v20  ;;  %v1921_v34 = vpop.f32.mrf.mxu2  ;;  %v1636_v36 = vsel %vm860_vm2, %v1634_v41, %v1635_v30  ;;  %v2012_v32 = vsel %vm397_vm0, %v2010_v9, %v2011_v12  ;;  %v2173_v37 = vrot.slane %v310_v18, 2  ;;  %v3524_v7 = vsel %vm3267_vm3, %v7471_v46, %v3520_v54 }
 0x260   : > { %5082 = vmatmul.msk.bf16.gmra.mxu1 %vm567_vm1, %v1653_v11  ;;  %v2461_v11 = vrot.slane %v2377_v33, 2  ;;  %5184 = vmatmul.msk.bf16.gmra.mxu0 %vm567_vm1, %v7177_v23  ;;  %v3548_v1 = vrot.slane %v3209_v49, 3  ;;  %v2346_v29 = vadd.f32 %v7345_v52, %v2310_v5  ;;  %v5228_v57 = vrot.slane %v2462_v51, 9 }
 0x261   : > { %v7499_v62 = vld [vmem:[#allocation1] sm:$0xf]  ;;  %v5229_v15 = vrot.slane %v2463_v24, 9  ;;  %v1983_v55 = vadd.f32 %v1921_v34, %v1829_v0  ;;  %v1654_v20 = vpack.c.bf16 %v1636_v36, %v7165_v2  ;;  %v1850_v50 = vpack.c.bf16 %v7484_v43, %v7496_v63 }
 0x262   : > { %8485 = vst [vmem:[#allocation56_spill] sm:$0xff] %v7499_v62  ;;  %v2087_v39 = vpop.f32.mrf.mxu3  ;;  %v5227_v21 = vrot.slane %v2461_v11, 9  ;;  %v2378_v41 = vmax.f32 %v2346_v29, 0.0  ;;  %v2016_v18 = vpack.c.bf16 %v2012_v32, %v7168_v44  ;;  %v3047_v46 = vadd.f32 %v5226_v31, %v2377_v33 }
 0x263   : > { %3499 = vst [vmem:[#allocation1] ss:$4 sm:$0xff] %v3495_v61  ;;  %v2149_v9 = vadd.f32 %v2087_v39, %v1983_v55  ;;  %v2174_v5 = vsel %vm860_vm2, %v2172_v60, %v2173_v37  ;;  %v3050_v29 = vadd.f32 %v5229_v15, %v2463_v24 }
 0x264   : > { %v3048_v30 = vadd.f32 %v5227_v21, %v2461_v11  ;;  %v2464_v12 = vrot.slane %v2378_v41, 2  ;;  %v2465_v0 = vrot.slane %v2378_v41, 4  ;;  %v2466_v54 = vrot.slane %v2378_v41, 6 }
 0x265   : > { %v1769_v28 = vpop.f32.mrf.mxu1  ;;  %v2251_v23 = vpop.f32.mrf.mxu0  ;;  %v2311_v2 = vadd.f32 %v7477_v40, %v2149_v9  ;;  %v2178_v21 = vpack.c.bf16 %v2174_v5, %v1636_v36  ;;  %v3210_v40 = vpack.c.bf16 %v7425_v13, %v7425_v13 }
 0x266   : > { %v1830_v8 = vadd.f32 %v1769_v28, %v7186_v58  ;;  %v5230_v58 = vrot.slane %v2378_v41, 9  ;;  %v3049_v28 = vadd.f32 %v5228_v57, %v2462_v51  ;;  %v5231_v43 = vrot.slane %v2464_v12, 9 }
 0x267   : > { %v1923_v34 = vpop.f32.mrf.mxu2  ;;  %v5232_v63 = vrot.slane %v2465_v0, 9  ;;  %v5233_v44 = vrot.slane %v2466_v54, 9  ;;  %v2347_v11 = vadd.f32 %v7345_v52, %v2311_v2 }
 0x268   : > { %v3051_v32 = vadd.f32 %v5230_v58, %v2378_v41  ;;  %v3052_v37 = vadd.f32 %v5231_v43, %v2464_v12  ;;  %v3576_v41 = vrot.slane %v3210_v40, 3 }
 0x269   : > { %v3054_v51 = vadd.f32 %v5233_v44, %v2466_v54  ;;  %v2379_v57 = vmax.f32 %v2347_v11, 0.0 }
 0x26a   : > { %v7525_v61 = vld [vmem:[#allocation1] sm:$0xf]  ;;  %v2089_v62 = vpop.f32.mrf.mxu3  ;;  %v7535_v24 = vadd.f32 %v3051_v32, %v3047_v46  ;;  %v3580_v54 = vsel %vm3267_vm3, %v3210_v40, %v3576_v41 }
 0x26b   : > { %8487 = vst [vmem:[#allocation54_spill] sm:$0xff] %v7525_v61  ;;  %v1984_v61 = vadd.f32 %v1923_v34, %v1830_v8  ;;  %v7548_v8 = vadd.f32 %v3054_v51, %v3050_v29  ;;  %v5234_v9 = vrot.slane %v2379_v57, 9 }
 0x26c   : > { %3528 = vst [vmem:[#allocation1] ss:$4 sm:$0xff] %v3524_v7  ;;  %v3053_v7 = vadd.f32 %v5232_v63, %v2465_v0  ;;  %5117 = vmatmul.msk.bf16.gmra.mxu2 %vm567_vm1, %v1850_v50  ;;  %v3211_v50 = vpack.c.bf16 %v7442_v25, %v7442_v25 }
 0x26d   : > { %v1772_v33 = vpop.f32.mrf.mxu1  ;;  %v2150_v39 = vadd.f32 %v2089_v62, %v1984_v61  ;;  %v2254_v31 = vpop.f32.mrf.mxu0  ;;  %v7544_v62 = vadd.f32 %v3052_v37, %v3048_v30 }
 0x26e   : > { %v1831_v60 = vadd.f32 %v1772_v33, %v7191_v17  ;;  %v3552_v17 = vsel %vm3267_vm3, %v3209_v49, %v3548_v1  ;;  %v7546_v36 = vadd.f32 %v3053_v7, %v3049_v28  ;;  %v2468_v49 = vrot.slane %v2379_v57, 4 }
 0x26f   : > { %v2312_v15 = vadd.f32 %v2251_v23, %v2150_v39  ;;  %5151 = vmatmul.msk.bf16.gmra.mxu3 %vm567_vm1, %v2016_v18  ;;  %v1926_v13 = vpop.f32.mrf.mxu2  ;;  %v2467_v23 = vrot.slane %v2379_v57, 2  ;;  %v2469_v1 = vrot.slane %v2379_v57, 6  ;;  %v3604_v34 = vrot.slane %v3211_v50, 3 }
 0x270   : > { %5083 = vmatmul.msk.bf16.gmra.mxu1 %vm567_vm1, %v1654_v20  ;;  %5185 = vmatmul.msk.bf16.gmra.mxu0 %vm567_vm1, %v2178_v21  ;;  %v1985_v12 = vadd.f32 %v1926_v13, %v1831_v60  ;;  %v5236_v28 = vrot.slane %v2468_v49, 9  ;;  %v3055_v33 = vadd.f32 %v5234_v9, %v2379_v57 }
 0x271   : > { %v2348_v30 = vadd.f32 %v7345_v52, %v2312_v15  ;;  %v5235_v5 = vrot.slane %v2467_v23, 9  ;;  %v5237_v29 = vrot.slane %v2469_v1, 9 }
 0x272   : > { %v2092_v61 = vpop.f32.mrf.mxu3  ;;  %v3057_v15 = vadd.f32 %v5236_v28, %v2468_v49 }
 0x273   : > { %v7541_v55 = vld [vmem:[#allocation1] sm:$0xf]  ;;  %v2380_v58 = vmax.f32 %v2348_v30, 0.0  ;;  %v2151_v25 = vadd.f32 %v2092_v61, %v1985_v12  ;;  %v3056_v11 = vadd.f32 %v5235_v5, %v2467_v23  ;;  %v3608_v5 = vsel %vm3267_vm3, %v3211_v50, %v3604_v34 }
 0x274   : > { %3556 = vst [vmem:[#allocation1] ss:$4 sm:$0xff] %v3552_v17  ;;  %v3058_v17 = vadd.f32 %v5237_v29, %v2469_v1 }
 0x275   : > { %v1774_v20 = vpop.f32.mrf.mxu1  ;;  %v2256_v46 = vpop.f32.mrf.mxu0  ;;  %v2470_v2 = vrot.slane %v2380_v58, 2  ;;  %v2471_v43 = vrot.slane %v2380_v58, 4  ;;  %v2472_v63 = vrot.slane %v2380_v58, 6  ;;  %v5238_v44 = vrot.slane %v2380_v58, 9 }
 0x276   : > { %v1832_v18 = vadd.f32 %v1774_v20, %v7200_v16  ;;  %v2313_v39 = vadd.f32 %v2254_v31, %v2151_v25  ;;  %v3212_v31 = vpack.c.bf16 %v7452_v22, %v7452_v22  ;;  %v3213_v25 = vpack.c.bf16 %v7454_v26, %v7454_v26 }
 0x277   : > { %v1928_v32 = vpop.f32.mrf.mxu2  ;;  %v5239_v21 = vrot.slane %v2470_v2, 9  ;;  %v5240_v37 = vrot.slane %v2471_v43, 9  ;;  %v5241_v7 = vrot.slane %v2472_v63, 9  ;;  %v3059_v51 = vadd.f32 %v5238_v44, %v2380_v58 }
 0x278   : > { %v1986_v60 = vadd.f32 %v1928_v32, %v1832_v18  ;;  %v2349_v13 = vadd.f32 %v7345_v52, %v2313_v39  ;;  %v3632_v22 = vrot.slane %v3212_v31, 3 }
 0x279   : > { %v3060_v20 = vadd.f32 %v5239_v21, %v2470_v2  ;;  %v3061_v30 = vadd.f32 %v5240_v37, %v2471_v43  ;;  %v3062_v12 = vadd.f32 %v5241_v7, %v2472_v63 }
 0x27a   : > { %v2094_v16 = vpop.f32.mrf.mxu3  ;;  %v2381_v57 = vmax.f32 %v2349_v13, 0.0  ;;  %v3636_v39 = vsel %vm3267_vm3, %v3212_v31, %v3632_v22 }
 0x27b   : > { %v7556_v0 = vld [vmem:[#allocation1] sm:$0xf]  ;;  %v2152_v61 = vadd.f32 %v2094_v16, %v1986_v60  ;;  %v7567_v49 = vadd.f32 %v3060_v20, %v3056_v11  ;;  %v7569_v1 = vadd.f32 %v3061_v30, %v3057_v15  ;;  %v7571_v18 = vadd.f32 %v3062_v12, %v3058_v17 }
 0x27c   : > { %3584 = vst [vmem:[#allocation1] ss:$4 sm:$0xff] %v3580_v54  ;;  %v7560_v54 = vadd.f32 %v3059_v51, %v3055_v33  ;;  %v2473_v28 = vrot.slane %v2381_v57, 2  ;;  %v2475_v43 = vrot.slane %v2381_v57, 6  ;;  %v5242_v44 = vrot.slane %v2381_v57, 9 }
 0x27d   : > { %v1777_v40 = vpop.f32.mrf.mxu1  ;;  %v2259_v41 = vpop.f32.mrf.mxu0  ;;  %v2314_v23 = vadd.f32 %v2256_v46, %v2152_v61  ;;  %v2474_v46 = vrot.slane %v2381_v57, 4  ;;  %v3660_v60 = vrot.slane %v3213_v25, 3 }
 0x27e   : > { %v1833_v63 = vadd.f32 %v1777_v40, %v7207_v10  ;;  %v5243_v32 = vrot.slane %v2473_v28, 9  ;;  %v5245_v21 = vrot.slane %v2475_v43, 9  ;;  %v3063_v13 = vadd.f32 %v5242_v44, %v2381_v57 }
 0x27f   : > { %v1931_v58 = vpop.f32.mrf.mxu2  ;;  %v2350_v34 = vadd.f32 %v7345_v52, %v2314_v23  ;;  %v5244_v26 = vrot.slane %v2474_v46, 9  ;;  %v3664_v44 = vsel %vm3267_vm3, %v3213_v25, %v3660_v60 }
 0x280   : > { %v1987_v33 = vadd.f32 %v1931_v58, %v1833_v63  ;;  %v3064_v61 = vadd.f32 %v5243_v32, %v2473_v28 }
 0x281   : > { %v2382_v16 = vmax.f32 %v2350_v34, 0.0  ;;  %v3065_v63 = vadd.f32 %v5244_v26, %v2474_v46  ;;  %v3066_v34 = vadd.f32 %v5245_v21, %v2475_v43 }
 0x282   : > { %v2097_v29 = vpop.f32.mrf.mxu3 }
 0x283   : > { %v7564_v9 = vld [vmem:[#allocation1] sm:$0xf]  ;;  %v2153_v37 = vadd.f32 %v2097_v29, %v1987_v33  ;;  %v2476_v51 = vrot.slane %v2382_v16, 2  ;;  %v2477_v10 = vrot.slane %v2382_v16, 4  ;;  %v2478_v40 = vrot.slane %v2382_v16, 6 }
 0x284   : > { %8488 = vst [vmem:[#allocation62_spill] sm:$0xff] %v7564_v9  ;;  %v5246_v15 = vrot.slane %v2382_v16, 9 }
 0x285   : > { %3612 = vst [vmem:[#allocation1] ss:$4 sm:$0xff] %v3608_v5  ;;  %v1779_v2 = vpop.f32.mrf.mxu1  ;;  %v2261_v50 = vpop.f32.mrf.mxu0  ;;  %v2315_v20 = vadd.f32 %v2259_v41, %v2153_v37  ;;  %v5247_v23 = vrot.slane %v2476_v51, 9  ;;  %v5248_v31 = vrot.slane %v2477_v10, 9  ;;  %v5249_v5 = vrot.slane %v2478_v40, 9 }
 0x286   : > { %v1834_v7 = vadd.f32 %v1779_v2, %v7216_v45  ;;  %v3067_v58 = vadd.f32 %v5246_v15, %v2382_v16  ;;  %v3214_v41 = vpack.c.bf16 %v7456_v3, %v7456_v3  ;;  %v3215_v3 = vpack.c.bf16 %v7479_v53, %v7479_v53 }
 0x287   : > { %v1933_v17 = vpop.f32.mrf.mxu2  ;;  %v2351_v29 = vadd.f32 %v7345_v52, %v2315_v20  ;;  %v3068_v33 = vadd.f32 %v5247_v23, %v2476_v51 }
 0x288   : > { %v1988_v30 = vadd.f32 %v1933_v17, %v1834_v7  ;;  %v7582_v9 = vadd.f32 %v3067_v58, %v3063_v13  ;;  %v3688_v37 = vrot.slane %v3214_v41, 3 }
 0x289   : > { %v2383_v57 = vmax.f32 %v2351_v29, 0.0  ;;  %v7589_v32 = vadd.f32 %v3068_v33, %v3064_v61  ;;  %v3716_v61 = vrot.slane %v3215_v3, 3 }
 0x28a   : > { %v2099_v12 = vpop.f32.mrf.mxu3  ;;  %v3692_v53 = vsel %vm3267_vm3, %v3214_v41, %v3688_v37 }
 0x28b   : > { %v2154_v45 = vadd.f32 %v2099_v12, %v1988_v30  ;;  %v2479_v26 = vrot.slane %v2383_v57, 2  ;;  %v2480_v51 = vrot.slane %v2383_v57, 4 }
 0x28c   : > { %v7577_v11 = vld [vmem:[#allocation1] sm:$0xf] }
 0x28d   : > { %8489 = vst [vmem:[#allocation61_spill] sm:$0xff] %v7577_v11  ;;  %v1782_v22 = vpop.f32.mrf.mxu1  ;;  %v2264_v2 = vpop.f32.mrf.mxu0  ;;  %v3070_v11 = vadd.f32 %v5249_v5, %v2478_v40  ;;  %v2316_v43 = vadd.f32 %v2261_v50, %v2154_v45  ;;  %v5250_v40 = vrot.slane %v2383_v57, 9  ;;  %v5251_v15 = vrot.slane %v2479_v26, 9 }
 0x28e   : > { %3640 = vst [vmem:[#allocation1] ss:$4 sm:$0xff] %v3636_v39  ;;  %v3069_v39 = vadd.f32 %v5248_v31, %v2477_v10  ;;  %v2481_v10 = vrot.slane %v2383_v57, 6  ;;  %v1835_v25 = vadd.f32 %v1782_v22, %v7223_v48  ;;  %v5252_v30 = vrot.slane %v2480_v51, 9 }
 0x28f   : > { %v7593_v52 = vadd.f32 %v3070_v11, %v3066_v34  ;;  %v1936_v16 = vpop.f32.mrf.mxu2  ;;  %v7601_v11 = vld [vmem:[%s8137_s2] ss:$0 sm:$0xff]  ;;  %v3071_v34 = vadd.f32 %v5250_v40, %v2383_v57  ;;  %v3072_v29 = vadd.f32 %v5251_v15, %v2479_v26  ;;  %v3720_v57 = vsel %vm3267_vm3, %v3215_v3, %v3716_v61 }
 0x290   : > { %v7591_v46 = vadd.f32 %v3069_v39, %v3065_v63  ;;  %v2352_v50 = vadd.f32 %v7601_v11, %v2316_v43  ;;  %v1989_v17 = vadd.f32 %v1936_v16, %v1835_v25  ;;  %v5253_v48 = vrot.slane %v2481_v10, 9 }
 0x291   : > { %v3073_v25 = vadd.f32 %v5252_v30, %v2480_v51  ;;  %v3217_v30 = vpack.c.bf16 %v7503_v4, %v7503_v4  ;;  %v3281_v4 = vunpack.c.l.b16 %v7378_v59 }
 0x292   : > { %v2102_v21 = vpop.f32.mrf.mxu3  ;;  %v2384_v20 = vmax.f32 %v2352_v50, 0.0  ;;  %v3074_v50 = vadd.f32 %v5253_v48, %v2481_v10 }
 0x293   : > { %v2155_v23 = vadd.f32 %v2102_v21, %v1989_v17 }
 0x294   : > { %v2482_v31 = vrot.slane %v2384_v20, 2  ;;  %v2483_v5 = vrot.slane %v2384_v20, 4  ;;  %v2484_v58 = vrot.slane %v2384_v20, 6  ;;  %v5254_v22 = vrot.slane %v2384_v20, 9 }
 0x295   : > { %v7586_v28 = vld [vmem:[#allocation1] sm:$0xf]  ;;  %v1784_v7 = vpop.f32.mrf.mxu1  ;;  %v2266_v60 = vpop.f32.mrf.mxu0  ;;  %v2317_v45 = vadd.f32 %v2264_v2, %v2155_v23  ;;  %v3216_v2 = vpack.c.bf16 %v7501_v56, %v7501_v56 }
 0x296   : > { %8490 = vst [vmem:[#allocation45_spill] sm:$0xff] %v7586_v28  ;;  %v1836_v12 = vadd.f32 %v1784_v7, %v7232_v6  ;;  %v5256_v41 = vrot.slane %v2483_v5, 9  ;;  %v5257_v43 = vrot.slane %v2484_v58, 9  ;;  %v3075_v16 = vadd.f32 %v5254_v22, %v2384_v20 }
 0x297   : > { %3668 = vst [vmem:[#allocation1] ss:$4 sm:$0xff] %v3664_v44  ;;  %v1938_v63 = vpop.f32.mrf.mxu2  ;;  %v5255_v44 = vrot.slane %v2482_v31, 9  ;;  %v2353_v6 = vadd.f32 %v7601_v11, %v2317_v45 }
 0x298   : > { %v1990_v33 = vadd.f32 %v1938_v63, %v1836_v12  ;;  %v3167_v28 = vadd.f32 %v3075_v16, %v3071_v34 }
 0x299   : > { %v3076_v17 = vadd.f32 %v5255_v44, %v2482_v31  ;;  %v2385_v26 = vmax.f32 %v2353_v6, 0.0  ;;  %v3745_v31 = vrot.slane %v3216_v2, 3 }
 0x29a   : > { %v2104_v39 = vpop.f32.mrf.mxu3  ;;  %v3231_v10 = vpack.c.bf16 %v3167_v28, %v3167_v28 }
 0x29b   : > { %v2156_v21 = vadd.f32 %v2104_v39, %v1990_v33  ;;  %v3168_v15 = vadd.f32 %v3076_v17, %v3072_v29  ;;  %v2485_v56 = vrot.slane %v2385_v26, 2  ;;  %v2486_v61 = vrot.slane %v2385_v26, 4 }
 0x29c   : > { %v3266_v48 = vrot.slane %v3231_v10, 3  ;;  %v2487_v63 = vrot.slane %v2385_v26, 6  ;;  %v3773_v29 = vrot.slane %v3217_v30, 3  ;;  %v3749_v45 = vsel %vm3267_vm3, %v3216_v2, %v3745_v31 }
 0x29d   : > { %v1787_v37 = vpop.f32.mrf.mxu1  ;;  %v2269_v7 = vpop.f32.mrf.mxu0  ;;  %v2318_v12 = vadd.f32 %v2266_v60, %v2156_v21  ;;  %v5259_v39 = vrot.slane %v2485_v56, 9  ;;  %v5260_v16 = vrot.slane %v2486_v61, 9 }
 0x29e   : > { %v7604_v13 = vld [vmem:[#allocation1] sm:$0xf]  ;;  %v3273_v3 = vsel %vm3267_vm3, %v3231_v10, %v3266_v48  ;;  %v1837_v28 = vadd.f32 %v1787_v37, %v7239_v27  ;;  %v5261_v27 = vrot.slane %v2487_v63, 9 }
 0x29f   : > { %8491 = vst [vmem:[#allocation60_spill] sm:$0xff] %v7604_v13  ;;  %v3078_v13 = vadd.f32 %v5257_v43, %v2484_v58  ;;  %v1941_v23 = vpop.f32.mrf.mxu2  ;;  %v2354_v60 = vadd.f32 %v7601_v11, %v2318_v12 }
 0x2a0   : > { %3696 = vst [vmem:[#allocation1] ss:$4 sm:$0xff] %v3692_v53  ;;  %v3077_v53 = vadd.f32 %v5256_v41, %v2483_v5  ;;  %v3232_v5 = vpack.c.bf16 %v3168_v15, %v3168_v15  ;;  %v1991_v44 = vadd.f32 %v1941_v23, %v1837_v28  ;;  %v3080_v15 = vadd.f32 %v5259_v39, %v2485_v56 }
 0x2a1   : > { %v7614_v51 = vadd.f32 %v3078_v13, %v3074_v50  ;;  %3278 = vst [vmem:[#allocation1 + $0x20] ss:$4 sm:$0xff] %v3273_v3  ;;  %v5258_v13 = vrot.slane %v2385_v26, 9  ;;  %v3777_v56 = vsel %vm3267_vm3, %v3217_v30, %v3773_v29 }
 0x2a2   : > { %v3169_v20 = vadd.f32 %v3077_v53, %v3073_v25  ;;  %v2107_v58 = vpop.f32.mrf.mxu3  ;;  %v3296_v33 = vrot.slane %v3232_v5, 3  ;;  %v2386_v25 = vmax.f32 %v2354_v60, 0.0 }
 0x2a3   : > { %v3079_v37 = vadd.f32 %v5258_v13, %v2385_v26  ;;  %v2157_v59 = vadd.f32 %v2107_v58, %v1991_v44  ;;  %v3082_v58 = vadd.f32 %v5261_v27, %v2487_v63  ;;  %v3234_v30 = vpack.c.bf16 %v7614_v51, %v7614_v51 }
 0x2a4   : > { %v3233_v43 = vpack.c.bf16 %v3169_v20, %v3169_v20  ;;  %v2488_v6 = vrot.slane %v2386_v25, 2  ;;  %v2489_v21 = vrot.slane %v2386_v25, 4  ;;  %v2490_v17 = vrot.slane %v2386_v25, 6 }
 0x2a5   : > { %v1789_v22 = vpop.f32.mrf.mxu1  ;;  %v7620_v34 = vpop.f32.mrf.mxu0  ;;  %v5262_v53 = vrot.slane %v2386_v25, 9  ;;  %v2319_v10 = vadd.f32 %v2269_v7, %v2157_v59  ;;  %v3218_v7 = vpack.c.bf16 %v7505_v35, %v7505_v35  ;;  %v3219_v35 = vpack.c.bf16 %v7535_v24, %v7535_v24 }
 0x2a6   : > { %v1838_v50 = vadd.f32 %v1789_v22, %v7248_v42  ;;  %v5263_v23 = vrot.slane %v2488_v6, 9  ;;  %v5264_v31 = vrot.slane %v2489_v21, 9  ;;  %v5265_v3 = vrot.slane %v2490_v17, 9 }
 0x2a7   : > { %v7612_v40 = vld [vmem:[#allocation1] sm:$0xf]  ;;  %v1943_v2 = vpop.f32.mrf.mxu2  ;;  %v3083_v28 = vadd.f32 %v5262_v53, %v2386_v25  ;;  %v3081_v42 = vadd.f32 %v5260_v16, %v2486_v61  ;;  %v2355_v22 = vadd.f32 %v7601_v11, %v2319_v10  ;;  %v3324_v39 = vrot.slane %v3233_v43, 3 }
 0x2a8   : > { %3724 = vst [vmem:[#allocation1] ss:$4 sm:$0xff] %v3720_v57  ;;  %v3302_v57 = vsel %vm3267_vm3, %v3232_v5, %v3296_v33  ;;  %v1992_v48 = vadd.f32 %v1943_v2, %v1838_v50  ;;  %v3279_v12 = vld [vmem:[#allocation1 + $0x20] sm:$0xf]  ;;  %v3084_v60 = vadd.f32 %v5263_v23, %v2488_v6  ;;  %v3086_v44 = vadd.f32 %v5265_v3, %v2490_v17 }
 0x2a9   : > { %v3282_v13 = vunpack.c.l.b16 %v3279_v12  ;;  %3307 = vst [vmem:[#allocation1 + $0x20] ss:$4 sm:$0xff] %v3302_v57  ;;  %v3171_v5 = vadd.f32 %v3083_v28, %v3079_v37  ;;  %v7644_v37 = vmax.f32 %v2355_v22, 0.0  ;;  %v3801_v17 = vrot.slane %v3218_v7, 3 }
 0x2aa   : > { %v2109_v20 = vpop.f32.mrf.mxu3  ;;  %v7637_v59 = vadd.f32 %v3084_v60, %v3080_v15  ;;  %v7641_v63 = vadd.f32 %v3086_v44, %v3082_v58  ;;  %v3330_v57 = vsel %vm3267_vm3, %v3233_v43, %v3324_v39  ;;  %v3829_v51 = vrot.slane %v3219_v35, 3 }
 0x2ab   : > { %v3283_v33 = vrot.slane %v3282_v13, 7  ;;  %v2158_v16 = vadd.f32 %v2109_v20, %v1992_v48  ;;  %v2491_v24 = vrot.slane %v7644_v37, 2  ;;  %v2492_v20 = vrot.slane %v7644_v37, 4 }
 0x2ac   : > { %v3352_v23 = vrot.slane %v3234_v30, 3  ;;  %v7657_v43 = vpack.c.bf16 %v3171_v5, %v3171_v5  ;;  %v3338_v28 = vunpack.c.l.b16 %v7403_v38  ;;  %v3833_v38 = vsel %vm3267_vm3, %v3219_v35, %v3829_v51 }
 0x2ad   : > { %v1792_v26 = vpop.f32.mrf.mxu1  ;;  %v7633_v50 = vpop.f32.mrf.mxu0  ;;  %v3285_v27 = vsel %vm3284_vm4, %v3283_v33, %v3281_v4  ;;  %v2320_v15 = vadd.f32 %v7620_v34, %v2158_v16  ;;  %v3310_v4 = vunpack.c.l.b16 %v7394_v14  ;;  %v2493_v34 = vrot.slane %v7644_v37, 6 }
 0x2ae   : > { %v3286_v29 = vpack.c.b16 %v3285_v27, %v3285_v27  ;;  %v5266_v14 = vrot.slane %v7644_v37, 9  ;;  %v5267_v60 = vrot.slane %v2491_v24, 9  ;;  %v3380_v39 = vrot.slane %v7657_v43, 3 }
 0x2af   : > { %v7625_v41 = vld [vmem:[#allocation1] sm:$0xf]  ;;  %v1946_v6 = vpop.f32.mrf.mxu2  ;;  %v2356_v58 = vadd.f32 %v7601_v11, %v2320_v15  ;;  %v5269_v16 = vrot.slane %v2493_v34, 9 }
 0x2b0   : > { %3753 = vst [vmem:[#allocation1] ss:$4 sm:$0xff] %v3749_v45  ;;  %v3085_v45 = vadd.f32 %v5264_v31, %v2489_v21  ;;  %v3287_v53 = vrot.slane %v3286_v29, 3  ;;  %v3308_v2 = vld [vmem:[#allocation1 + $0x20] sm:$0xf]  ;;  %v1839_v31 = vadd.f32 %v1792_v26, %v7255_v47  ;;  %v7668_v47 = vpack.c.bf16 %v7544_v62, %v7544_v62 }
 0x2b1   : > { %v3311_v48 = vunpack.c.l.b16 %v3308_v2  ;;  %3335 = vst [vmem:[#allocation1 + $0x20] ss:$4 sm:$0xff] %v3330_v57  ;;  %v3087_v27 = vadd.f32 %v5266_v14, %v7644_v37  ;;  %v3088_v35 = vadd.f32 %v5267_v60, %v2491_v24 }
 0x2b2   : > { %v7639_v61 = vadd.f32 %v3085_v45, %v3081_v42  ;;  %v2112_v21 = vpop.f32.mrf.mxu3  ;;  %v3290_v12 = vsel %vm3267_vm3, %v3286_v29, %v3287_v53  ;;  %v3805_v42 = vsel %vm3267_vm3, %v3218_v7, %v3801_v17  ;;  %v1993_v22 = vadd.f32 %v1946_v6, %v1839_v31 }
 0x2b3   : > { %3292 = vst [vmem:[#allocation2] sm:$0x1] %v3290_v12  ;;  %v3312_v3 = vrot.slane %v3311_v48, 7  ;;  %v5268_v45 = vrot.slane %v2492_v20, 9  ;;  %v2388_v7 = vmax.f32 %v2356_v58, 0.0 }
 0x2b4   : > { %v2159_v62 = vadd.f32 %v2112_v21, %v1993_v22  ;;  %v3090_v22 = vadd.f32 %v5269_v16, %v2493_v34  ;;  %v7695_v16 = vpack.c.bf16 %v7548_v8, %v7548_v8  ;;  %v3237_v8 = vpack.c.bf16 %v7639_v61, %v7639_v61 }
 0x2b5   : > { %v1794_v10 = vpop.f32.mrf.mxu1  ;;  %v3313_v26 = vsel %vm3284_vm4, %v3312_v3, %v3310_v4  ;;  %v7671_v44 = vpop.f32.mrf.mxu0  ;;  %v2494_v53 = vrot.slane %v2388_v7, 2  ;;  %v2495_v2 = vrot.slane %v2388_v7, 4  ;;  %v2496_v57 = vrot.slane %v2388_v7, 6  ;;  %v8492_v3 = vld [vmem:[#allocation32_spill] sm:$0xff] }
 0x2b6   : > { %v3314_v5 = vpack.c.b16 %v3313_v26, %v3313_v26  ;;  %v3089_v48 = vadd.f32 %v5268_v45, %v2492_v20  ;;  %v1840_v14 = vadd.f32 %v1794_v10, %v8492_v3  ;;  %v3221_v20 = vpack.c.bf16 %v7546_v36, %v7546_v36  ;;  %v8495_v3 = vld [vmem:[#allocation21_spill] sm:$0xff] }
 0x2b7   : > { %v7635_v25 = vld [vmem:[#allocation1] sm:$0xf]  ;;  %v1948_v33 = vpop.f32.mrf.mxu2  ;;  %v5271_v12 = vrot.slane %v2494_v53, 9  ;;  %v5273_v31 = vrot.slane %v2496_v57, 9 }
 0x2b8   : > { %3781 = vst [vmem:[#allocation1] ss:$4 sm:$0xff] %v3777_v56  ;;  %v3358_v56 = vsel %vm3267_vm3, %v3234_v30, %v3352_v23  ;;  %v3315_v6 = vrot.slane %v3314_v5, 3  ;;  %v3336_v17 = vld [vmem:[#allocation1 + $0x20] sm:$0xf]  ;;  %v5270_v30 = vrot.slane %v2388_v7, 9 }
 0x2b9   : > { %v3339_v4 = vunpack.c.l.b16 %v3336_v17  ;;  %3363 = vst [vmem:[#allocation1 + $0x20] ss:$4 sm:$0xff] %v3358_v56  ;;  %v5272_v23 = vrot.slane %v2495_v2, 9  ;;  %v3092_v26 = vadd.f32 %v5271_v12, %v2494_v53  ;;  %v3094_v24 = vadd.f32 %v5273_v31, %v2496_v57  ;;  %v8494_v12 = vld [vmem:[#allocation51_spill] sm:$0xff] }
 0x2ba   : > { %v2114_v29 = vpop.f32.mrf.mxu3  ;;  %v3318_v51 = vsel %vm3267_vm3, %v3314_v5, %v3315_v6  ;;  %v3091_v21 = vadd.f32 %v5270_v30, %v2388_v7  ;;  %v1994_v5 = vadd.f32 %v1948_v33, %v1840_v14  ;;  %v3236_v17 = vpack.c.bf16 %v7637_v59, %v7637_v59 }
 0x2bb   : > { %3320 = vst [vmem:[#allocation2 + $0x1] sm:$0x1] %v3318_v51  ;;  %v3340_v37 = vrot.slane %v3339_v4, 7  ;;  %v3093_v56 = vadd.f32 %v5272_v23, %v2495_v2  ;;  %v7687_v6 = vadd.f32 %v3092_v26, %v3088_v35  ;;  %v3386_v53 = vsel %vm3267_vm3, %v7657_v43, %v3380_v39  ;;  %v8493_v35 = vld [vmem:[#allocation52_spill] sm:$0xff] }
 0x2bc   : > { %v7685_v45 = vadd.f32 %v3091_v21, %v3087_v27  ;;  %v3885_v57 = vrot.slane %v3221_v20, 3  ;;  %v2160_v51 = vadd.f32 %v2114_v29, %v1994_v5  ;;  %v3394_v23 = vunpack.c.l.b16 %v8494_v12 }
 0x2bd   : > { %v1797_v15 = vpop.f32.mrf.mxu1  ;;  %v3341_v60 = vsel %vm3284_vm4, %v3340_v37, %v3338_v28  ;;  %v7689_v10 = vadd.f32 %v3093_v56, %v3089_v48  ;;  %v3857_v28 = vrot.slane %v7668_v47, 3  ;;  %v3366_v48 = vunpack.c.l.b16 %v8493_v35 }
 0x2be   : > { %v3342_v7 = vpack.c.b16 %v3341_v60, %v3341_v60  ;;  %v3408_v21 = vrot.slane %v3236_v17, 3  ;;  %v1841_v14 = vadd.f32 %v1797_v15, %v8495_v3  ;;  %v3889_v29 = vsel %vm3267_vm3, %v3221_v20, %v3885_v57  ;;  %v8496_v20 = vld [vmem:[#allocation28_spill] sm:$0xff] }
 0x2bf   : > { %v7662_v13 = vld [vmem:[#allocation1] sm:$0xf]  ;;  %v1951_v34 = vpop.f32.mrf.mxu2  ;;  %v3861_v39 = vsel %vm3267_vm3, %v7668_v47, %v3857_v28  ;;  %v3436_v26 = vrot.slane %v3237_v8, 3  ;;  %v2322_v47 = vadd.f32 %v7671_v44, %v2160_v51 }
 0x2c0   : > { %3809 = vst [vmem:[#allocation1] ss:$4 sm:$0xff] %v3805_v42  ;;  %v2321_v42 = vadd.f32 %v7633_v50, %v2159_v62  ;;  %v7691_v50 = vadd.f32 %v3094_v24, %v3090_v22  ;;  %v2279_v62 = vpop.f32.mrf.mxu0  ;;  %v3343_v27 = vrot.slane %v3342_v7, 3  ;;  %v3364_v33 = vld [vmem:[#allocation1 + $0x20] sm:$0xf]  ;;  %v7723_v24 = vpack.c.bf16 %v7641_v63, %v7641_v63 }
 0x2c1   : > { %v3367_v4 = vunpack.c.l.b16 %v3364_v33  ;;  %3391 = vst [vmem:[#allocation1 + $0x20] ss:$4 sm:$0xff] %v3386_v53  ;;  %v1995_v60 = vadd.f32 %v1951_v34, %v1841_v14  ;;  %v3414_v53 = vsel %vm3267_vm3, %v3236_v17, %v3408_v21  ;;  %v2358_v57 = vadd.f32 %v7601_v11, %v2322_v47 }
 0x2c2   : > { %v2357_v36 = vadd.f32 %v7601_v11, %v2321_v42  ;;  %v3346_v30 = vsel %vm3267_vm3, %v3342_v7, %v3343_v27  ;;  %v7718_v42 = vpack.c.bf16 %v7560_v54, %v7560_v54  ;;  %v3442_v63 = vsel %vm3267_vm3, %v3237_v8, %v3436_v26 }
 0x2c3   : > { %3348 = vst [vmem:[#allocation2 + $0x2] sm:$0x1] %v3346_v30  ;;  %v3368_v59 = vrot.slane %v3367_v4, 7  ;;  %v2390_v12 = vmax.f32 %v2358_v57, 0.0 }
 0x2c4   : > { %v2389_v37 = vmax.f32 %v2357_v36, 0.0 }
 0x2c5   : > { %v1799_v2 = vpop.f32.mrf.mxu1  ;;  %v3369_v22 = vsel %vm3284_vm4, %v3368_v59, %v3366_v48  ;;  %v2500_v8 = vrot.slane %v2390_v12, 2  ;;  %v2501_v14 = vrot.slane %v2390_v12, 4  ;;  %v5278_v26 = vrot.slane %v2390_v12, 9 }
 0x2c6   : > { %v3370_v56 = vpack.c.b16 %v3369_v22, %v3369_v22  ;;  %v2497_v15 = vrot.slane %v2389_v37, 2  ;;  %v2498_v7 = vrot.slane %v2389_v37, 4  ;;  %v2499_v36 = vrot.slane %v2389_v37, 6 }
 0x2c7   : > { %v7680_v58 = vld [vmem:[#allocation1] sm:$0xf]  ;;  %v1953_v5 = vpop.f32.mrf.mxu2  ;;  %v1842_v28 = vadd.f32 %v1799_v2, %v8496_v20  ;;  %v5274_v44 = vrot.slane %v2389_v37, 9  ;;  %v7733_v2 = vpack.c.bf16 %v7685_v45, %v7685_v45  ;;  %v2502_v22 = vrot.slane %v2390_v12, 6 }
 0x2c8   : > { %3837 = vst [vmem:[#allocation1] ss:$4 sm:$0xff] %v3833_v38  ;;  %v2117_v38 = vpop.f32.mrf.mxu3  ;;  %v3371_v54 = vrot.slane %v3370_v56, 3  ;;  %v3392_v33 = vld [vmem:[#allocation1 + $0x20] sm:$0xf]  ;;  %v2281_v30 = vpop.f32.mrf.mxu0  ;;  %v5277_v21 = vrot.slane %v2499_v36, 9 }
 0x2c9   : > { %v2161_v4 = vadd.f32 %v2117_v38, %v1995_v60  ;;  %v3395_v35 = vunpack.c.l.b16 %v3392_v33  ;;  %3419 = vst [vmem:[#allocation1 + $0x20] ss:$4 sm:$0xff] %v3414_v53  ;;  %v1996_v34 = vadd.f32 %v1953_v5, %v1842_v28  ;;  %v5276_v38 = vrot.slane %v2498_v7, 9 }
 0x2ca   : > { %v3374_v51 = vsel %vm3267_vm3, %v3370_v56, %v3371_v54  ;;  %v3095_v47 = vadd.f32 %v5274_v44, %v2389_v37  ;;  %v5280_v20 = vrot.slane %v2501_v14, 9  ;;  %v5281_v28 = vrot.slane %v2502_v22, 9 }
 0x2cb   : > { %v2323_v59 = vadd.f32 %v2279_v62, %v2161_v4  ;;  %3376 = vst [vmem:[#allocation2 + $0x3] sm:$0x1] %v3374_v51  ;;  %v3396_v17 = vrot.slane %v3395_v35, 7  ;;  %v5279_v62 = vrot.slane %v2500_v8, 9  ;;  %v3097_v53 = vadd.f32 %v5276_v38, %v2498_v7 }
 0x2cc   : > { %v3098_v57 = vadd.f32 %v5277_v21, %v2499_v36  ;;  %v3099_v4 = vadd.f32 %v5278_v26, %v2390_v12  ;;  %v7752_v36 = vpack.c.bf16 %v7567_v49, %v7567_v49  ;;  %v3464_v12 = vrot.slane %v7723_v24, 3 }
 0x2cd   : > { %v1802_v48 = vpop.f32.mrf.mxu1  ;;  %v3397_v56 = vsel %vm3284_vm4, %v3396_v17, %v3394_v23  ;;  %v2359_v45 = vadd.f32 %v7601_v11, %v2323_v59  ;;  %v3100_v61 = vadd.f32 %v5279_v62, %v2500_v8  ;;  %v8499_v21 = vrot.slane %v7695_v16, 3  ;;  %v8500_v8 = vld [vmem:[#allocation31_spill] sm:$0xff] }
 0x2ce   : > { %v3398_v5 = vpack.c.b16 %v3397_v56, %v3397_v56  ;;  %v7739_v37 = vadd.f32 %v3099_v4, %v3095_v47  ;;  %v1843_v49 = vadd.f32 %v1802_v48, %v8500_v8  ;;  %v3492_v26 = vrot.slane %v7733_v2, 3 }
 0x2cf   : > { %v7709_v43 = vld [vmem:[#allocation1] sm:$0xf]  ;;  %v1956_v54 = vpop.f32.mrf.mxu2 }
 0x2d0   : > { %3865 = vst [vmem:[#allocation1] ss:$4 sm:$0xff] %v3861_v39  ;;  %v2119_v27 = vpop.f32.mrf.mxu3  ;;  %v5275_v39 = vrot.slane %v2497_v15, 9  ;;  %v3399_v51 = vrot.slane %v3398_v5, 3  ;;  %v3420_v31 = vld [vmem:[#allocation1 + $0x20] sm:$0xf] }
 0x2d1   : > { %v2162_v60 = vadd.f32 %v2119_v27, %v1996_v34  ;;  %v3423_v23 = vunpack.c.l.b16 %v3420_v31  ;;  %3447 = vst [vmem:[#allocation1 + $0x20] ss:$4 sm:$0xff] %v3442_v63  ;;  %v7741_v27 = vmax.f32 %v2359_v45, 0.0  ;;  %v3941_v31 = vrot.slane %v7718_v42, 3 }
 0x2d2   : > { %v3096_v33 = vadd.f32 %v5275_v39, %v2497_v15  ;;  %v3402_v34 = vsel %vm3267_vm3, %v3398_v5, %v3399_v51  ;;  %v8498_v39 = vld [vmem:[#allocation53_spill] sm:$0xff]  ;;  %v7772_v45 = vpack.c.bf16 %v7569_v1, %v7569_v1  ;;  %v1997_v5 = vadd.f32 %v1956_v54, %v1843_v49 }
 0x2d3   : > { %v2324_v44 = vadd.f32 %v2281_v30, %v2162_v60  ;;  %3404 = vst [vmem:[#allocation2 + $0x4] sm:$0x1] %v3402_v34  ;;  %v3424_v63 = vrot.slane %v3423_v23, 7  ;;  %v2284_v30 = vpop.f32.mrf.mxu0  ;;  %v3450_v38 = vunpack.c.l.b16 %v8498_v39  ;;  %v2503_v56 = vrot.slane %v7741_v27, 2 }
 0x2d4   : > { %v7744_v59 = vadd.f32 %v3100_v61, %v3096_v33  ;;  %v3945_v62 = vsel %vm3267_vm3, %v7718_v42, %v3941_v31  ;;  %v2505_v54 = vrot.slane %v7741_v27, 6  ;;  %v3498_v42 = vsel %vm3267_vm3, %v7733_v2, %v3492_v26 }
 0x2d5   : > { %v1804_v17 = vpop.f32.mrf.mxu1  ;;  %v2360_v47 = vadd.f32 %v7601_v11, %v2324_v44  ;;  %v5283_v4 = vrot.slane %v2503_v56, 9  ;;  %v8502_v44 = vld [vmem:[#allocation30_spill] sm:$0xff] }
 0x2d6   : > { %v1844_v34 = vadd.f32 %v1804_v17, %v8502_v44 }
 0x2d7   : > { %v7735_v3 = vld [vmem:[#allocation1] sm:$0xf]  ;;  %v1958_v48 = vpop.f32.mrf.mxu2  ;;  %v2392_v51 = vmax.f32 %v2360_v47, 0.0 }
 0x2d8   : > { %8497 = vst [vmem:[#allocation19_spill] sm:$0xff] %v7735_v3  ;;  %v2122_v35 = vpop.f32.mrf.mxu3  ;;  %v3102_v3 = vadd.f32 %v5281_v28, %v2502_v22  ;;  %v3470_v28 = vsel %vm3267_vm3, %v7723_v24, %v3464_v12  ;;  %v3448_v1 = vld [vmem:[#allocation1 + $0x20] sm:$0xf]  ;;  %v1998_v47 = vadd.f32 %v1958_v48, %v1844_v34 }
 0x2d9   : > { %3893 = vst [vmem:[#allocation1] ss:$4 sm:$0xff] %v3889_v29  ;;  %v3101_v29 = vadd.f32 %v5280_v20, %v2501_v14  ;;  %v8501_v14 = vunpack.c.l.b16 %v7449_v19  ;;  %v7777_v19 = vpack.c.bf16 %v7571_v18, %v7571_v18  ;;  %v3970_v20 = vrot.slane %v7752_v36, 3 }
 0x2da   : > { %v7748_v7 = vadd.f32 %v3102_v3, %v3098_v57  ;;  %v3917_v3 = vsel %vm3267_vm3, %v7695_v16, %v8499_v21  ;;  %v2504_v16 = vrot.slane %v7741_v27, 4  ;;  %v5282_v57 = vrot.slane %v7741_v27, 9  ;;  %3475 = vst [vmem:[#allocation1 + $0x20] ss:$4 sm:$0xff] %v3470_v28 }
 0x2db   : > { %v7746_v15 = vadd.f32 %v3101_v29, %v3097_v53  ;;  %v3425_v22 = vsel %vm3284_vm4, %v3424_v63, %v8501_v14  ;;  %v7786_v53 = vpack.c.bf16 %v7687_v6, %v7687_v6  ;;  %v3451_v18 = vunpack.c.l.b16 %v3448_v1 }
 0x2dc   : > { %v3426_v60 = vpack.c.b16 %v3425_v22, %v3425_v22  ;;  %v5284_v23 = vrot.slane %v2504_v16, 9  ;;  %v2163_v31 = vadd.f32 %v2122_v35, %v1997_v5  ;;  %v2506_v63 = vrot.slane %v2392_v51, 2  ;;  %v2286_v35 = vpop.f32.mrf.mxu0 }
 0x2dd   : > { %v3452_v6 = vrot.slane %v3451_v18, 7  ;;  %v2507_v12 = vrot.slane %v2392_v51, 4  ;;  %v2508_v39 = vrot.slane %v2392_v51, 6  ;;  %v3103_v8 = vadd.f32 %v5282_v57, %v7741_v27  ;;  %v1807_v17 = vpop.f32.mrf.mxu1 }
 0x2de   : > { %v3427_v33 = vrot.slane %v3426_v60, 3  ;;  %v5286_v2 = vrot.slane %v2392_v51, 9  ;;  %v2325_v49 = vadd.f32 %v2284_v30, %v2163_v31  ;;  %v5287_v22 = vrot.slane %v2506_v63, 9 }
 0x2df   : > { %v3453_v14 = vsel %vm3284_vm4, %v3452_v6, %v3450_v38  ;;  %v5288_v26 = vrot.slane %v2507_v12, 9  ;;  %v3104_v5 = vadd.f32 %v5283_v4, %v2503_v56  ;;  %v5289_v28 = vrot.slane %v2508_v39, 9  ;;  %v1961_v27 = vpop.f32.mrf.mxu2 }
 0x2e0   : > { %v7757_v61 = vld [vmem:[#allocation1] sm:$0xf]  ;;  %v2124_v29 = vpop.f32.mrf.mxu3  ;;  %v3430_v24 = vsel %vm3267_vm3, %v3426_v60, %v3427_v33  ;;  %v3454_v60 = vpack.c.b16 %v3453_v14, %v3453_v14  ;;  %v3107_v33 = vadd.f32 %v5286_v2, %v2392_v51  ;;  %v3105_v1 = vadd.f32 %v5284_v23, %v2504_v16 }
 0x2e1   : > { %3921 = vst [vmem:[#allocation1] ss:$4 sm:$0xff] %v3917_v3  ;;  %v5285_v3 = vrot.slane %v2505_v54, 9  ;;  %v3108_v18 = vadd.f32 %v5287_v22, %v2506_v63  ;;  %v2361_v44 = vadd.f32 %v7601_v11, %v2325_v49  ;;  %v3476_v30 = vld [vmem:[#allocation1 + $0x20] sm:$0xf]  ;;  %v3110_v31 = vadd.f32 %v5289_v28, %v2508_v39 }
 0x2e2   : > { %3432 = vst [vmem:[#allocation2 + $0x5] sm:$0x1] %v3430_v24  ;;  %v3109_v24 = vadd.f32 %v5288_v26, %v2507_v12  ;;  %v3455_v57 = vrot.slane %v3454_v60, 3  ;;  %v7799_v38 = vadd.f32 %v3107_v33, %v3103_v8  ;;  %v3479_v6 = vunpack.c.l.b16 %v3476_v30  ;;  %v8503_v51 = vld [vmem:[#allocation56_spill] sm:$0xff]  ;;  %v8504_v8 = vld [vmem:[#allocation35_spill] sm:$0xff] }
 0x2e3   : > { %3503 = vst [vmem:[#allocation1 + $0x20] ss:$4 sm:$0xff] %v3498_v42  ;;  %v7801_v48 = vadd.f32 %v3108_v18, %v3104_v5  ;;  %v2164_v56 = vadd.f32 %v2124_v29, %v1998_v47  ;;  %v3478_v23 = vunpack.c.l.b16 %v8503_v51  ;;  %v7811_v12 = vmax.f32 %v2361_v44, 0.0 }
 0x2e4   : > { %v7803_v34 = vadd.f32 %v3109_v24, %v3105_v1  ;;  %v3458_v16 = vsel %vm3267_vm3, %v3454_v60, %v3455_v57  ;;  %v3480_v63 = vrot.slane %v3479_v6, 7  ;;  %v3974_v29 = vsel %vm3267_vm3, %v7752_v36, %v3970_v20  ;;  %v8505_v60 = vld [vmem:[#allocation54_spill] sm:$0xff]  ;;  %v2289_v1 = vpop.f32.mrf.mxu0 }
 0x2e5   : > { %3460 = vst [vmem:[#allocation2 + $0x6] sm:$0x1] %v3458_v16  ;;  %v1845_v2 = vadd.f32 %v1807_v17, %v8504_v8  ;;  %v3998_v49 = vrot.slane %v7772_v45, 3  ;;  %v4026_v14 = vrot.slane %v7777_v19, 3  ;;  %v2326_v22 = vadd.f32 %v2286_v35, %v2164_v56  ;;  %v1809_v20 = vpop.f32.mrf.mxu1 }
 0x2e6   : > { %v3506_v5 = vunpack.c.l.b16 %v8505_v60  ;;  %v3535_v28 = vunpack.c.l.b16 %v7541_v55  ;;  %v2509_v36 = vrot.slane %v7811_v12, 2  ;;  %v2510_v44 = vrot.slane %v7811_v12, 4 }
 0x2e7   : > { %v1999_v47 = vadd.f32 %v1961_v27, %v1845_v2  ;;  %v2511_v35 = vrot.slane %v7811_v12, 6  ;;  %v4002_v27 = vsel %vm3267_vm3, %v7772_v45, %v3998_v49  ;;  %v4030_v57 = vsel %vm3267_vm3, %v7777_v19, %v4026_v14  ;;  %v8506_v14 = vld [vmem:[#allocation46_spill] sm:$0xff] }
 0x2e8   : > { %v7794_v21 = vld [vmem:[#allocation1] sm:$0xf]  ;;  %v2127_v39 = vpop.f32.mrf.mxu3  ;;  %v7838_v6 = vpack.c.bf16 %v7582_v9, %v7582_v9  ;;  %v5290_v56 = vrot.slane %v7811_v12, 9  ;;  %v7844_v45 = vpack.c.bf16 %v7691_v50, %v7691_v50  ;;  %v5291_v51 = vrot.slane %v2509_v36, 9 }
 0x2e9   : > { %3949 = vst [vmem:[#allocation1] ss:$4 sm:$0xff] %v3945_v62  ;;  %v3106_v62 = vadd.f32 %v5285_v3, %v2505_v54  ;;  %v3241_v54 = vpack.c.bf16 %v7689_v10, %v7689_v10  ;;  %v3521_v3 = vrot.slane %v7786_v53, 3  ;;  %v3481_v10 = vsel %vm3284_vm4, %v3480_v63, %v3478_v23 }
 0x2ea   : > { %v3482_v26 = vpack.c.b16 %v3481_v10, %v3481_v10  ;;  %v3504_v18 = vld [vmem:[#allocation1 + $0x20] sm:$0xf]  ;;  %v2165_v16 = vadd.f32 %v2127_v39, %v1999_v47  ;;  %v5293_v9 = vrot.slane %v2511_v35, 9  ;;  %v1846_v10 = vadd.f32 %v1809_v20, %v8506_v14 }
 0x2eb   : > { %v7806_v4 = vadd.f32 %v3110_v31, %v3106_v62  ;;  %v3549_v33 = vrot.slane %v3241_v54, 3  ;;  %v3527_v24 = vsel %vm3267_vm3, %v7786_v53, %v3521_v3  ;;  %v3507_v30 = vunpack.c.l.b16 %v3504_v18  ;;  %v1963_v31 = vpop.f32.mrf.mxu2 }
 0x2ec   : > { %v3483_v17 = vrot.slane %v3482_v26, 3  ;;  %3532 = vst [vmem:[#allocation1 + $0x20] ss:$4 sm:$0xff] %v3527_v24  ;;  %v2362_v62 = vadd.f32 %v7601_v11, %v2326_v22  ;;  %v5292_v3 = vrot.slane %v2510_v44, 9  ;;  %v2327_v8 = vadd.f32 %v2289_v1, %v2165_v16 }
 0x2ed   : > { %v3508_v19 = vrot.slane %v3507_v30, 7 }
 0x2ee   : > { %v3486_v53 = vsel %vm3267_vm3, %v3482_v26, %v3483_v17  ;;  %v2394_v23 = vmax.f32 %v2362_v62, 0.0  ;;  %v3111_v26 = vadd.f32 %v5290_v56, %v7811_v12  ;;  %v3112_v17 = vadd.f32 %v5291_v51, %v2509_v36 }
 0x2ef   : > { %3488 = vst [vmem:[#allocation2 + $0x7] sm:$0x1] %v3486_v53  ;;  %v3509_v2 = vsel %vm3284_vm4, %v3508_v19, %v3506_v5  ;;  %v2363_v5 = vadd.f32 %v7601_v11, %v2327_v8  ;;  %v3113_v53 = vadd.f32 %v5292_v3, %v2510_v44  ;;  %v1812_v19 = vpop.f32.mrf.mxu1  ;;  %v3114_v56 = vadd.f32 %v5293_v9, %v2511_v35 }
 0x2f0   : > { %v7813_v42 = vld [vmem:[#allocation1] sm:$0xf]  ;;  %v2512_v49 = vrot.slane %v2394_v23, 2  ;;  %v2513_v39 = vrot.slane %v2394_v23, 4  ;;  %v2129_v22 = vpop.f32.mrf.mxu3  ;;  %v3510_v50 = vpack.c.b16 %v3509_v2, %v3509_v2  ;;  %v2514_v47 = vrot.slane %v2394_v23, 6  ;;  %v2291_v2 = vpop.f32.mrf.mxu0 }
 0x2f1   : > { %3978 = vst [vmem:[#allocation1] ss:$4 sm:$0xff] %v3974_v29  ;;  %v3555_v29 = vsel %vm3267_vm3, %v3241_v54, %v3549_v33  ;;  %v5294_v60 = vrot.slane %v2394_v23, 9  ;;  %v2000_v54 = vadd.f32 %v1963_v31, %v1846_v10  ;;  %v3228_v44 = vpack.c.bf16 %v7589_v32, %v7589_v32 }
 0x2f2   : > { %v5295_v18 = vrot.slane %v2512_v49, 9  ;;  %v5296_v24 = vrot.slane %v2513_v39, 9  ;;  %v3511_v33 = vrot.slane %v3510_v50, 3  ;;  %v5297_v1 = vrot.slane %v2514_v47, 9 }
 0x2f3   : > { %v3533_v30 = vld [vmem:[#allocation1 + $0x20] sm:$0xf]  ;;  %v2166_v8 = vadd.f32 %v2129_v22, %v2000_v54  ;;  %v1966_v10 = vpop.f32.mrf.mxu2  ;;  %v3577_v3 = vrot.slane %v7844_v45, 3  ;;  %v7867_v35 = vmax.f32 %v2363_v5, 0.0  ;;  %v8507_v22 = vld [vmem:[#allocation38_spill] sm:$0xff]  ;;  %v7884_v5 = vpack.c.bf16 %v7591_v46, %v7591_v46 }
 0x2f4   : > { %v3536_v62 = vunpack.c.l.b16 %v3533_v30  ;;  %3560 = vst [vmem:[#allocation1 + $0x20] ss:$4 sm:$0xff] %v3555_v29  ;;  %v3116_v20 = vadd.f32 %v5295_v18, %v2512_v49  ;;  %v3117_v16 = vadd.f32 %v5296_v24, %v2513_v39  ;;  %v3514_v12 = vsel %vm3267_vm3, %v3510_v50, %v3511_v33 }
 0x2f5   : > { %v3118_v36 = vadd.f32 %v5297_v1, %v2514_v47  ;;  %3517 = vst [vmem:[#allocation2 + $0x8] sm:$0x1] %v3514_v12  ;;  %v3243_v39 = vpack.c.bf16 %v7739_v37, %v7739_v37  ;;  %v1847_v50 = vadd.f32 %v1812_v19, %v8507_v22  ;;  %v4054_v47 = vrot.slane %v7838_v6, 3  ;;  %v8508_v1 = vld [vmem:[#allocation62_spill] sm:$0xff] }
 0x2f6   : > { %v3537_v31 = vrot.slane %v3536_v62, 7  ;;  %v7856_v14 = vadd.f32 %v3116_v20, %v3112_v17  ;;  %v2328_v32 = vadd.f32 %v2291_v2, %v2166_v8  ;;  %v4082_v18 = vrot.slane %v3228_v44, 3 }
 0x2f7   : > { %v7865_v49 = vadd.f32 %v3118_v36, %v3114_v56  ;;  %v2515_v55 = vrot.slane %v7867_v35, 2  ;;  %v3605_v37 = vrot.slane %v3243_v39, 3  ;;  %v2516_v30 = vrot.slane %v7867_v35, 4 }
 0x2f8   : > { %v7846_v63 = vld [vmem:[#allocation1] sm:$0xf]  ;;  %v3538_v9 = vsel %vm3284_vm4, %v3537_v31, %v3535_v28  ;;  %v2132_v17 = vpop.f32.mrf.mxu3  ;;  %v3563_v28 = vunpack.c.l.b16 %v7556_v0  ;;  %v2364_v20 = vadd.f32 %v7601_v11, %v2328_v32  ;;  %v2294_v2 = vpop.f32.mrf.mxu0  ;;  %v4086_v56 = vsel %vm3267_vm3, %v3228_v44, %v4082_v18 }
 0x2f9   : > { %4006 = vst [vmem:[#allocation1] ss:$4 sm:$0xff] %v4002_v27  ;;  %v3115_v27 = vadd.f32 %v5294_v60, %v2394_v23  ;;  %v7858_v23 = vadd.f32 %v3117_v16, %v3113_v53  ;;  %v2001_v60 = vadd.f32 %v1966_v10, %v1847_v50  ;;  %v2517_v53 = vrot.slane %v7867_v35, 6  ;;  %v1814_v16 = vpop.f32.mrf.mxu1  ;;  %v8509_v50 = vld [vmem:[#allocation36_spill] sm:$0xff] }
 0x2fa   : > { %v3244_v46 = vpack.c.bf16 %v7744_v59, %v7744_v59  ;;  %v5298_v36 = vrot.slane %v7867_v35, 9  ;;  %v5299_v31 = vrot.slane %v2515_v55, 9  ;;  %v3611_v8 = vsel %vm3267_vm3, %v3243_v39, %v3605_v37 }
 0x2fb   : > { %v7854_v51 = vadd.f32 %v3115_v27, %v3111_v26  ;;  %v3539_v26 = vpack.c.b16 %v3538_v9, %v3538_v9  ;;  %v3561_v54 = vld [vmem:[#allocation1 + $0x20] sm:$0xf]  ;;  %v3591_v27 = vunpack.c.l.b16 %v8508_v1  ;;  %v2167_v19 = vadd.f32 %v2132_v17, %v2001_v60 }
 0x2fc   : > { %v3564_v33 = vunpack.c.l.b16 %v3561_v54  ;;  %v5300_v10 = vrot.slane %v2516_v30, 9  ;;  %v2396_v11 = vmax.f32 %v2364_v20, 0.0  ;;  %v5301_v22 = vrot.slane %v2517_v53, 9  ;;  %v5732_v20 = vld [vmem:[%s8137_s2] ss:$0 sm:$0xff] }
 0x2fd   : > { %v3540_v24 = vrot.slane %v3539_v26, 3  ;;  %v3120_v54 = vadd.f32 %v5299_v31, %v2515_v55  ;;  %v3633_v31 = vrot.slane %v3244_v46, 3 }
 0x2fe   : > { %v3565_v0 = vrot.slane %v3564_v33, 7  ;;  %v2518_v44 = vrot.slane %v2396_v11, 2  ;;  %v2519_v32 = vrot.slane %v2396_v11, 4  ;;  %v2520_v60 = vrot.slane %v2396_v11, 6 }
 0x2ff   : > { %v3543_v62 = vsel %vm3267_vm3, %v3539_v26, %v3540_v24  ;;  %v1848_v26 = vadd.f32 %v1814_v16, %v8509_v50  ;;  %v5302_v59 = vrot.slane %v2396_v11, 9  ;;  %v3119_v24 = vadd.f32 %v5298_v36, %v7867_v35 }
 0x300   : > { %v7860_v29 = vld [vmem:[#allocation1] sm:$0xf]  ;;  %3545 = vst [vmem:[#allocation2 + $0x9] sm:$0x1] %v3543_v62  ;;  %v5303_v39 = vrot.slane %v2518_v44, 9  ;;  %v5304_v33 = vrot.slane %v2519_v32, 9  ;;  %v2134_v1 = vpop.f32.mrf.mxu3  ;;  %v3230_v50 = vpack.c.bf16 %v7593_v52, %v7593_v52 }
 0x301   : > { %4034 = vst [vmem:[#allocation1] ss:$4 sm:$0xff] %v4030_v57  ;;  %v3583_v57 = vsel %vm3267_vm3, %v7844_v45, %v3577_v3  ;;  %v4058_v45 = vsel %vm3267_vm3, %v7838_v6, %v4054_v47  ;;  %v3566_v6 = vsel %vm3284_vm4, %v3565_v0, %v3563_v28  ;;  %v1968_v3 = vpop.f32.mrf.mxu2  ;;  %v2329_v47 = vadd.f32 %v2294_v2, %v2167_v19 }
 0x302   : > { %3588 = vst [vmem:[#allocation1 + $0x20] ss:$4 sm:$0xff] %v3583_v57  ;;  %v3567_v9 = vpack.c.b16 %v3566_v6, %v3566_v6  ;;  %v2002_v57 = vadd.f32 %v1968_v3, %v1848_v26  ;;  %v5305_v37 = vrot.slane %v2520_v60, 9  ;;  %v3123_v0 = vadd.f32 %v5302_v59, %v2396_v11 }
 0x303   : > { %v2365_v16 = vadd.f32 %v5732_v20, %v2329_v47  ;;  %v3124_v35 = vadd.f32 %v5303_v39, %v2518_v44  ;;  %v3125_v55 = vadd.f32 %v5304_v33, %v2519_v32  ;;  %v3122_v6 = vadd.f32 %v5301_v22, %v2517_v53 }
 0x304   : > { %v3568_v17 = vrot.slane %v3567_v9, 3  ;;  %v3126_v2 = vadd.f32 %v5305_v37, %v2520_v60  ;;  %v2168_v3 = vadd.f32 %v2134_v1, %v2002_v57  ;;  %v3245_v47 = vpack.c.bf16 %v7746_v15, %v7746_v15 }
 0x305   : > { %v2397_v53 = vmax.f32 %v2365_v16, 0.0  ;;  %v4110_v22 = vrot.slane %v7884_v5, 3  ;;  %v3246_v1 = vpack.c.bf16 %v7748_v7, %v7748_v7 }
 0x306   : > { %v3571_v62 = vsel %vm3267_vm3, %v3567_v9, %v3568_v17  ;;  %v2296_v9 = vpop.f32.mrf.mxu0  ;;  %v7918_v44 = vadd.f32 %v3126_v2, %v3122_v6  ;;  %v8510_v17 = vld [vmem:[#allocation61_spill] sm:$0xff] }
 0x307   : > { %3573 = vst [vmem:[#allocation2 + $0xa] sm:$0x1] %v3571_v62  ;;  %v2330_v60 = vadd.f32 %v2296_v9, %v2168_v3  ;;  %v2521_v57 = vrot.slane %v2397_v53, 2  ;;  %v2523_v39 = vrot.slane %v2397_v53, 6  ;;  %v4114_v37 = vsel %vm3267_vm3, %v7884_v5, %v4110_v22 }
 0x308   : > { %v7891_v12 = vld [vmem:[#allocation1] sm:$0xf]  ;;  %v3689_v22 = vrot.slane %v3246_v1, 3 }
 0x309   : > { %4062 = vst [vmem:[#allocation1] ss:$4 sm:$0xff] %v4058_v45  ;;  %v3589_v18 = vld [vmem:[#allocation1 + $0x20] sm:$0xf]  ;;  %v3121_v45 = vadd.f32 %v5300_v10, %v2516_v30  ;;  %v7910_v10 = vadd.f32 %v3124_v35, %v3120_v54  ;;  %v3661_v54 = vrot.slane %v3245_v47, 3  ;;  %v5309_v3 = vrot.slane %v2523_v39, 9 }
 0x30a   : > { %v3592_v28 = vunpack.c.l.b16 %v3589_v18  ;;  %3616 = vst [vmem:[#allocation1 + $0x20] ss:$4 sm:$0xff] %v3611_v8  ;;  %v7907_v8 = vadd.f32 %v3123_v0, %v3119_v24  ;;  %v3619_v18 = vunpack.c.l.b16 %v8510_v17  ;;  %v4138_v24 = vrot.slane %v3230_v50, 3  ;;  %v8511_v0 = vld [vmem:[#allocation45_spill] sm:$0xff] }
 0x30b   : > { %v7912_v11 = vadd.f32 %v3125_v55, %v3121_v45  ;;  %v5306_v45 = vrot.slane %v2397_v53, 9  ;;  %v3647_v16 = vunpack.c.l.b16 %v8511_v0  ;;  %v3667_v2 = vsel %vm3267_vm3, %v3245_v47, %v3661_v54 }
 0x30c   : > { %v3593_v19 = vrot.slane %v3592_v28, 7  ;;  %v2522_v28 = vrot.slane %v2397_v53, 4  ;;  %v3130_v54 = vadd.f32 %v5309_v3, %v2523_v39  ;;  %v3247_v39 = vpack.c.bf16 %v7799_v38, %v7799_v38 }
 0x30e   : > { %v3594_v30 = vsel %vm3284_vm4, %v3593_v19, %v3591_v27  ;;  %v3639_v27 = vsel %vm3267_vm3, %v3244_v46, %v3633_v31  ;;  %v2366_v46 = vadd.f32 %v5732_v20, %v2330_v60  ;;  %v4142_v19 = vsel %vm3267_vm3, %v3230_v50, %v4138_v24 }
 0x30f   : > { %v3595_v26 = vpack.c.b16 %v3594_v30, %v3594_v30  ;;  %v5307_v31 = vrot.slane %v2521_v57, 9  ;;  %v5308_v6 = vrot.slane %v2522_v28, 9 }
 0x310   : > { %v7905_v36 = vld [vmem:[#allocation1] sm:$0xf]  ;;  %v2398_v55 = vmax.f32 %v2366_v46, 0.0 }
 0x311   : > { %4090 = vst [vmem:[#allocation1] ss:$4 sm:$0xff] %v4086_v56  ;;  %v3596_v56 = vrot.slane %v3595_v26, 3  ;;  %v3617_v32 = vld [vmem:[#allocation1 + $0x20] sm:$0xf]  ;;  %v3128_v17 = vadd.f32 %v5307_v31, %v2521_v57 }
 0x312   : > { %v3620_v59 = vunpack.c.l.b16 %v3617_v32  ;;  %3644 = vst [vmem:[#allocation1 + $0x20] ss:$4 sm:$0xff] %v3639_v27  ;;  %v2524_v30 = vrot.slane %v2398_v55, 2  ;;  %v2525_v9 = vrot.slane %v2398_v55, 4  ;;  %v5310_v32 = vrot.slane %v2398_v55, 9 }
 0x313   : > { %v3599_v52 = vsel %vm3267_vm3, %v3595_v26, %v3596_v56  ;;  %v2526_v26 = vrot.slane %v2398_v55, 6  ;;  %v3127_v56 = vadd.f32 %v5306_v45, %v2397_v53 }
 0x314   : > { %3601 = vst [vmem:[#allocation2 + $0xb] sm:$0x1] %v3599_v52  ;;  %v3621_v15 = vrot.slane %v3620_v59, 7  ;;  %v5311_v50 = vrot.slane %v2524_v30, 9  ;;  %v5312_v60 = vrot.slane %v2525_v9, 9  ;;  %v3131_v24 = vadd.f32 %v5310_v32, %v2398_v55 }
 0x315   : > { %v5313_v59 = vrot.slane %v2526_v26, 9  ;;  %v3695_v55 = vsel %vm3267_vm3, %v3246_v1, %v3689_v22  ;;  %v3248_v1 = vpack.c.bf16 %v7801_v48, %v7801_v48 }
 0x316   : > { %v3622_v62 = vsel %vm3284_vm4, %v3621_v15, %v3619_v18  ;;  %v3129_v18 = vadd.f32 %v5308_v6, %v2522_v28  ;;  %v3132_v15 = vadd.f32 %v5311_v50, %v2524_v30 }
 0x317   : > { %v3623_v35 = vpack.c.b16 %v3622_v62, %v3622_v62  ;;  %v3134_v46 = vadd.f32 %v5313_v59, %v2526_v26  ;;  %v7938_v62 = vadd.f32 %v3131_v24, %v3127_v56  ;;  %v3703_v56 = vunpack.c.l.b16 %v7612_v40 }
 0x318   : > { %v7924_v33 = vld [vmem:[#allocation1] sm:$0xf]  ;;  %v7940_v0 = vadd.f32 %v3132_v15, %v3128_v17 }
 0x319   : > { %4118 = vst [vmem:[#allocation1] ss:$4 sm:$0xff] %v4114_v37  ;;  %v3624_v5 = vrot.slane %v3623_v35, 3  ;;  %v3645_v20 = vld [vmem:[#allocation1 + $0x20] sm:$0xf]  ;;  %v3133_v37 = vadd.f32 %v5312_v60, %v2525_v9 }
 0x31a   : > { %v3648_v7 = vunpack.c.l.b16 %v3645_v20  ;;  %3672 = vst [vmem:[#allocation1 + $0x20] ss:$4 sm:$0xff] %v3667_v2  ;;  %v7944_v2 = vadd.f32 %v3134_v46, %v3130_v54  ;;  %v3731_v54 = vunpack.c.l.b16 %v7625_v41 }
 0x31b   : > { %v3627_v27 = vsel %vm3267_vm3, %v3623_v35, %v3624_v5  ;;  %v7942_v35 = vadd.f32 %v3133_v37, %v3129_v18  ;;  %v3717_v5 = vrot.slane %v3247_v39, 3 }
 0x31c   : > { %3629 = vst [vmem:[#allocation2 + $0xc] sm:$0x1] %v3627_v27  ;;  %v3649_v47 = vrot.slane %v3648_v7, 7  ;;  %v3746_v27 = vrot.slane %v3248_v1, 3 }
 0x31d   : > { %v3723_v7 = vsel %vm3267_vm3, %v3247_v39, %v3717_v5  ;;  %v3760_v39 = vunpack.c.l.b16 %v7635_v25  ;;  %v3251_v5 = vpack.c.bf16 %v7854_v51, %v7854_v51 }
 0x31e   : > { %v3650_v53 = vsel %vm3284_vm4, %v3649_v47, %v3647_v16  ;;  %v3249_v47 = vpack.c.bf16 %v7803_v34, %v7803_v34  ;;  %v3752_v48 = vsel %vm3267_vm3, %v3248_v1, %v3746_v27 }
 0x31f   : > { %v3651_v45 = vpack.c.b16 %v3650_v53, %v3650_v53  ;;  %v3250_v53 = vpack.c.bf16 %v7806_v4, %v7806_v4 }
 0x320   : > { %v7935_v52 = vld [vmem:[#allocation1] sm:$0xf]  ;;  %v3774_v15 = vrot.slane %v3249_v47, 3 }
 0x321   : > { %4146 = vst [vmem:[#allocation1] ss:$4 sm:$0xff] %v4142_v19  ;;  %v3652_v57 = vrot.slane %v3651_v45, 3  ;;  %v3673_v28 = vld [vmem:[#allocation1 + $0x20] sm:$0xf] }
 0x322   : > { %v3676_v31 = vunpack.c.l.b16 %v3673_v28  ;;  %3700 = vst [vmem:[#allocation1 + $0x20] ss:$4 sm:$0xff] %v3695_v55  ;;  %v8512_v19 = vld [vmem:[#allocation60_spill] sm:$0xff] }
 0x323   : > { %v3655_v16 = vsel %vm3267_vm3, %v3651_v45, %v3652_v57  ;;  %v3675_v6 = vunpack.c.l.b16 %v8512_v19  ;;  %v3780_v57 = vsel %vm3267_vm3, %v3249_v47, %v3774_v15 }
 0x324   : > { %3657 = vst [vmem:[#allocation2 + $0xd] sm:$0x1] %v3655_v16  ;;  %v3677_v3 = vrot.slane %v3676_v31, 7  ;;  %v3802_v31 = vrot.slane %v3250_v53, 3 }
 0x326   : > { %v3678_v20 = vsel %vm3284_vm4, %v3677_v3, %v3675_v6  ;;  %v3808_v4 = vsel %vm3267_vm3, %v3250_v53, %v3802_v31  ;;  %v3254_v53 = vpack.c.bf16 %v7865_v49, %v7865_v49 }
 0x327   : > { %v3679_v30 = vpack.c.b16 %v3678_v20, %v3678_v20 }
 0x329   : > { %v3680_v9 = vrot.slane %v3679_v30, 3  ;;  %v3701_v26 = vld [vmem:[#allocation1 + $0x20] sm:$0xf] }
 0x32a   : > { %v3704_v38 = vunpack.c.l.b16 %v3701_v26  ;;  %3728 = vst [vmem:[#allocation1 + $0x20] ss:$4 sm:$0xff] %v3723_v7  ;;  %v3830_v26 = vrot.slane %v3251_v5, 3 }
 0x32b   : > { %v3683_v22 = vsel %vm3267_vm3, %v3679_v30, %v3680_v9  ;;  %v3788_v9 = vunpack.c.l.b16 %v7662_v13 }
 0x32c   : > { %3685 = vst [vmem:[#allocation2 + $0xe] sm:$0x1] %v3683_v22  ;;  %v3705_v32 = vrot.slane %v3704_v38, 7 }
 0x32e   : > { %v3706_v50 = vsel %vm3284_vm4, %v3705_v32, %v3703_v56  ;;  %v3252_v56 = vpack.c.bf16 %v7856_v14, %v7856_v14  ;;  %v3836_v32 = vsel %vm3267_vm3, %v3251_v5, %v3830_v26 }
 0x32f   : > { %v3707_v60 = vpack.c.b16 %v3706_v50, %v3706_v50  ;;  %v3816_v50 = vunpack.c.l.b16 %v7680_v58 }
 0x331   : > { %v3708_v59 = vrot.slane %v3707_v60, 3  ;;  %v3729_v17 = vld [vmem:[#allocation1 + $0x20] sm:$0xf] }
 0x332   : > { %v3732_v18 = vunpack.c.l.b16 %v3729_v17  ;;  %3757 = vst [vmem:[#allocation1 + $0x20] ss:$4 sm:$0xff] %v3752_v48  ;;  %v3253_v48 = vpack.c.bf16 %v7858_v23, %v7858_v23 }
 0x333   : > { %v3711_v24 = vsel %vm3267_vm3, %v3707_v60, %v3708_v59  ;;  %v3858_v60 = vrot.slane %v3252_v56, 3 }
 0x334   : > { %3713 = vst [vmem:[#allocation2 + $0xf] sm:$0x1] %v3711_v24  ;;  %v3733_v40 = vrot.slane %v3732_v18, 7  ;;  %v3886_v15 = vrot.slane %v3253_v48, 3 }
 0x335   : > { %v3864_v14 = vsel %vm3267_vm3, %v3252_v56, %v3858_v60  ;;  %v3257_v60 = vpack.c.bf16 %v7912_v11, %v7912_v11 }
 0x336   : > { %v3734_v37 = vsel %vm3284_vm4, %v3733_v40, %v3731_v54  ;;  %v3844_v40 = vunpack.c.l.b16 %v7709_v43 }
 0x337   : > { %v3735_v46 = vpack.c.b16 %v3734_v37, %v3734_v37 }
 0x339   : > { %v3736_v45 = vrot.slane %v3735_v46, 3  ;;  %v3758_v34 = vld [vmem:[#allocation1 + $0x20] sm:$0xf] }
 0x33a   : > { %v3761_v28 = vunpack.c.l.b16 %v3758_v34  ;;  %3785 = vst [vmem:[#allocation1 + $0x20] ss:$4 sm:$0xff] %v3780_v57  ;;  %v3892_v34 = vsel %vm3267_vm3, %v3253_v48, %v3886_v15  ;;  %v3956_v48 = vunpack.c.l.b16 %v7813_v42 }
 0x33b   : > { %v3739_v55 = vsel %vm3267_vm3, %v3735_v46, %v3736_v45 }
 0x33c   : > { %3742 = vst [vmem:[#allocation2 + $0x10] sm:$0x1] %v3739_v55  ;;  %v3762_v41 = vrot.slane %v3761_v28, 7  ;;  %v8513_v55 = vld [vmem:[#allocation19_spill] sm:$0xff] }
 0x33e   : > { %v3763_v16 = vsel %vm3284_vm4, %v3762_v41, %v3760_v39  ;;  %v3872_v39 = vunpack.c.l.b16 %v8513_v55  ;;  %v3914_v41 = vrot.slane %v3254_v53, 3 }
 0x33f   : > { %v3764_v19 = vpack.c.b16 %v3763_v16, %v3763_v16 }
 0x340   : > { %v3920_v49 = vsel %vm3267_vm3, %v3254_v53, %v3914_v41 }
 0x341   : > { %v3765_v6 = vrot.slane %v3764_v19, 3  ;;  %v3786_v3 = vld [vmem:[#allocation1 + $0x20] sm:$0xf] }
 0x342   : > { %v3789_v20 = vunpack.c.l.b16 %v3786_v3  ;;  %3813 = vst [vmem:[#allocation1 + $0x20] ss:$4 sm:$0xff] %v3808_v4  ;;  %v3255_v3 = vpack.c.bf16 %v7907_v8, %v7907_v8 }
 0x343   : > { %v3768_v30 = vsel %vm3267_vm3, %v3764_v19, %v3765_v6 }
 0x344   : > { %3770 = vst [vmem:[#allocation2 + $0x11] sm:$0x1] %v3768_v30  ;;  %v3790_v25 = vrot.slane %v3789_v20, 7  ;;  %v3900_v20 = vunpack.c.l.b16 %v7757_v61 }
 0x346   : > { %v3791_v1 = vsel %vm3284_vm4, %v3790_v25, %v3788_v9  ;;  %v3942_v9 = vrot.slane %v3255_v3, 3 }
 0x347   : > { %v3792_v7 = vpack.c.b16 %v3791_v1, %v3791_v1 }
 0x349   : > { %v3793_v38 = vrot.slane %v3792_v7, 3  ;;  %v3814_v22 = vld [vmem:[#allocation1 + $0x20] sm:$0xf] }
 0x34a   : > { %v3817_v51 = vunpack.c.l.b16 %v3814_v22  ;;  %3841 = vst [vmem:[#allocation1 + $0x20] ss:$4 sm:$0xff] %v3836_v32  ;;  %v3948_v22 = vsel %vm3267_vm3, %v3255_v3, %v3942_v9  ;;  %v3928_v32 = vunpack.c.l.b16 %v7794_v21 }
 0x34b   : > { %v3796_v27 = vsel %vm3267_vm3, %v3792_v7, %v3793_v38  ;;  %v3256_v38 = vpack.c.bf16 %v7910_v10, %v7910_v10 }
 0x34c   : > { %3798 = vst [vmem:[#allocation2 + $0x12] sm:$0x1] %v3796_v27  ;;  %v3818_v13 = vrot.slane %v3817_v51, 7 }
 0x34d   : > { %v3971_v51 = vrot.slane %v3256_v38, 3 }
 0x34e   : > { %v3819_v59 = vsel %vm3284_vm4, %v3818_v13, %v3816_v50 }
 0x34f   : > { %v3820_v47 = vpack.c.b16 %v3819_v59, %v3819_v59  ;;  %v3977_v10 = vsel %vm3267_vm3, %v3256_v38, %v3971_v51 }
 0x351   : > { %v3821_v17 = vrot.slane %v3820_v47, 3  ;;  %v3842_v18 = vld [vmem:[#allocation1 + $0x20] sm:$0xf] }
 0x352   : > { %v3845_v24 = vunpack.c.l.b16 %v3842_v18  ;;  %3869 = vst [vmem:[#allocation1 + $0x20] ss:$4 sm:$0xff] %v3864_v14  ;;  %v3999_v18 = vrot.slane %v3257_v60, 3 }
 0x353   : > { %v3824_v54 = vsel %vm3267_vm3, %v3820_v47, %v3821_v17 }
 0x354   : > { %3826 = vst [vmem:[#allocation2 + $0x13] sm:$0x1] %v3824_v54  ;;  %v3846_v58 = vrot.slane %v3845_v24, 7  ;;  %v3258_v54 = vpack.c.bf16 %v7918_v44, %v7918_v44 }
 0x356   : > { %v3847_v37 = vsel %vm3284_vm4, %v3846_v58, %v3844_v40  ;;  %v4005_v58 = vsel %vm3267_vm3, %v3257_v60, %v3999_v18  ;;  %v4027_v53 = vrot.slane %v3258_v54, 3 }
 0x357   : > { %v3848_v46 = vpack.c.b16 %v3847_v37, %v3847_v37 }
 0x358   : > { %v4033_v44 = vsel %vm3267_vm3, %v3258_v54, %v4027_v53 }
 0x359   : > { %v3849_v45 = vrot.slane %v3848_v46, 3  ;;  %v3870_v23 = vld [vmem:[#allocation1 + $0x20] sm:$0xf] }
 0x35a   : > { %v3873_v57 = vunpack.c.l.b16 %v3870_v23  ;;  %3897 = vst [vmem:[#allocation1 + $0x20] ss:$4 sm:$0xff] %v3892_v34 }
 0x35b   : > { %v3852_v28 = vsel %vm3267_vm3, %v3848_v46, %v3849_v45  ;;  %v3985_v46 = vunpack.c.l.b16 %v7846_v63 }
 0x35c   : > { %3854 = vst [vmem:[#allocation2 + $0x14] sm:$0x1] %v3852_v28  ;;  %v3874_v43 = vrot.slane %v3873_v57, 7  ;;  %v3259_v28 = vpack.c.bf16 %v7938_v62, %v7938_v62 }
 0x35e   : > { %v3875_v31 = vsel %vm3284_vm4, %v3874_v43, %v3872_v39  ;;  %v4013_v43 = vunpack.c.l.b16 %v7860_v29  ;;  %v4055_v41 = vrot.slane %v3259_v28, 3 }
 0x35f   : > { %v3876_v16 = vpack.c.b16 %v3875_v31, %v3875_v31 }
 0x360   : > { %v4061_v3 = vsel %vm3267_vm3, %v3259_v28, %v4055_v41 }
 0x361   : > { %v3877_v19 = vrot.slane %v3876_v16, 3  ;;  %v3898_v6 = vld [vmem:[#allocation1 + $0x20] sm:$0xf] }
 0x362   : > { %v3901_v4 = vunpack.c.l.b16 %v3898_v6  ;;  %3925 = vst [vmem:[#allocation1 + $0x20] ss:$4 sm:$0xff] %v3920_v49  ;;  %v3260_v49 = vpack.c.bf16 %v7940_v0, %v7940_v0 }
 0x363   : > { %v3880_v5 = vsel %vm3267_vm3, %v3876_v16, %v3877_v19 }
 0x364   : > { %3882 = vst [vmem:[#allocation2 + $0x15] sm:$0x1] %v3880_v5  ;;  %v3902_v30 = vrot.slane %v3901_v4, 7  ;;  %v4041_v5 = vunpack.c.l.b16 %v7891_v12 }
 0x366   : > { %v3903_v25 = vsel %vm3284_vm4, %v3902_v30, %v3900_v20  ;;  %v4083_v20 = vrot.slane %v3260_v49, 3 }
 0x367   : > { %v3904_v26 = vpack.c.b16 %v3903_v25, %v3903_v25 }
 0x368   : > { %v4089_v0 = vsel %vm3267_vm3, %v3260_v49, %v4083_v20 }
 0x369   : > { %v3905_v1 = vrot.slane %v3904_v26, 3  ;;  %v3926_v7 = vld [vmem:[#allocation1 + $0x20] sm:$0xf] }
 0x36a   : > { %v3929_v8 = vunpack.c.l.b16 %v3926_v7  ;;  %3953 = vst [vmem:[#allocation1 + $0x20] ss:$4 sm:$0xff] %v3948_v22  ;;  %v4069_v22 = vunpack.c.l.b16 %v7905_v36  ;;  %v4097_v36 = vunpack.c.l.b16 %v7924_v33 }
 0x36b   : > { %v3908_v56 = vsel %vm3267_vm3, %v3904_v26, %v3905_v1  ;;  %v3261_v26 = vpack.c.bf16 %v7942_v35, %v7942_v35  ;;  %v3262_v35 = vpack.c.bf16 %v7944_v2, %v7944_v2 }
 0x36c   : > { %3910 = vst [vmem:[#allocation2 + $0x16] sm:$0x1] %v3908_v56  ;;  %v3930_v61 = vrot.slane %v3929_v8, 7  ;;  %v5834_v56 = vmov 0.0  }
 0x36d   : > { %v4111_v8 = vrot.slane %v3261_v26, 3  ;;  %4164 = vst [vmem:[#allocation3] sm:$0x3] %v5834_v56 }
 0x36e   : > { %v3931_v27 = vsel %vm3284_vm4, %v3930_v61, %v3928_v32 }
 0x36f   : > { %v3932_v50 = vpack.c.b16 %v3931_v27, %v3931_v27 }
 0x371   : > { %v3933_v13 = vrot.slane %v3932_v50, 3  ;;  %v3954_v59 = vld [vmem:[#allocation1 + $0x20] sm:$0xf] }
 0x372   : > { %v3957_v47 = vunpack.c.l.b16 %v3954_v59  ;;  %3982 = vst [vmem:[#allocation1 + $0x20] ss:$4 sm:$0xff] %v3977_v10  ;;  %v4139_v10 = vrot.slane %v3262_v35, 3 }
 0x373   : > { %v3936_v17 = vsel %vm3267_vm3, %v3932_v50, %v3933_v13  ;;  %v4117_v50 = vsel %vm3267_vm3, %v3261_v26, %v4111_v8 }
 0x374   : > { %3938 = vst [vmem:[#allocation2 + $0x17] sm:$0x1] %v3936_v17  ;;  %v3958_v21 = vrot.slane %v3957_v47, 7  ;;  %v4145_v2 = vsel %vm3267_vm3, %v3262_v35, %v4139_v10 }
 0x376   : > { %v3959_v14 = vsel %vm3284_vm4, %v3958_v21, %v3956_v48 }
 0x377   : > { %v3960_v24 = vpack.c.b16 %v3959_v14, %v3959_v14 }
 0x379   : > { %v3961_v40 = vrot.slane %v3960_v24, 3  ;;  %v3983_v11 = vld [vmem:[#allocation1 + $0x20] sm:$0xf] }
 0x37a   : > { %v3986_v15 = vunpack.c.l.b16 %v3983_v11  ;;  %4010 = vst [vmem:[#allocation1 + $0x20] ss:$4 sm:$0xff] %v4005_v58  ;;  %v4147_v11 = vld [vmem:[#allocation1] sm:$0xf] }
 0x37b   : > { %v3964_v37 = vsel %vm3267_vm3, %v3960_v24, %v3961_v40  ;;  %v4125_v24 = vunpack.c.l.b16 %v7935_v52 }
 0x37c   : > { %3967 = vst [vmem:[#allocation2 + $0x18] sm:$0x1] %v3964_v37  ;;  %v3987_v42 = vrot.slane %v3986_v15, 7 }
 0x37e   : > { %v3988_v45 = vsel %vm3284_vm4, %v3987_v42, %v3985_v46  ;;  %v4153_v42 = vunpack.c.l.b16 %v4147_v11 }
 0x37f   : > { %v3989_v23 = vpack.c.b16 %v3988_v45, %v3988_v45 }
 0x381   : > { %v3990_v34 = vrot.slane %v3989_v23, 3  ;;  %v4011_v57 = vld [vmem:[#allocation1 + $0x20] sm:$0xf] }
 0x382   : > { %v4014_v55 = vunpack.c.l.b16 %v4011_v57  ;;  %4038 = vst [vmem:[#allocation1 + $0x20] ss:$4 sm:$0xff] %v4033_v44 }
 0x383   : > { %v3993_v39 = vsel %vm3267_vm3, %v3989_v23, %v3990_v34 }
 0x384   : > { %3995 = vst [vmem:[#allocation2 + $0x19] sm:$0x1] %v3993_v39  ;;  %v4015_v63 = vrot.slane %v4014_v55, 7 }
 0x386   : > { %v4016_v31 = vsel %vm3284_vm4, %v4015_v63, %v4013_v43 }
 0x387   : > { %v4017_v16 = vpack.c.b16 %v4016_v31, %v4016_v31 }
 0x389   : > { %v4018_v19 = vrot.slane %v4017_v16, 3  ;;  %v4039_v6 = vld [vmem:[#allocation1 + $0x20] sm:$0xf] }
 0x38a   : > { %v4042_v62 = vunpack.c.l.b16 %v4039_v6  ;;  %4066 = vst [vmem:[#allocation1 + $0x20] ss:$4 sm:$0xff] %v4061_v3 }
 0x38b   : > { %v4021_v4 = vsel %vm3267_vm3, %v4017_v16, %v4018_v19 }
 0x38c   : > { %4023 = vst [vmem:[#allocation2 + $0x1a] sm:$0x1] %v4021_v4  ;;  %v4043_v29 = vrot.slane %v4042_v62, 7 }
 0x38e   : > { %v4044_v30 = vsel %vm3284_vm4, %v4043_v29, %v4041_v5 }
 0x38f   : > { %v4045_v9 = vpack.c.b16 %v4044_v30, %v4044_v30 }
 0x391   : > { %v4046_v25 = vrot.slane %v4045_v9, 3  ;;  %v4067_v1 = vld [vmem:[#allocation1 + $0x20] sm:$0xf] }
 0x392   : > { %v4070_v7 = vunpack.c.l.b16 %v4067_v1  ;;  %4094 = vst [vmem:[#allocation1 + $0x20] ss:$4 sm:$0xff] %v4089_v0 }
 0x393   : > { %v4049_v38 = vsel %vm3267_vm3, %v4045_v9, %v4046_v25 }
 0x394   : > { %4051 = vst [vmem:[#allocation2 + $0x1b] sm:$0x1] %v4049_v38  ;;  %v4071_v12 = vrot.slane %v4070_v7, 7 }
 0x396   : > { %v4072_v32 = vsel %vm3284_vm4, %v4071_v12, %v4069_v22 }
 0x397   : > { %v4073_v61 = vpack.c.b16 %v4072_v32, %v4072_v32 }
 0x399   : > { %v4074_v51 = vrot.slane %v4073_v61, 3  ;;  %v4095_v27 = vld [vmem:[#allocation1 + $0x20] sm:$0xf] }
 0x39a   : > { %v4098_v13 = vunpack.c.l.b16 %v4095_v27  ;;  %4122 = vst [vmem:[#allocation1 + $0x20] ss:$4 sm:$0xff] %v4117_v50 }
 0x39b   : > { %v4077_v60 = vsel %vm3267_vm3, %v4073_v61, %v4074_v51 }
 0x39c   : > { %4079 = vst [vmem:[#allocation2 + $0x1c] sm:$0x1] %v4077_v60  ;;  %v4099_v59 = vrot.slane %v4098_v13, 7 }
 0x39e   : > { %v4100_v47 = vsel %vm3284_vm4, %v4099_v59, %v4097_v36 }
 0x39f   : > { %v4101_v17 = vpack.c.b16 %v4100_v47, %v4100_v47 }
 0x3a1   : > { %v4102_v48 = vrot.slane %v4101_v17, 3  ;;  %v4123_v21 = vld [vmem:[#allocation1 + $0x20] sm:$0xf] }
 0x3a2   : > { %v4126_v18 = vunpack.c.l.b16 %v4123_v21  ;;  %4150 = vst [vmem:[#allocation1 + $0x20] ss:$4 sm:$0xff] %v4145_v2 }
 0x3a3   : > { %v4105_v14 = vsel %vm3267_vm3, %v4101_v17, %v4102_v48 }
 0x3a4   : > { %4107 = vst [vmem:[#allocation2 + $0x1d] sm:$0x1] %v4105_v14  ;;  %v4127_v54 = vrot.slane %v4126_v18, 7 }
 0x3a6   : > { %v4128_v33 = vsel %vm3284_vm4, %v4127_v54, %v4125_v24 }
 0x3a7   : > { %v4129_v40 = vpack.c.b16 %v4128_v33, %v4128_v33 }
 0x3a9   : > { %v4130_v58 = vrot.slane %v4129_v40, 3  ;;  %v4151_v15 = vld [vmem:[#allocation1 + $0x20] sm:$0xf] }
 0x3aa   : > { %v4154_v37 = vunpack.c.l.b16 %v4151_v15 }
 0x3ab   : > { %v4133_v46 = vsel %vm3267_vm3, %v4129_v40, %v4130_v58 }
 0x3ac   : > { %4135 = vst [vmem:[#allocation2 + $0x1e] sm:$0x1] %v4133_v46  ;;  %v4155_v53 = vrot.slane %v4154_v37, 7 }
 0x3ae   : > { %v4156_v45 = vsel %vm3284_vm4, %v4155_v53, %v4153_v42 }
 0x3af   : > { %v4157_v23 = vpack.c.b16 %v4156_v45, %v4156_v45 }
 0x3b1   : > { %v4158_v34 = vrot.slane %v4157_v23, 3 }
 0x3b3   : > { %v4161_v52 = vsel %vm3267_vm3, %v4157_v23, %v4158_v34 }
 0x3b4   : > { %4163 = vst [vmem:[#allocation2 + $0x1f] sm:$0x1] %v4161_v52 }
 0x3b5 PF: > { %v5611_v57 = vld [vmem:[%s5936_s9 + $0x38] sm:$0xff]  ;;  %v5610_v39 = vld [vmem:[%s5936_s9 + $0x30] sm:$0xff]  ;;  %v5609_v31 = vld [vmem:[%s5936_s9 + $0x28] sm:$0xff]  ;;  %s5314_s12 = sshll.u32 %s5885_s22, 3  ;;  %p5571_p7 = scmp.ne.s32.totalorder %s5885_s22, 3 }
 0x3b6   : > { %v5619_v44 = vld [vmem:[%s5936_s9 + $0x78] sm:$0xff]  ;;  %4699 = vmatpush.bf16.msra.mxu0 %v5611_v57  ;;  %v5618_v43 = vld [vmem:[%s5936_s9 + $0x70] sm:$0xff]  ;;  %v5617_v16 = vld [vmem:[%s5936_s9 + $0x68] sm:$0xff]  ;;  %s4167_s13 = scalar_lea.vmem [#allocation2], %s5314_s12 }
 0x3b7   : > { %v5627_v28 = vld [vmem:[%s5936_s9 + $0xb8] sm:$0xff]  ;;  %4712 = vmatpush.bf16.msra.mxu1 %v5619_v44  ;;  %v5626_v63 = vld [vmem:[%s5936_s9 + $0xb0] sm:$0xff]  ;;  %v5625_v19 = vld [vmem:[%s5936_s9 + $0xa8] sm:$0xff] }
 0x3b8   : > { %v5635_v55 = vld [vmem:[%s5936_s9 + $0xf8] sm:$0xff]  ;;  %4725 = vmatpush.bf16.msra.mxu2 %v5627_v28  ;;  %v5634_v41 = vld [vmem:[%s5936_s9 + $0xf0] sm:$0xff]  ;;  %v5633_v6 = vld [vmem:[%s5936_s9 + $0xe8] sm:$0xff] }
 0x3b9   : > { %4738 = vmatpush.bf16.msra.mxu3 %v5635_v55  ;;  %v5608_v49 = vld [vmem:[%s5936_s9 + $0x20] sm:$0xff]  ;;  %v5607_v29 = vld [vmem:[%s5936_s9 + $0x18] sm:$0xff]  ;;  %v5606_v25 = vld [vmem:[%s5936_s9 + $0x10] sm:$0xff] }
 0x3ba   : > { %4700 = vmatpush.bf16.msra.mxu0 %v5610_v39  ;;  %v5616_v3 = vld [vmem:[%s5936_s9 + $0x60] sm:$0xff]  ;;  %v5615_v20 = vld [vmem:[%s5936_s9 + $0x58] sm:$0xff]  ;;  %v5614_v26 = vld [vmem:[%s5936_s9 + $0x50] sm:$0xff] }
 0x3bb   : > { %4713 = vmatpush.bf16.msra.mxu1 %v5618_v43  ;;  %v5624_v62 = vld [vmem:[%s5936_s9 + $0xa0] sm:$0xff]  ;;  %v4168_v5 = vld [vmem:[%s4167_s13] sm:$0xff]  ;;  %v5605_v7 = vld [vmem:[%s5936_s9 + $0x8] sm:$0xff] }
 0x3bc   : > { %4726 = vmatpush.bf16.msra.mxu2 %v5626_v63  ;;  %v5632_v4 = vld [vmem:[%s5936_s9 + $0xe0] sm:$0xff]  ;;  %4298 = vst [vmem:[#allocation1] ss:$9 sm:$0xff] %v4168_v5  ;;  %v5623_v30 = vld [vmem:[%s5936_s9 + $0x98] sm:$0xff]  ;;  %v5622_v1 = vld [vmem:[%s5936_s9 + $0x90] sm:$0xff] }
 0x3bd   : > { %4739 = vmatpush.bf16.msra.mxu3 %v5634_v41  ;;  %v5631_v9 = vld [vmem:[%s5936_s9 + $0xd8] sm:$0xff]  ;;  %v5630_v0 = vld [vmem:[%s5936_s9 + $0xd0] sm:$0xff]  ;;  %v5613_v38 = vld [vmem:[%s5936_s9 + $0x48] sm:$0xff] }
 0x3be   : > { %4701 = vmatpush.bf16.msra.mxu0 %v5609_v31  ;;  %v5621_v22 = vld [vmem:[%s5936_s9 + $0x88] sm:$0xff]  ;;  %v5604_v8 = vld [vmem:[%s5936_s9] sm:$0xff]  ;;  %v5643_v35 = vld [vmem:[%s5936_s9 + $0x138] sm:$0xff] }
 0x3bf   : > { %4714 = vmatpush.bf16.msra.mxu1 %v5617_v16  ;;  %v5629_v12 = vld [vmem:[%s5936_s9 + $0xc8] sm:$0xff]  ;;  %v5612_v56 = vld [vmem:[%s5936_s9 + $0x40] sm:$0xff]  ;;  %v5651_v51 = vld [vmem:[%s5936_s9 + $0x178] sm:$0xff] }
 0x3c0   : > { %4727 = vmatpush.bf16.msra.mxu2 %v5625_v19  ;;  %v5620_v32 = vld [vmem:[%s5936_s9 + $0x80] sm:$0xff]  ;;  %v5659_v27 = vld [vmem:[%s5936_s9 + $0x1b8] sm:$0xff]  ;;  %v5642_v13 = vld [vmem:[%s5936_s9 + $0x130] sm:$0xff] }
 0x3c1   : > { %4740 = vmatpush.bf16.msra.mxu3 %v5633_v6  ;;  %v5628_v61 = vld [vmem:[%s5936_s9 + $0xc0] sm:$0xff]  ;;  %v5667_v50 = vld [vmem:[%s5936_s9 + $0x1f8] sm:$0xff]  ;;  %v5650_v59 = vld [vmem:[%s5936_s9 + $0x170] sm:$0xff] }
 0x3c2   : > { %4702 = vmatpush.bf16.msra.mxu0 %v5608_v49  ;;  %v5658_v17 = vld [vmem:[%s5936_s9 + $0x1b0] sm:$0xff]  ;;  %v5641_v21 = vld [vmem:[%s5936_s9 + $0x128] sm:$0xff]  ;;  %v5640_v24 = vld [vmem:[%s5936_s9 + $0x120] sm:$0xff] }
 0x3c3   : > { %4715 = vmatpush.bf16.msra.mxu1 %v5616_v3  ;;  %v4301_v60 = vld [vmem:[#allocation1 + $0x12] sm:$0xff]  ;;  %v4302_v36 = vld [vmem:[#allocation1 + $0x1b] sm:$0xff]  ;;  %v4300_v47 = vld [vmem:[#allocation1 + $0x9] sm:$0xff] }
 0x3c4   : > { %4728 = vmatpush.bf16.msra.mxu2 %v5624_v62  ;;  %v4299_v10 = vld [vmem:[#allocation1] sm:$0xff]  ;;  %v5649_v2 = vld [vmem:[%s5936_s9 + $0x168] sm:$0xff]  ;;  %v5648_v54 = vld [vmem:[%s5936_s9 + $0x160] sm:$0xff] }
 0x3c5   : > { %4741 = vmatpush.bf16.msra.mxu3 %v5632_v4  ;;  %v5666_v48 = vld [vmem:[%s5936_s9 + $0x1f0] sm:$0xff]  ;;  %v5657_v18 = vld [vmem:[%s5936_s9 + $0x1a8] sm:$0xff]  ;;  %v5656_v33 = vld [vmem:[%s5936_s9 + $0x1a0] sm:$0xff] }
 0x3c6   : > { %4703 = vmatpush.bf16.msra.mxu0 %v5607_v29  ;;  %v5665_v14 = vld [vmem:[%s5936_s9 + $0x1e8] sm:$0xff]  ;;  %v5664_v40 = vld [vmem:[%s5936_s9 + $0x1e0] sm:$0xff]  ;;  %v5639_v11 = vld [vmem:[%s5936_s9 + $0x118] sm:$0xff] }
 0x3c7   : > { %4716 = vmatpush.bf16.msra.mxu1 %v5615_v20  ;;  %v5647_v58 = vld [vmem:[%s5936_s9 + $0x158] sm:$0xff]  ;;  %v5638_v46 = vld [vmem:[%s5936_s9 + $0x110] sm:$0xff]  ;;  %v5637_v23 = vld [vmem:[%s5936_s9 + $0x108] sm:$0xff] }
 0x3c8   : > { %4729 = vmatpush.bf16.msra.mxu2 %v5623_v30  ;;  %v5655_v15 = vld [vmem:[%s5936_s9 + $0x198] sm:$0xff]  ;;  %v5646_v42 = vld [vmem:[%s5936_s9 + $0x150] sm:$0xff]  ;;  %v5645_v34 = vld [vmem:[%s5936_s9 + $0x148] sm:$0xff] }
 0x3c9   : > { %4742 = vmatpush.bf16.msra.mxu3 %v5631_v9  ;;  %v5663_v37 = vld [vmem:[%s5936_s9 + $0x1d8] sm:$0xff]  ;;  %v5654_v53 = vld [vmem:[%s5936_s9 + $0x190] sm:$0xff]  ;;  %v5653_v52 = vld [vmem:[%s5936_s9 + $0x188] sm:$0xff] }
 0x3ca   : > { %4704 = vmatpush.bf16.msra.mxu0 %v5606_v25  ;;  %v5662_v45 = vld [vmem:[%s5936_s9 + $0x1d0] sm:$0xff]  ;;  %v5661_v57 = vld [vmem:[%s5936_s9 + $0x1c8] sm:$0xff]  ;;  %v5636_v44 = vld [vmem:[%s5936_s9 + $0x100] sm:$0xff] }
 0x3cb   : > { %4717 = vmatpush.bf16.msra.mxu1 %v5614_v26  ;;  %v5644_v28 = vld [vmem:[%s5936_s9 + $0x140] sm:$0xff]  ;;  %v4305_v41 = vld [vmem:[#allocation1 + $0x36] sm:$0xff]  ;;  %v4306_v31 = vld [vmem:[#allocation1 + $0x3f] sm:$0xff] }
 0x3cc   : > { %4730 = vmatpush.bf16.msra.mxu2 %v5622_v1  ;;  %v5652_v55 = vld [vmem:[%s5936_s9 + $0x180] sm:$0xff] }
 0x3cd   : > { %4743 = vmatpush.bf16.msra.mxu3 %v5630_v0  ;;  %v5660_v39 = vld [vmem:[%s5936_s9 + $0x1c0] sm:$0xff] }
 0x3ce   : > { %4705 = vmatpush.bf16.msra.mxu0 %v5605_v7  ;;  %v4303_v43 = vld [vmem:[#allocation1 + $0x24] sm:$0xff]  ;;  %v4304_v63 = vld [vmem:[#allocation1 + $0x2d] sm:$0xff] }
 0x3cf   : > { %4718 = vmatpush.bf16.msra.mxu1 %v5613_v38 }
 0x3d0   : > { %4731 = vmatpush.bf16.msra.mxu2 %v5621_v22 }
 0x3d1   : > { %4744 = vmatpush.bf16.msra.mxu3 %v5629_v12 }
 0x3d2   : > { %4706 = vmatpush.bf16.msra.mxu0 %v5604_v8  ;;  %v4165_v8 = vld [vmem:[#allocation3] sm:$0x3] }
 0x3d3   : > { %4719 = vmatpush.bf16.msra.mxu1 %v5612_v56 }
 0x3d4   : > { %4732 = vmatpush.bf16.msra.mxu2 %v5620_v32 }
 0x3d5   : > { %4745 = vmatpush.bf16.msra.mxu3 %v5628_v61  ;;  %4707 = vmatmul.bf16.vlgmr.msra.gmra.mxu0 %v4299_v10 }
 0x3d6   : > { %4751 = vmatpush.bf16.msrb.mxu0 %v5643_v35  ;;  %4720 = vmatmul.bf16.vlgmr.msra.gmra.mxu1 %v4300_v47 }
 0x3d7   : > { %4764 = vmatpush.bf16.msrb.mxu1 %v5651_v51  ;;  %4733 = vmatmul.bf16.vlgmr.msra.gmra.mxu2 %v4301_v60 }
 0x3d8   : > { %4777 = vmatpush.bf16.msrb.mxu2 %v5659_v27  ;;  %4746 = vmatmul.bf16.vlgmr.msra.gmra.mxu3 %v4302_v36 }
 0x3d9   : > { %4790 = vmatpush.bf16.msrb.mxu3 %v5667_v50 }
 0x3da   : > { %4752 = vmatpush.bf16.msrb.mxu0 %v5642_v13 }
 0x3db   : > { %4765 = vmatpush.bf16.msrb.mxu1 %v5650_v59 }
 0x3dc   : > { %4778 = vmatpush.bf16.msrb.mxu2 %v5658_v17 }
 0x3dd   : > { %4791 = vmatpush.bf16.msrb.mxu3 %v5666_v48 }
 0x3de   : > { %4753 = vmatpush.bf16.msrb.mxu0 %v5641_v21 }
 0x3df   : > { %4766 = vmatpush.bf16.msrb.mxu1 %v5649_v2 }
 0x3e0   : > { %4779 = vmatpush.bf16.msrb.mxu2 %v5657_v18 }
 0x3e1   : > { %4792 = vmatpush.bf16.msrb.mxu3 %v5665_v14 }
 0x3e2   : > { %4754 = vmatpush.bf16.msrb.mxu0 %v5640_v24 }
 0x3e3   : > { %4767 = vmatpush.bf16.msrb.mxu1 %v5648_v54 }
 0x3e4   : > { %4780 = vmatpush.bf16.msrb.mxu2 %v5656_v33 }
 0x3e5   : > { %4793 = vmatpush.bf16.msrb.mxu3 %v5664_v40 }
 0x3e6   : > { %4755 = vmatpush.bf16.msrb.mxu0 %v5639_v11 }
 0x3e7   : > { %4768 = vmatpush.bf16.msrb.mxu1 %v5647_v58 }
 0x3e8   : > { %4781 = vmatpush.bf16.msrb.mxu2 %v5655_v15 }
 0x3e9   : > { %4794 = vmatpush.bf16.msrb.mxu3 %v5663_v37 }
 0x3ea   : > { %4756 = vmatpush.bf16.msrb.mxu0 %v5638_v46 }
 0x3eb   : > { %4769 = vmatpush.bf16.msrb.mxu1 %v5646_v42 }
 0x3ec   : > { %4782 = vmatpush.bf16.msrb.mxu2 %v5654_v53 }
 0x3ed   : > { %4795 = vmatpush.bf16.msrb.mxu3 %v5662_v45 }
 0x3ee   : > { %4757 = vmatpush.bf16.msrb.mxu0 %v5637_v23 }
 0x3ef   : > { %4770 = vmatpush.bf16.msrb.mxu1 %v5645_v34 }
 0x3f0   : > { %4783 = vmatpush.bf16.msrb.mxu2 %v5653_v52 }
 0x3f1   : > { %4796 = vmatpush.bf16.msrb.mxu3 %v5661_v57 }
 0x3f2   : > { %4758 = vmatpush.bf16.msrb.mxu0 %v5636_v44 }
 0x3f3   : > { %4771 = vmatpush.bf16.msrb.mxu1 %v5644_v28 }
 0x3f4   : > { %4784 = vmatpush.bf16.msrb.mxu2 %v5652_v55 }
 0x3f5   : > { %4797 = vmatpush.bf16.msrb.mxu3 %v5660_v39  ;;  %4759 = vmatmul.bf16.vlgmr.msrb.gmra.mxu0 %v4303_v43 }
 0x3f6   : > { %4772 = vmatmul.bf16.vlgmr.msrb.gmra.mxu1 %v4304_v63 }
 0x3f7   : > { %4785 = vmatmul.bf16.vlgmr.msrb.gmra.mxu2 %v4305_v41 }
 0x3f8   : > { %4798 = vmatmul.bf16.vlgmr.msrb.gmra.mxu3 %v4306_v31 }
 0x452   : > { %v4708_v16 = vpop.f32.mrf.mxu0 }
 0x453   : > { %v4721_v19 = vpop.f32.mrf.mxu1 }
 0x454   : > { %v4722_v29 = vadd.f32 %v4721_v19, %v4708_v16 }
 0x45a   : > { %v4734_v6 = vpop.f32.mrf.mxu2  ;;  %v4710_v3 = vpop.f32.mrf.mxu0 }
 0x45b   : > { %v4747_v49 = vpop.f32.mrf.mxu3  ;;  %v4723_v62 = vpop.f32.mrf.mxu1  ;;  %v4735_v20 = vadd.f32 %v4734_v6, %v4722_v29 }
 0x45d   : > { %v4748_v30 = vadd.f32 %v4747_v49, %v4735_v20 }
 0x462   : > { %v4736_v4 = vpop.f32.mrf.mxu2 }
 0x463   : > { %v4749_v5 = vpop.f32.mrf.mxu3 }
 0x472   : > { %v4760_v9 = vpop.f32.mrf.mxu0 }
 0x473   : > { %v4773_v25 = vpop.f32.mrf.mxu1  ;;  %v4761_v26 = vadd.f32 %v4760_v9, %v4748_v30 }
 0x475   : > { %v4774_v1 = vadd.f32 %v4773_v25, %v4761_v26 }
 0x47a   : > { %v4786_v0 = vpop.f32.mrf.mxu2  ;;  %v4762_v22 = vpop.f32.mrf.mxu0 }
 0x47b   : > { %v4799_v7 = vpop.f32.mrf.mxu3  ;;  %v4787_v38 = vadd.f32 %v4786_v0, %v4774_v1  ;;  %v4775_v12 = vpop.f32.mrf.mxu1 }
 0x47d   : > { %v4800_v56 = vadd.f32 %v4799_v7, %v4787_v38 }
 0x47f   : > { %v4803_v32 = vadd.f32 %v4800_v56, %v4165_v8  ;;  %4808 = sbr.rel (%p5571_p7) target bundleno = 1164 (0x48c), region = 52 }
 0x481   : > { %4804 = vst [vmem:[#allocation3] sm:$0x3] %v4803_v32 }
 0x482   : > { %v4788_v61 = vpop.f32.mrf.mxu2 }
 0x483   : > { %v4801_v35 = vpop.f32.mrf.mxu3 }
 0x484   : > { %v5733_v27 = vld [vmem:[%s8139_s4] ss:$0 sm:$0xff] }
 0x488   : > { %v4809_v51 = vld [vmem:[#allocation3] sm:$0x3] }
 0x489   : > { %v4814_v50 = vadd.f32 %v5733_v27, %v4809_v51 }
 0x48b   : > { %4815 = vst [vmem:[#allocation7] sm:$0x3] %v4814_v50 }
 0x48c PF: > { %p5688_p8 = scmp.eq.s32.totalorder %s5885_s22, 3  ;;  %s5835_s15 = smov [#allocation7]  }
 0x48d   : > { %s4822_s16 = sshll.u32 %s5835_s15, 4  ;;  %s4824_s18 = sshll.u32 %s8140_s5, 4  ;;  %s4823_s16 = int_to_ptr.vmem [resolvable:$true] %s4822_s16  ;;  %s4825_s18 = int_to_ptr.hbm [resolvable:$true] %s4824_s18 }
 0x48e   : > { %5680 = dma.vmem_to_hbm [thread:$0]  (%p5688_p8), %s4823_s16, 32, %s4825_s18, [#allocation6]  }
 0x48f   : > { %5813 = dma.done.wait (%p5688_p8), [#allocation6], 32  }
 0x490   : > { %5815 = vsyncadd (%p5688_p8), [#allocation6], 4294967264 }
 0x491 PF: > { %p16_p9 = scmp.ge.s32.totalorder %s5888_s23, 6   ;;  %s8514_s18 = smov %s5822_s19 }
 0x492   : > { %s8515_s19 = smov %s5826_s20  ;;  %s8516_s20 = smov %s5898_s26 }
 0x493   : > { %s8517_s21 = smov %s5888_s23  ;;  %18 = sbr.rel (!%p16_p9) target bundleno = 4 (0x4), region = 129 }
 0x498   :  { %4838 = vsyncpa [#allocation5], 1 }
 0x499   :  { %4840 = vsyncpa [#allocation5 + $0x1], 1 }
 0x49a   :  { %4841 = vsyncpa [#allocation6], 1 }
 0x49b   :  { %4843 = vsyncpa [#allocation6 + $0x1], 1 }

</bundles_post_ra>
